<compile_context>
chip_gen: v7x
topology: tpu7x:2x2x1
jax: 0.10.0
libtpu: 0.0.40
codegen_flags: <defaults>
</compile_context>

<pallas_src>
import math
from dataclasses import dataclass, field
from functools import partial
from typing import Any, Dict, Literal, Optional

import numpy as np
import jax
import jax.numpy as jnp
from jax.experimental import pallas as pl
from jax.experimental.pallas import tpu as pltpu

K = 16            # blade components per multivector
_EPS = 1e-6

# ----------------------------------------------------------------------------- #
# Geometric-algebra tables for PGA(3,0,1)  (built once in numpy -> kernel inputs)
# ----------------------------------------------------------------------------- #
BLADES = [(), (0,), (1,), (2,), (3,), (0, 1), (0, 2), (0, 3), (1, 2), (1, 3),
          (2, 3), (0, 1, 2), (0, 1, 3), (0, 2, 3), (1, 2, 3), (0, 1, 2, 3)]
BLADE_INDEX = {b: i for i, b in enumerate(BLADES)}


def _sort_sign(lst):
    lst = list(lst)
    sign = 1
    for i in range(len(lst)):
        for j in range(len(lst) - 1 - i):
            if lst[j] > lst[j + 1]:
                lst[j], lst[j + 1] = lst[j + 1], lst[j]
                sign = -sign
    return sign, lst


def _blade_gp(a, b):
    # geometric product of basis blades; metric: e0^2 = 0, e1^2 = e2^2 = e3^2 = 1
    sign, lst = _sort_sign(list(a) + list(b))
    out, i = [], 0
    while i < len(lst):
        if i + 1 < len(lst) and lst[i] == lst[i + 1]:
            if lst[i] == 0:
                return 0, ()
            i += 2
        else:
            out.append(lst[i])
            i += 1
    return sign, tuple(out)


def _blade_wedge(a, b):
    if set(a) & set(b):
        return 0, ()
    sign, lst = _sort_sign(list(a) + list(b))
    return sign, tuple(lst)


def build_gp_table():
    tbl = np.zeros((K, K, K), np.float32)
    for i, a in enumerate(BLADES):
        for j, b in enumerate(BLADES):
            s, r = _blade_gp(a, b)
            if s != 0:
                tbl[i, j, BLADE_INDEX[r]] = s
    return tbl


def build_join_table():
    # join (regressive / antiwedge) via right complements.
    # TODO(synk): sign convention of the original library's equi_join is not given;
    #             we use the standard rc^-1(rc(a) ^ rc(b)) construction.
    full = (0, 1, 2, 3)
    rc, rc_inv = {}, {}
    for i, a in enumerate(BLADES):
        comp = tuple(sorted(set(full) - set(a)))
        s, r = _blade_wedge(a, comp)
        assert r == full and s != 0
        rc[i] = (s, BLADE_INDEX[comp])
    for i, (s, j) in rc.items():
        rc_inv[j] = (s, i)
    tbl = np.zeros((K, K, K), np.float32)
    for i in range(K):
        for j in range(K):
            sa, ia = rc[i]
            sb, jb = rc[j]
            sw, r = _blade_wedge(BLADES[ia], BLADES[jb])
            if sw == 0:
                continue
            sr, kr = rc_inv[BLADE_INDEX[r]]
            tbl[i, j, kr] = sa * sb * sw * sr
    return tbl


# invariant-inner-product blades (no e0) and point/trivector blades (with e0)
IP_MASK = np.array([0.0 if 0 in b else 1.0 for b in BLADES], np.float32)
PT_MASK = np.array([1.0 if (len(b) == 3 and 0 in b) else 0.0 for b in BLADES],
                   np.float32)


def _kron_tables(tbl, si):
    """For each blade i return kron(tbl[i], I_si): (K, K*si, K*si)."""
    eye = np.eye(si, dtype=np.float32)
    return np.stack([np.kron(tbl[i], eye) for i in range(K)], axis=0)


def _choose_tile(n_rows, row_bytes, align=8, target_bytes=2 << 20):
    """Largest aligned divisor of n_rows with block <= target; prefer grid >= 2
    (two TensorCores on v7x)."""
    if n_rows <= 0 or n_rows % align != 0:
        return n_rows
    divs = [t for t in range(align, n_rows + 1, align) if n_rows % t == 0]
    fitting = [t for t in divs if t * row_bytes <= target_bytes]
    pool = fitting if fitting else divs[:1]
    multi = [t for t in pool if n_rows // t >= 2]
    return max(multi) if multi else max(pool)


_PARAMS_1D = pltpu.CompilerParams(dimension_semantics=("parallel",))

# ----------------------------------------------------------------------------- #
# Pallas kernels
# ----------------------------------------------------------------------------- #
def _equi_linear_kernel(x_ref, w_ref, b_ref, o_ref):
    # x: (tm, Cin) f32, rows = (token, blade) with blade fastest (tm % 16 == 0)
    # w: (Cin, Cout) bf16 dense channel-mixing shared across blades
    # b: (1, Cout) f32, added only to the scalar blade (rows with row % 16 == 0)
    x = x_ref[...].astype(jnp.bfloat16)
    y = jnp.dot(x, w_ref[...], preferred_element_type=jnp.float32)
    blade = jax.lax.broadcasted_iota(jnp.int32, (y.shape[0], 1), 0) % K
    y = y + jnp.where(blade == 0, 1.0, 0.0) * b_ref[...]
    o_ref[...] = y.astype(o_ref.dtype)


def _equi_linear_res_kernel(x_ref, w_ref, b_ref, r_ref, o_ref):
    # Same as _equi_linear_kernel, with a fused residual add (r has Cout lanes).
    x = x_ref[...].astype(jnp.bfloat16)
    y = jnp.dot(x, w_ref[...], preferred_element_type=jnp.float32)
    blade = jax.lax.broadcasted_iota(jnp.int32, (y.shape[0], 1), 0) % K
    y = y + jnp.where(blade == 0, 1.0, 0.0) * b_ref[...]
    o_ref[...] = (y + r_ref[...]).astype(o_ref.dtype)


def _rmsnorm_kernel(x_ref, w_ref, m_ref, o_ref, *, inv_c):
    # x: (tm, K*C) blade-major lanes; m: (1, K*C) invariant mask; w: (1, K*C) scale
    x = x_ref[...]
    xm = x * m_ref[...]
    sq = jnp.sum(xm * xm, axis=1, keepdims=True) * inv_c
    o_ref[...] = (x * jax.lax.rsqrt(sq + _EPS) * w_ref[...]).astype(o_ref.dtype)


def _gated_gelu_kernel(x_ref, o_ref, *, num_channels):
    # x: (tm, K*C) blade-major; scalar blade occupies the first C lanes.
    # TODO(synk): reference uses scaler_gated_gelu(..., 'none'); exact GELU flavour
    #             unknown, tanh-approximate GELU used here.
    x = x_ref[...]
    gate = jax.nn.gelu(x[:, :num_channels], approximate=True)       # (tm, C)
    reps = x.shape[1] // num_channels
    o_ref[...] = (x * jnp.tile(gate, (1, reps))).astype(o_ref.dtype)


def _bilinear_kernel(x_ref, y_ref, tbl_ref, o_ref):
    # out[n, kout*si + c] = sum_{i,j} tbl[i, j, kout] * x[n, i*si+c] * y[n, j*si+c]
    # tbl_ref: (K, K*si, K*si) = kron(tbl[i], I_si), bf16.
    x = x_ref[...]                                # (tm, K*si) f32
    y = y_ref[...].astype(jnp.bfloat16)           # (tm, K*si)
    si = x.shape[1] // K
    acc = jnp.zeros(x.shape, jnp.float32)
    for i in range(K):                            # static unroll over x blade index
        yt = jnp.dot(y, tbl_ref[i], preferred_element_type=jnp.float32)
        xi = jnp.tile(x[:, i * si:(i + 1) * si], (1, K))
        acc = acc + xi * yt
    o_ref[...] = acc.astype(o_ref.dtype)


def _attn_kernel(q_ref, k_ref, v_ref, wq_ref, wk_ref, ptm_ref, o_ref, *,
                 scale, use_daa):
    # q: (1, tq, K*C); k, v: (1, T, K*C); masks: (1, K*C)
    # ip and daa score terms are folded into ONE MXU matmul: wq = ipm + 2*ptm,
    # wk = ipm + ptm (masks are disjoint), then the -|q|^2 - |k|^2 daa terms are
    # cheap VPU row reductions.
    q = q_ref[0]
    k = k_ref[0]
    v = v_ref[0]
    qm = (q * wq_ref[...]).astype(jnp.bfloat16)
    km = (k * wk_ref[...]).astype(jnp.bfloat16)
    logits = jax.lax.dot_general(qm, km, (((1,), (1,)), ((), ())),
                                 preferred_element_type=jnp.float32)   # (tq, T)
    if use_daa:
        # TODO(synk): exact daa similarity of equi_geometric_attention unavailable;
        #             -||p_q - p_k||^2 over the e0-trivector (point) coordinates used.
        ptm = ptm_ref[...]
        qp = q * ptm
        kp = k * ptm
        qn = jnp.sum(qp * qp, axis=1, keepdims=True)                   # (tq, 1)
        kn = jnp.sum(kp * kp, axis=1, keepdims=True)                   # (T, 1)
        logits = logits - qn - jnp.swapaxes(kn, 0, 1)
    logits = logits * scale
    m = jnp.max(logits, axis=1, keepdims=True)
    p = jnp.exp(logits - m)
    p = p * pl.reciprocal(jnp.sum(p, axis=1, keepdims=True), approx=True)
    out = jnp.dot(p.astype(jnp.bfloat16), v.astype(jnp.bfloat16),
                  preferred_element_type=jnp.float32)
    o_ref[0] = out.astype(o_ref.dtype)


# ----------------------------------------------------------------------------- #
# Wrappers around pallas_call (glue: reshapes / parameter plumbing only)
# ----------------------------------------------------------------------------- #
def equi_linear(x_bm, w_t, b_row, residual=None):
    # TODO(synk): true GATr EquiLinear uses 9 Pin(3,0,1)-equivariant basis maps;
    #             simplified to one channel-mixing map shared across blades with
    #             bias on the scalar blade only.
    # x_bm: (B, T, K, Cin); w_t: (Cin, Cout) bf16; b_row: (1, Cout) f32
    # residual: optional (B, T, K, Cout) fused into the output.
    B, T, K_, Cin = x_bm.shape
    Cout = w_t.shape[1]
    R = B * T * K_
    xf = x_bm.reshape(R, Cin)
    tm = _choose_tile(R, max(Cin, Cout) * 4, align=K_)
    in_specs = [pl.BlockSpec((tm, Cin), lambda i: (i, 0)),
                pl.BlockSpec((Cin, Cout), lambda i: (0, 0)),
                pl.BlockSpec((1, Cout), lambda i: (0, 0))]
    args = [xf, w_t, b_row]
    if residual is None:
        kernel = _equi_linear_kernel
    else:
        kernel = _equi_linear_res_kernel
        in_specs.append(pl.BlockSpec((tm, Cout), lambda i: (i, 0)))
        args.append(residual.reshape(R, Cout))
    out = pl.pallas_call(
        kernel,
        out_shape=jax.ShapeDtypeStruct((R, Cout), jnp.float32),
        grid=(R // tm,),
        in_specs=in_specs,
        out_specs=pl.BlockSpec((tm, Cout), lambda i: (i, 0)),
        compiler_params=_PARAMS_1D,
    )(*args)
    return out.reshape(B, T, K_, Cout)


def equi_rmsnorm(x_bm, w_lanes, m_lanes):
    # TODO(synk): reference normalization divides by num_channels only (not by the
    #             count of unmasked blades); kept identical here.
    B, T, K_, C = x_bm.shape
    N, L = B * T, K_ * C
    xf = x_bm.reshape(N, L)
    tm = _choose_tile(N, L * 4, align=8)
    out = pl.pallas_call(
        partial(_rmsnorm_kernel, inv_c=1.0 / C),
        out_shape=jax.ShapeDtypeStruct((N, L), jnp.float32),
        grid=(N // tm,),
        in_specs=[pl.BlockSpec((tm, L), lambda i: (i, 0)),
                  pl.BlockSpec((1, L), lambda i: (0, 0)),
                  pl.BlockSpec((1, L), lambda i: (0, 0))],
        out_specs=pl.BlockSpec((tm, L), lambda i: (i, 0)),
        compiler_params=_PARAMS_1D,
    )(xf, w_lanes, m_lanes)
    return out.reshape(B, T, K_, C)


def gated_gelu(x_bm):
    B, T, K_, C = x_bm.shape
    N, L = B * T, K_ * C
    xf = x_bm.reshape(N, L)
    tm = _choose_tile(N, L * 4, align=8)
    out = pl.pallas_call(
        partial(_gated_gelu_kernel, num_channels=C),
        out_shape=jax.ShapeDtypeStruct((N, L), jnp.float32),
        grid=(N // tm,),
        in_specs=[pl.BlockSpec((tm, L), lambda i: (i, 0))],
        out_specs=pl.BlockSpec((tm, L), lambda i: (i, 0)),
        compiler_params=_PARAMS_1D,
    )(xf)
    return out.reshape(B, T, K_, C)


def bilinear_product(x_bm, y_bm, kron_tbl):
    # element-wise-per-channel bilinear map (geometric product / join), computed
    # as 16 lane-dense (tm, K*si) x (K*si, K*si) MXU matmuls.
    B, T, K_, si = x_bm.shape
    N, L = B * T, K_ * si
    xf = x_bm.reshape(N, L)
    yf = y_bm.reshape(N, L)
    tm = _choose_tile(N, L * 4, align=8, target_bytes=1 << 20)
    out = pl.pallas_call(
        _bilinear_kernel,
        out_shape=jax.ShapeDtypeStruct((N, L), jnp.float32),
        grid=(N // tm,),
        in_specs=[pl.BlockSpec((tm, L), lambda i: (i, 0)),
                  pl.BlockSpec((tm, L), lambda i: (i, 0)),
                  pl.BlockSpec((K_, L, L), lambda i: (0, 0, 0))],
        out_specs=pl.BlockSpec((tm, L), lambda i: (i, 0)),
        compiler_params=_PARAMS_1D,
    )(xf, yf, kron_tbl)
    return out.reshape(B, T, K_, si)


def equi_attention(q, k, v, wq_lanes, wk_lanes, ptm_lanes, scale, use_daa):
    # q, k, v: (B*H, T, K*C) lane-dense per-head slabs; query axis is tiled so the
    # (tq, T) logits never blow the VMEM budget (v5e 16 MiB / v7x 64 MiB).
    BH, T, L = q.shape
    tq = 256 if (T > 256 and T % 256 == 0) else T
    nq = T // tq
    return pl.pallas_call(
        partial(_attn_kernel, scale=scale, use_daa=use_daa),
        out_shape=jax.ShapeDtypeStruct((BH, T, L), jnp.float32),
        grid=(BH, nq),
        in_specs=[pl.BlockSpec((1, tq, L), lambda b, i: (b, i, 0)),
                  pl.BlockSpec((1, T, L), lambda b, i: (b, 0, 0)),
                  pl.BlockSpec((1, T, L), lambda b, i: (b, 0, 0)),
                  pl.BlockSpec((1, L), lambda b, i: (0, 0)),
                  pl.BlockSpec((1, L), lambda b, i: (0, 0)),
                  pl.BlockSpec((1, L), lambda b, i: (0, 0))],
        out_specs=pl.BlockSpec((1, tq, L), lambda b, i: (b, i, 0)),
        compiler_params=pltpu.CompilerParams(
            dimension_semantics=("parallel", "parallel"),
            vmem_limit_bytes=48 * 1024 * 1024),
    )(q, k, v, wq_lanes, wk_lanes, ptm_lanes)


# ----------------------------------------------------------------------------- #
# Model config + GeneratorBlock (forward composed of the Pallas kernels above)
# ----------------------------------------------------------------------------- #
@dataclass
class ModelConfig:
    adpt_num_blocks: int = 2
    adpt_dim_hidden: int = 768
    adpt_dim_intermediate: int = 1024
    gnrt_num_points: int = 1024
    gnrt_num_blocks: int = 2
    gnrt_dim_hidden: int = 48
    gnrt_dim_intermediate: int = 48
    gnrt_num_attn_heads: int = 8
    gnrt_lin_bias: bool = True
    gnrt_attn_kinds: Dict[Literal["ipa", "daa"], Optional[Dict[str, Any]]] = field(
        default_factory=lambda: {"ipa": None, "daa": None})


class GeneratorBlockPallas:
    def __init__(self, config: ModelConfig, idx: int, key):
        self.config = config
        self.idx = idx
        C = config.gnrt_dim_hidden
        H = config.gnrt_num_attn_heads
        Di = config.gnrt_dim_intermediate
        kinds = config.gnrt_attn_kinds
        if not any(kk in kinds for kk in ("ipa", "daa")):
            raise ValueError("gnrt_attn_kinds must contain 'ipa' and/or 'daa'")
        self.use_ipa = "ipa" in kinds
        self.use_daa = "daa" in kinds
        ks = jax.random.split(key, 18)

        def w_init(k, o, i):
            # stored transposed (Cin, Cout) and pre-cast to bf16 for the MXU
            w = jax.random.normal(k, (o, i), jnp.float32) / math.sqrt(i)
            return jnp.asarray(w.T, jnp.bfloat16)

        def b_init(k, o):
            if config.gnrt_lin_bias:
                b = jax.random.normal(k, (o,), jnp.float32) * 0.02
            else:
                b = jnp.zeros((o,), jnp.float32)
            return b.reshape(1, o)

        # --- GeneratorSelfAttention params ---
        self.w_attn_self = w_init(ks[0], 3 * H * C, C)
        self.b_attn_self = b_init(ks[1], 3 * H * C)
        self.w_next_self = w_init(ks[2], C, H * C)
        self.b_next_self = b_init(ks[3], C)
        # --- GeneratorCrossAttention params ---
        self.w_attn_adpt = w_init(ks[4], 2 * H * C, C)
        self.b_attn_adpt = b_init(ks[5], 2 * H * C)
        self.w_attn_gnrt = w_init(ks[6], H * C, C)
        self.b_attn_gnrt = b_init(ks[7], H * C)
        self.w_next_cross = w_init(ks[14], C, H * C)
        self.b_next_cross = b_init(ks[15], C)
        # --- GeneratorMLP / GeneratorBilinear params ---
        self.w_bili = w_init(ks[8], 2 * Di, C)
        self.b_bili = b_init(ks[9], 2 * Di)
        self.w_bili_next = w_init(ks[10], C, Di)
        self.b_bili_next = b_init(ks[11], C)
        self.w_mlp_next = w_init(ks[12], C, C)
        self.b_mlp_next = b_init(ks[13], C)

        # --- layer-norm scales (ones; learnable in the reference) as lane vectors ---
        ln = jnp.ones((C,), jnp.float32)
        self.ln_self_lanes = jnp.tile(ln, K).reshape(1, K * C)
        self.ln_cross_lanes = jnp.tile(ln, K).reshape(1, K * C)
        self.ln_mlp_lanes = jnp.tile(ln, K).reshape(1, K * C)

        # --- blade masks broadcast over channels (blade-major lanes k*C + c) ---
        ipm = np.repeat(IP_MASK, C)
        ptm = np.repeat(PT_MASK, C)
        self.ipm_lanes = jnp.asarray(ipm).reshape(1, K * C)
        self.ptm_lanes = jnp.asarray(ptm).reshape(1, K * C)
        wq = np.zeros(K * C, np.float32)
        wk = np.zeros(K * C, np.float32)
        if self.use_ipa:
            wq += ipm
            wk += ipm
        if self.use_daa:
            wq += 2.0 * ptm
            wk += ptm
        self.wq_lanes = jnp.asarray(wq).reshape(1, K * C)
        self.wk_lanes = jnp.asarray(wk).reshape(1, K * C)

        # --- GA bilinear tables expanded to lane-dense kron(tbl[i], I_si) ---
        si = Di // 2
        self.gp_kron = jnp.asarray(_kron_tables(build_gp_table(), si), jnp.bfloat16)
        self.join_kron = jnp.asarray(_kron_tables(build_join_table(), si), jnp.bfloat16)

        # TODO(synk): exact normalizer of equi_geometric_attention unknown; use
        #             1/sqrt(8*C) (number of invariant components per head).
        self.scale = 1.0 / math.sqrt(8.0 * C)

    # ----- attention core -----
    def _attention(self, q, k, v):
        return equi_attention(q, k, v, self.wq_lanes, self.wk_lanes,
                              self.ptm_lanes, self.scale, self.use_daa)

    # ----- GeneratorSelfAttention.forward -----
    def attn_self(self, h_bm):
        C, H = self.config.gnrt_dim_hidden, self.config.gnrt_num_attn_heads
        B, T = h_bm.shape[:2]
        res = h_bm
        h = equi_rmsnorm(h_bm, self.ln_self_lanes, self.ipm_lanes)
        qkv = equi_linear(h, self.w_attn_self, self.b_attn_self)          # (B,T,K,3HC)
        # TODO(synk): the head-split transposes below could be folded into the
        #             attention BlockSpecs once sub-128-lane blocks are viable.
        qkv = (qkv.reshape(B, T, K, 3, H, C)
                  .transpose(3, 0, 4, 1, 2, 5)                            # (3,B,H,T,K,C)
                  .reshape(3, B * H, T, K * C))
        a = self._attention(qkv[0], qkv[1], qkv[2])                       # (BH,T,K*C)
        a = (a.reshape(B, H, T, K, C).transpose(0, 2, 3, 1, 4)
              .reshape(B, T, K, H * C))
        return equi_linear(a, self.w_next_self, self.b_next_self, residual=res)

    # ----- GeneratorCrossAttention.forward -----
    def attn_cross(self, h_bm, vision_embedding):
        C, H = self.config.gnrt_dim_hidden, self.config.gnrt_num_attn_heads
        B, T = h_bm.shape[:2]
        res = h_bm
        h = equi_rmsnorm(h_bm, self.ln_cross_lanes, self.ipm_lanes)
        # NOTE: faithful to reference quirk: vision_embedding = layer_norm(hidden)
        # (the already-normalized hidden); the supplied vision_embedding is unused.
        ve = equi_rmsnorm(h, self.ln_cross_lanes, self.ipm_lanes)
        q = equi_linear(h, self.w_attn_gnrt, self.b_attn_gnrt)            # (B,T,K,HC)
        q = (q.reshape(B, T, K, H, C).transpose(0, 3, 1, 2, 4)
              .reshape(B * H, T, K * C))
        kv = equi_linear(ve, self.w_attn_adpt, self.b_attn_adpt)          # (B,T,K,2HC)
        kv = (kv.reshape(B, T, K, 2, H, C).transpose(3, 0, 4, 1, 2, 5)
                .reshape(2, B * H, T, K * C))
        a = self._attention(q, kv[0], kv[1])
        a = (a.reshape(B, H, T, K, C).transpose(0, 2, 3, 1, 4)
              .reshape(B, T, K, H * C))
        return equi_linear(a, self.w_next_cross, self.b_next_cross, residual=res)

    # ----- GeneratorMLP.forward (incl. GeneratorBilinear) -----
    def mlp(self, h_bm, reference=None):
        Di = self.config.gnrt_dim_intermediate
        B = h_bm.shape[0]
        res = h_bm
        if reference is None:
            # mean over tokens and channels of the e0123 (pseudoscalar) component
            ref_ps = jnp.mean(h_bm[:, :, 15, :], axis=(1, 2))             # (B,)
        else:
            # reference supplied in PyTorch layout (B, 1, 1-or-C, K)
            ref_ps = jnp.mean(reference[..., 15].reshape(B, -1), axis=1)  # (B,)
        h = equi_rmsnorm(h_bm, self.ln_mlp_lanes, self.ipm_lanes)
        pb = equi_linear(h, self.w_bili, self.b_bili)                     # (B,T,K,2Di)
        si = Di // 2
        lg, rg = pb[..., 0:si], pb[..., si:2 * si]
        lj, rj = pb[..., 2 * si:3 * si], pb[..., 3 * si:4 * si]
        gp = bilinear_product(lg, rg, self.gp_kron)
        # equi_join: join scaled by the e0123 component of the reference
        lj = lj * ref_ps.reshape(B, 1, 1, 1)
        ej = bilinear_product(lj, rj, self.join_kron)
        bl = jnp.concatenate([gp, ej], axis=-1)                           # (B,T,K,Di)
        bl = equi_linear(bl, self.w_bili_next, self.b_bili_next)          # (B,T,K,C)
        g = gated_gelu(bl)
        return equi_linear(g, self.w_mlp_next, self.b_mlp_next, residual=res)

    # ----- GeneratorBlock.forward -----
    def __call__(self, hidden, vision_embedding, reference=None):
        # PyTorch (B,T,C,K) -> internal blade-major (B,T,K,C) and back.
        h = jnp.swapaxes(hidden, -1, -2)
        h = self.attn_cross(self.attn_self(h), vision_embedding)
        h = self.mlp(h, reference)
        return jnp.swapaxes(h, -1, -2)


# ----------------------------------------------------------------------------- #
if __name__ == "__main__":
    cfg = ModelConfig(gnrt_num_points=8, gnrt_dim_hidden=16,
                      gnrt_dim_intermediate=16, gnrt_num_attn_heads=2)
    key = jax.random.PRNGKey(0)
    kp, kh, kv = jax.random.split(key, 3)
    block = GeneratorBlockPallas(cfg, idx=0, key=kp)

    B, T, C = 2, 8, cfg.gnrt_dim_hidden
    hidden = jax.random.normal(kh, (B, T, C, K), jnp.float32)
    vision_embedding = jax.random.normal(kv, (B, T, C, K), jnp.float32)

    fwd = jax.jit(lambda h, v: block(h, v, None))
    out = fwd(hidden, vision_embedding)
    out = jax.block_until_ready(out)

    assert out.shape == (B, T, C, K), out.shape
    assert bool(jnp.all(jnp.isfinite(out)))
    print("KERNEL_OK")
</pallas_src>

<mosaic_0001>
module attributes {stable_mosaic.version = 11 : i64} {
  func.func @_rmsnorm_kernel(%arg0: i32, %arg1: memref<8x256xf32, #tpu.memory_space<vmem>>, %arg2: memref<1x256xf32, #tpu.memory_space<vmem>>, %arg3: memref<1x256xf32, #tpu.memory_space<vmem>>, %arg4: memref<8x256xf32, #tpu.memory_space<vmem>>) attributes {dimension_semantics = [#tpu.dimension_semantics<parallel>], iteration_bounds = array<i64: 2>, scalar_prefetch = 0 : i64, scratch_operands = 0 : i64, tpu.core_type = #tpu.core_type<tc>, window_params = [{transform_indices = @transform_0, window_bounds = array<i64: 8, 256>}, {pipeline_mode = #tpu.pipeline_mode<synchronous>, transform_indices = @transform_1, window_bounds = array<i64: 1, 256>}, {pipeline_mode = #tpu.pipeline_mode<synchronous>, transform_indices = @transform_2, window_bounds = array<i64: 1, 256>}, {transform_indices = @transform_3, window_bounds = array<i64: 8, 256>}]} {
    %c0 = arith.constant 0 : index
    %c0_0 = arith.constant 0 : index
    %0 = vector.load %arg1[%c0, %c0_0] : memref<8x256xf32, #tpu.memory_space<vmem>>, vector<8x256xf32>
    %c0_1 = arith.constant 0 : index
    %c0_2 = arith.constant 0 : index
    %1 = vector.load %arg3[%c0_1, %c0_2] : memref<1x256xf32, #tpu.memory_space<vmem>>, vector<1x256xf32>
    %2 = vector.broadcast %1 : vector<1x256xf32> to vector<8x256xf32>
    %3 = arith.mulf %0, %2 : vector<8x256xf32>
    %4 = arith.mulf %3, %3 : vector<8x256xf32>
    %cst = arith.constant dense<0.000000e+00> : vector<8xf32>
    %5 = vector.multi_reduction <add>, %4, %cst [1] : vector<8x256xf32> to vector<8xf32>
    %6 = vector.shape_cast %5 : vector<8xf32> to vector<8x1xf32>
    %cst_3 = arith.constant 6.250000e-02 : f32
    %7 = vector.broadcast %cst_3 : f32 to vector<8x1xf32>
    %8 = arith.mulf %6, %7 : vector<8x1xf32>
    %cst_4 = arith.constant 9.99999997E-7 : f32
    %9 = vector.broadcast %cst_4 : f32 to vector<8x1xf32>
    %10 = arith.addf %8, %9 : vector<8x1xf32>
    %11 = math.rsqrt %10 : vector<8x1xf32>
    %12 = vector.broadcast %11 : vector<8x1xf32> to vector<8x256xf32>
    %13 = arith.mulf %0, %12 : vector<8x256xf32>
    %c0_5 = arith.constant 0 : index
    %c0_6 = arith.constant 0 : index
    %14 = vector.load %arg2[%c0_5, %c0_6] : memref<1x256xf32, #tpu.memory_space<vmem>>, vector<1x256xf32>
    %15 = vector.broadcast %14 : vector<1x256xf32> to vector<8x256xf32>
    %16 = arith.mulf %13, %15 : vector<8x256xf32>
    %c0_7 = arith.constant 0 : index
    %c0_8 = arith.constant 0 : index
    %17 = vector.load %arg4[%c0_7, %c0_8] : memref<8x256xf32, #tpu.memory_space<vmem>>, vector<8x256xf32>
    tpu.vector_store %arg4[%c0_7, %c0_8], %16 {strides = array<i32>} : memref<8x256xf32, #tpu.memory_space<vmem>>, vector<8x256xf32>,
    return
  }
  func.func @transform_0(%arg0: i32) -> (i32, i32) {
    %c0_i32 = arith.constant 0 : i32
    %c0_i32_0 = arith.constant 0 : i32
    return %arg0, %c0_i32 : i32, i32
  }
  func.func @transform_1(%arg0: i32) -> (i32, i32) {
    %c0_i32 = arith.constant 0 : i32
    %c0_i32_0 = arith.constant 0 : i32
    %c0_i32_1 = arith.constant 0 : i32
    return %c0_i32, %c0_i32_0 : i32, i32
  }
  func.func @transform_2(%arg0: i32) -> (i32, i32) {
    %c0_i32 = arith.constant 0 : i32
    %c0_i32_0 = arith.constant 0 : i32
    %c0_i32_1 = arith.constant 0 : i32
    return %c0_i32, %c0_i32_0 : i32, i32
  }
  func.func @transform_3(%arg0: i32) -> (i32, i32) {
    %c0_i32 = arith.constant 0 : i32
    %c0_i32_0 = arith.constant 0 : i32
    return %arg0, %c0_i32 : i32, i32
  }
}

module attributes {stable_mosaic.version = 11 : i64} {
  func.func @_equi_linear_kernel(%arg0: i32, %arg1: memref<128x16xf32, #tpu.memory_space<vmem>>, %arg2: memref<16x96xbf16, #tpu.memory_space<vmem>>, %arg3: memref<1x96xf32, #tpu.memory_space<vmem>>, %arg4: memref<128x96xf32, #tpu.memory_space<vmem>>) attributes {dimension_semantics = [#tpu.dimension_semantics<parallel>], iteration_bounds = array<i64: 2>, scalar_prefetch = 0 : i64, scratch_operands = 0 : i64, tpu.core_type = #tpu.core_type<tc>, window_params = [{transform_indices = @transform_0, window_bounds = array<i64: 128, 16>}, {pipeline_mode = #tpu.pipeline_mode<synchronous>, transform_indices = @transform_1, window_bounds = array<i64: 16, 96>}, {pipeline_mode = #tpu.pipeline_mode<synchronous>, transform_indices = @transform_2, window_bounds = array<i64: 1, 96>}, {transform_indices = @transform_3, window_bounds = array<i64: 128, 96>}]} {
    %c0 = arith.constant 0 : index
    %c0_0 = arith.constant 0 : index
    %0 = vector.load %arg1[%c0, %c0_0] : memref<128x16xf32, #tpu.memory_space<vmem>>, vector<128x16xf32>
    %1 = arith.truncf %0 : vector<128x16xf32> to vector<128x16xbf16>
    %c0_1 = arith.constant 0 : index
    %c0_2 = arith.constant 0 : index
    %2 = vector.load %arg2[%c0_1, %c0_2] : memref<16x96xbf16, #tpu.memory_space<vmem>>, vector<16x96xbf16>
    %cst = arith.constant dense<0.000000e+00> : vector<128x96xf32>
    %3 = tpu.matmul %1, %2, %cst {dimension_numbers = #tpu.dot_dimension_numbers<[1], [0], [0], [1], [0, 0, 1, 1], [], []>} : vector<128x16xbf16>, vector<16x96xbf16>, vector<128x96xf32> -> vector<128x96xf32>
    %4 = tpu.iota {dimensions = array<i32: 0>} : vector<128x1xi32>
    %c16_i32 = arith.constant 16 : i32
    %c0_i32 = arith.constant 0 : i32
    %5 = arith.cmpi eq, %c16_i32, %c0_i32 : i32
    %c1_i32 = arith.constant 1 : i32
    %6 = arith.select %5, %c1_i32, %c16_i32 : i32
    %7 = vector.broadcast %6 : i32 to vector<128x1xi32>
    %8 = arith.remsi %4, %7 : vector<128x1xi32>
    %c0_i32_3 = arith.constant 0 : i32
    %9 = vector.broadcast %c0_i32_3 : i32 to vector<128x1xi32>
    %10 = arith.cmpi ne, %8, %9 : vector<128x1xi32>
    %c0_i32_4 = arith.constant 0 : i32
    %11 = vector.broadcast %c0_i32_4 : i32 to vector<128x1xi32>
    %12 = arith.cmpi slt, %8, %11 : vector<128x1xi32>
    %c0_i32_5 = arith.constant 0 : i32
    %13 = arith.cmpi slt, %6, %c0_i32_5 : i32
    %14 = vector.broadcast %13 : i1 to vector<128x1xi1>
    %15 = vector.broadcast %14 : vector<128x1xi1> to vector<128x1xi1>
    %16 = arith.xori %12, %15 : vector<128x1xi1>
    %17 = arith.andi %16, %10 : vector<128x1xi1>
    %18 = vector.broadcast %6 : i32 to vector<128x1xi32>
    %19 = arith.addi %8, %18 : vector<128x1xi32>
    %20 = arith.select %17, %19, %8 : vector<128x1xi1>, vector<128x1xi32>
    %c0_i32_6 = arith.constant 0 : i32
    %21 = vector.broadcast %c0_i32_6 : i32 to vector<128x1xi32>
    %22 = arith.cmpi eq, %20, %21 : vector<128x1xi32>
    %cst_7 = arith.constant 1.000000e+00 : f32
    %cst_8 = arith.constant 0.000000e+00 : f32
    %23 = vector.broadcast %cst_7 : f32 to vector<128x1xf32>
    %24 = vector.broadcast %cst_8 : f32 to vector<128x1xf32>
    %25 = arith.select %22, %23, %24 : vector<128x1xi1>, vector<128x1xf32>
    %c0_9 = arith.constant 0 : index
    %c0_10 = arith.constant 0 : index
    %26 = vector.load %arg3[%c0_9, %c0_10] : memref<1x96xf32, #tpu.memory_space<vmem>>, vector<1x96xf32>
    %27 = vector.broadcast %25 : vector<128x1xf32> to vector<128x96xf32>
    %28 = vector.broadcast %26 : vector<1x96xf32> to vector<128x96xf32>
    %29 = arith.mulf %27, %28 : vector<128x96xf32>
    %30 = arith.addf %3, %29 : vector<128x96xf32>
    %c0_11 = arith.constant 0 : index
    %c0_12 = arith.constant 0 : index
    %31 = vector.load %arg4[%c0_11, %c0_12] : memref<128x96xf32, #tpu.memory_space<vmem>>, vector<128x96xf32>
    tpu.vector_store %arg4[%c0_11, %c0_12], %30 {strides = array<i32>} : memref<128x96xf32, #tpu.memory_space<vmem>>, vector<128x96xf32>,
    return
  }
  func.func @transform_0(%arg0: i32) -> (i32, i32) {
    %c0_i32 = arith.constant 0 : i32
    %c0_i32_0 = arith.constant 0 : i32
    return %arg0, %c0_i32 : i32, i32
  }
  func.func @transform_1(%arg0: i32) -> (i32, i32) {
    %c0_i32 = arith.constant 0 : i32
    %c0_i32_0 = arith.constant 0 : i32
    %c0_i32_1 = arith.constant 0 : i32
    return %c0_i32, %c0_i32_0 : i32, i32
  }
  func.func @transform_2(%arg0: i32) -> (i32, i32) {
    %c0_i32 = arith.constant 0 : i32
    %c0_i32_0 = arith.constant 0 : i32
    %c0_i32_1 = arith.constant 0 : i32
    return %c0_i32, %c0_i32_0 : i32, i32
  }
  func.func @transform_3(%arg0: i32) -> (i32, i32) {
    %c0_i32 = arith.constant 0 : i32
    %c0_i32_0 = arith.constant 0 : i32
    return %arg0, %c0_i32 : i32, i32
  }
}

module attributes {stable_mosaic.version = 11 : i64} {
  func.func @_attn_kernel(%arg0: i32, %arg1: i32, %arg2: memref<1x8x256xf32, #tpu.memory_space<vmem>>, %arg3: memref<1x8x256xf32, #tpu.memory_space<vmem>>, %arg4: memref<1x8x256xf32, #tpu.memory_space<vmem>>, %arg5: memref<1x256xf32, #tpu.memory_space<vmem>>, %arg6: memref<1x256xf32, #tpu.memory_space<vmem>>, %arg7: memref<1x256xf32, #tpu.memory_space<vmem>>, %arg8: memref<1x8x256xf32, #tpu.memory_space<vmem>>) attributes {dimension_semantics = [#tpu.dimension_semantics<parallel>, #tpu.dimension_semantics<parallel>], iteration_bounds = array<i64: 4, 1>, scalar_prefetch = 0 : i64, scratch_operands = 0 : i64, tpu.core_type = #tpu.core_type<tc>, window_params = [{transform_indices = @transform_0, window_bounds = array<i64: 1, 8, 256>}, {transform_indices = @transform_1, window_bounds = array<i64: 1, 8, 256>}, {transform_indices = @transform_2, window_bounds = array<i64: 1, 8, 256>}, {pipeline_mode = #tpu.pipeline_mode<synchronous>, transform_indices = @transform_3, window_bounds = array<i64: 1, 256>}, {pipeline_mode = #tpu.pipeline_mode<synchronous>, transform_indices = @transform_4, window_bounds = array<i64: 1, 256>}, {pipeline_mode = #tpu.pipeline_mode<synchronous>, transform_indices = @transform_5, window_bounds = array<i64: 1, 256>}, {transform_indices = @transform_6, window_bounds = array<i64: 1, 8, 256>}]} {
    %c0 = arith.constant 0 : index
    %c0_0 = arith.constant 0 : index
    %c0_1 = arith.constant 0 : index
    %0 = vector.load %arg2[%c0, %c0_0, %c0_1] : memref<1x8x256xf32, #tpu.memory_space<vmem>>, vector<1x8x256xf32>
    %1 = vector.shape_cast %0 : vector<1x8x256xf32> to vector<8x256xf32>
    %c0_2 = arith.constant 0 : index
    %c0_3 = arith.constant 0 : index
    %c0_4 = arith.constant 0 : index
    %2 = vector.load %arg3[%c0_2, %c0_3, %c0_4] : memref<1x8x256xf32, #tpu.memory_space<vmem>>, vector<1x8x256xf32>
    %3 = vector.shape_cast %2 : vector<1x8x256xf32> to vector<8x256xf32>
    %c0_5 = arith.constant 0 : index
    %c0_6 = arith.constant 0 : index
    %c0_7 = arith.constant 0 : index
    %4 = vector.load %arg4[%c0_5, %c0_6, %c0_7] : memref<1x8x256xf32, #tpu.memory_space<vmem>>, vector<1x8x256xf32>
    %5 = vector.shape_cast %4 : vector<1x8x256xf32> to vector<8x256xf32>
    %c0_8 = arith.constant 0 : index
    %c0_9 = arith.constant 0 : index
    %6 = vector.load %arg5[%c0_8, %c0_9] : memref<1x256xf32, #tpu.memory_space<vmem>>, vector<1x256xf32>
    %7 = vector.broadcast %6 : vector<1x256xf32> to vector<8x256xf32>
    %8 = arith.mulf %1, %7 : vector<8x256xf32>
    %9 = arith.truncf %8 : vector<8x256xf32> to vector<8x256xbf16>
    %c0_10 = arith.constant 0 : index
    %c0_11 = arith.constant 0 : index
    %10 = vector.load %arg6[%c0_10, %c0_11] : memref<1x256xf32, #tpu.memory_space<vmem>>, vector<1x256xf32>
    %11 = vector.broadcast %10 : vector<1x256xf32> to vector<8x256xf32>
    %12 = arith.mulf %3, %11 : vector<8x256xf32>
    %13 = arith.truncf %12 : vector<8x256xf32> to vector<8x256xbf16>
    %cst = arith.constant dense<0.000000e+00> : vector<8x8xf32>
    %14 = tpu.matmul %9, %13, %cst {dimension_numbers = #tpu.dot_dimension_numbers<[1], [1], [0], [0], [0, 0, 1, 0], [], []>} : vector<8x256xbf16>, vector<8x256xbf16>, vector<8x8xf32> -> vector<8x8xf32>
    %c0_12 = arith.constant 0 : index
    %c0_13 = arith.constant 0 : index
    %15 = vector.load %arg7[%c0_12, %c0_13] : memref<1x256xf32, #tpu.memory_space<vmem>>, vector<1x256xf32>
    %16 = vector.broadcast %15 : vector<1x256xf32> to vector<8x256xf32>
    %17 = arith.mulf %1, %16 : vector<8x256xf32>
    %18 = vector.broadcast %15 : vector<1x256xf32> to vector<8x256xf32>
    %19 = arith.mulf %3, %18 : vector<8x256xf32>
    %20 = arith.mulf %17, %17 : vector<8x256xf32>
    %cst_14 = arith.constant dense<0.000000e+00> : vector<8xf32>
    %21 = vector.multi_reduction <add>, %20, %cst_14 [1] : vector<8x256xf32> to vector<8xf32>
    %22 = vector.shape_cast %21 : vector<8xf32> to vector<8x1xf32>
    %23 = arith.mulf %19, %19 : vector<8x256xf32>
    %cst_15 = arith.constant dense<0.000000e+00> : vector<8xf32>
    %24 = vector.multi_reduction <add>, %23, %cst_15 [1] : vector<8x256xf32> to vector<8xf32>
    %25 = vector.shape_cast %24 : vector<8xf32> to vector<8x1xf32>
    %26 = vector.broadcast %22 : vector<8x1xf32> to vector<8x8xf32>
    %27 = arith.subf %14, %26 : vector<8x8xf32>
    %28 = tpu.transpose %25, [1, 0] : vector<8x1xf32> -> vector<1x8xf32>
    %29 = vector.broadcast %28 : vector<1x8xf32> to vector<8x8xf32>
    %30 = arith.subf %27, %29 : vector<8x8xf32>
    %cst_16 = arith.constant 0.0883883461 : f32
    %31 = vector.broadcast %cst_16 : f32 to vector<8x8xf32>
    %32 = arith.mulf %30, %31 : vector<8x8xf32>
    %cst_17 = arith.constant dense<0xFF800000> : vector<8xf32>
    %33 = vector.multi_reduction <maximumf>, %32, %cst_17 [1] : vector<8x8xf32> to vector<8xf32>
    %34 = vector.shape_cast %33 : vector<8xf32> to vector<8x1xf32>
    %35 = vector.broadcast %34 : vector<8x1xf32> to vector<8x8xf32>
    %36 = arith.subf %32, %35 : vector<8x8xf32>
    %37 = math.exp %36 : vector<8x8xf32>
    %cst_18 = arith.constant dense<0.000000e+00> : vector<8xf32>
    %38 = vector.multi_reduction <add>, %37, %cst_18 [1] : vector<8x8xf32> to vector<8xf32>
    %39 = vector.shape_cast %38 : vector<8xf32> to vector<8x1xf32>
    %40 = tpu.reciprocal %39 {approx = true} : vector<8x1xf32> -> vector<8x1xf32>
    %41 = vector.broadcast %40 : vector<8x1xf32> to vector<8x8xf32>
    %42 = arith.mulf %37, %41 : vector<8x8xf32>
    %43 = arith.truncf %42 : vector<8x8xf32> to vector<8x8xbf16>
    %44 = arith.truncf %5 : vector<8x256xf32> to vector<8x256xbf16>
    %cst_19 = arith.constant dense<0.000000e+00> : vector<8x256xf32>
    %45 = tpu.matmul %43, %44, %cst_19 {dimension_numbers = #tpu.dot_dimension_numbers<[1], [0], [0], [1], [0, 0, 1, 1], [], []>} : vector<8x8xbf16>, vector<8x256xbf16>, vector<8x256xf32> -> vector<8x256xf32>
    %c0_20 = arith.constant 0 : index
    %c0_21 = arith.constant 0 : index
    %c0_22 = arith.constant 0 : index
    %46 = vector.load %arg8[%c0_20, %c0_21, %c0_22] : memref<1x8x256xf32, #tpu.memory_space<vmem>>, vector<1x8x256xf32>
    %47 = vector.shape_cast %46 : vector<1x8x256xf32> to vector<8x256xf32>
    %48 = vector.shape_cast %45 : vector<8x256xf32> to vector<1x8x256xf32>
    tpu.vector_store %arg8[%c0_20, %c0_21, %c0_22], %48 {strides = array<i32>} : memref<1x8x256xf32, #tpu.memory_space<vmem>>, vector<1x8x256xf32>,
    return
  }
  func.func @transform_0(%arg0: i32, %arg1: i32) -> (i32, i32, i32) {
    %c0_i32 = arith.constant 0 : i32
    %c0_i32_0 = arith.constant 0 : i32
    return %arg0, %arg1, %c0_i32 : i32, i32, i32
  }
  func.func @transform_1(%arg0: i32, %arg1: i32) -> (i32, i32, i32) {
    %c0_i32 = arith.constant 0 : i32
    %c0_i32_0 = arith.constant 0 : i32
    %c0_i32_1 = arith.constant 0 : i32
    return %arg0, %c0_i32, %c0_i32_0 : i32, i32, i32
  }
  func.func @transform_2(%arg0: i32, %arg1: i32) -> (i32, i32, i32) {
    %c0_i32 = arith.constant 0 : i32
    %c0_i32_0 = arith.constant 0 : i32
    %c0_i32_1 = arith.constant 0 : i32
    return %arg0, %c0_i32, %c0_i32_0 : i32, i32, i32
  }
  func.func @transform_3(%arg0: i32, %arg1: i32) -> (i32, i32) {
    %c0_i32 = arith.constant 0 : i32
    %c0_i32_0 = arith.constant 0 : i32
    %c0_i32_1 = arith.constant 0 : i32
    return %c0_i32, %c0_i32_0 : i32, i32
  }
  func.func @transform_4(%arg0: i32, %arg1: i32) -> (i32, i32) {
    %c0_i32 = arith.constant 0 : i32
    %c0_i32_0 = arith.constant 0 : i32
    %c0_i32_1 = arith.constant 0 : i32
    return %c0_i32, %c0_i32_0 : i32, i32
  }
  func.func @transform_5(%arg0: i32, %arg1: i32) -> (i32, i32) {
    %c0_i32 = arith.constant 0 : i32
    %c0_i32_0 = arith.constant 0 : i32
    %c0_i32_1 = arith.constant 0 : i32
    return %c0_i32, %c0_i32_0 : i32, i32
  }
  func.func @transform_6(%arg0: i32, %arg1: i32) -> (i32, i32, i32) {
    %c0_i32 = arith.constant 0 : i32
    %c0_i32_0 = arith.constant 0 : i32
    return %arg0, %arg1, %c0_i32 : i32, i32, i32
  }
}

module attributes {stable_mosaic.version = 11 : i64} {
  func.func @_equi_linear_res_kernel(%arg0: i32, %arg1: memref<128x32xf32, #tpu.memory_space<vmem>>, %arg2: memref<32x16xbf16, #tpu.memory_space<vmem>>, %arg3: memref<1x16xf32, #tpu.memory_space<vmem>>, %arg4: memref<128x16xf32, #tpu.memory_space<vmem>>, %arg5: memref<128x16xf32, #tpu.memory_space<vmem>>) attributes {dimension_semantics = [#tpu.dimension_semantics<parallel>], iteration_bounds = array<i64: 2>, scalar_prefetch = 0 : i64, scratch_operands = 0 : i64, tpu.core_type = #tpu.core_type<tc>, window_params = [{transform_indices = @transform_0, window_bounds = array<i64: 128, 32>}, {pipeline_mode = #tpu.pipeline_mode<synchronous>, transform_indices = @transform_1, window_bounds = array<i64: 32, 16>}, {pipeline_mode = #tpu.pipeline_mode<synchronous>, transform_indices = @transform_2, window_bounds = array<i64: 1, 16>}, {transform_indices = @transform_3, window_bounds = array<i64: 128, 16>}, {transform_indices = @transform_4, window_bounds = array<i64: 128, 16>}]} {
    %c0 = arith.constant 0 : index
    %c0_0 = arith.constant 0 : index
    %0 = vector.load %arg1[%c0, %c0_0] : memref<128x32xf32, #tpu.memory_space<vmem>>, vector<128x32xf32>
    %1 = arith.truncf %0 : vector<128x32xf32> to vector<128x32xbf16>
    %c0_1 = arith.constant 0 : index
    %c0_2 = arith.constant 0 : index
    %2 = vector.load %arg2[%c0_1, %c0_2] : memref<32x16xbf16, #tpu.memory_space<vmem>>, vector<32x16xbf16>
    %cst = arith.constant dense<0.000000e+00> : vector<128x16xf32>
    %3 = tpu.matmul %1, %2, %cst {dimension_numbers = #tpu.dot_dimension_numbers<[1], [0], [0], [1], [0, 0, 1, 1], [], []>} : vector<128x32xbf16>, vector<32x16xbf16>, vector<128x16xf32> -> vector<128x16xf32>
    %4 = tpu.iota {dimensions = array<i32: 0>} : vector<128x1xi32>
    %c16_i32 = arith.constant 16 : i32
    %c0_i32 = arith.constant 0 : i32
    %5 = arith.cmpi eq, %c16_i32, %c0_i32 : i32
    %c1_i32 = arith.constant 1 : i32
    %6 = arith.select %5, %c1_i32, %c16_i32 : i32
    %7 = vector.broadcast %6 : i32 to vector<128x1xi32>
    %8 = arith.remsi %4, %7 : vector<128x1xi32>
    %c0_i32_3 = arith.constant 0 : i32
    %9 = vector.broadcast %c0_i32_3 : i32 to vector<128x1xi32>
    %10 = arith.cmpi ne, %8, %9 : vector<128x1xi32>
    %c0_i32_4 = arith.constant 0 : i32
    %11 = vector.broadcast %c0_i32_4 : i32 to vector<128x1xi32>
    %12 = arith.cmpi slt, %8, %11 : vector<128x1xi32>
    %c0_i32_5 = arith.constant 0 : i32
    %13 = arith.cmpi slt, %6, %c0_i32_5 : i32
    %14 = vector.broadcast %13 : i1 to vector<128x1xi1>
    %15 = vector.broadcast %14 : vector<128x1xi1> to vector<128x1xi1>
    %16 = arith.xori %12, %15 : vector<128x1xi1>
    %17 = arith.andi %16, %10 : vector<128x1xi1>
    %18 = vector.broadcast %6 : i32 to vector<128x1xi32>
    %19 = arith.addi %8, %18 : vector<128x1xi32>
    %20 = arith.select %17, %19, %8 : vector<128x1xi1>, vector<128x1xi32>
    %c0_i32_6 = arith.constant 0 : i32
    %21 = vector.broadcast %c0_i32_6 : i32 to vector<128x1xi32>
    %22 = arith.cmpi eq, %20, %21 : vector<128x1xi32>
    %cst_7 = arith.constant 1.000000e+00 : f32
    %cst_8 = arith.constant 0.000000e+00 : f32
    %23 = vector.broadcast %cst_7 : f32 to vector<128x1xf32>
    %24 = vector.broadcast %cst_8 : f32 to vector<128x1xf32>
    %25 = arith.select %22, %23, %24 : vector<128x1xi1>, vector<128x1xf32>
    %c0_9 = arith.constant 0 : index
    %c0_10 = arith.constant 0 : index
    %26 = vector.load %arg3[%c0_9, %c0_10] : memref<1x16xf32, #tpu.memory_space<vmem>>, vector<1x16xf32>
    %27 = vector.broadcast %25 : vector<128x1xf32> to vector<128x16xf32>
    %28 = vector.broadcast %26 : vector<1x16xf32> to vector<128x16xf32>
    %29 = arith.mulf %27, %28 : vector<128x16xf32>
    %30 = arith.addf %3, %29 : vector<128x16xf32>
    %c0_11 = arith.constant 0 : index
    %c0_12 = arith.constant 0 : index
    %31 = vector.load %arg4[%c0_11, %c0_12] : memref<128x16xf32, #tpu.memory_space<vmem>>, vector<128x16xf32>
    %32 = arith.addf %30, %31 : vector<128x16xf32>
    %c0_13 = arith.constant 0 : index
    %c0_14 = arith.constant 0 : index
    %33 = vector.load %arg5[%c0_13, %c0_14] : memref<128x16xf32, #tpu.memory_space<vmem>>, vector<128x16xf32>
    tpu.vector_store %arg5[%c0_13, %c0_14], %32 {strides = array<i32>} : memref<128x16xf32, #tpu.memory_space<vmem>>, vector<128x16xf32>,
    return
  }
  func.func @transform_0(%arg0: i32) -> (i32, i32) {
    %c0_i32 = arith.constant 0 : i32
    %c0_i32_0 = arith.constant 0 : i32
    return %arg0, %c0_i32 : i32, i32
  }
  func.func @transform_1(%arg0: i32) -> (i32, i32) {
    %c0_i32 = arith.constant 0 : i32
    %c0_i32_0 = arith.constant 0 : i32
    %c0_i32_1 = arith.constant 0 : i32
    return %c0_i32, %c0_i32_0 : i32, i32
  }
  func.func @transform_2(%arg0: i32) -> (i32, i32) {
    %c0_i32 = arith.constant 0 : i32
    %c0_i32_0 = arith.constant 0 : i32
    %c0_i32_1 = arith.constant 0 : i32
    return %c0_i32, %c0_i32_0 : i32, i32
  }
  func.func @transform_3(%arg0: i32) -> (i32, i32) {
    %c0_i32 = arith.constant 0 : i32
    %c0_i32_0 = arith.constant 0 : i32
    return %arg0, %c0_i32 : i32, i32
  }
  func.func @transform_4(%arg0: i32) -> (i32, i32) {
    %c0_i32 = arith.constant 0 : i32
    %c0_i32_0 = arith.constant 0 : i32
    return %arg0, %c0_i32 : i32, i32
  }
}

module attributes {stable_mosaic.version = 11 : i64} {
  func.func @_equi_linear_kernel(%arg0: i32, %arg1: memref<128x16xf32, #tpu.memory_space<vmem>>, %arg2: memref<16x32xbf16, #tpu.memory_space<vmem>>, %arg3: memref<1x32xf32, #tpu.memory_space<vmem>>, %arg4: memref<128x32xf32, #tpu.memory_space<vmem>>) attributes {dimension_semantics = [#tpu.dimension_semantics<parallel>], iteration_bounds = array<i64: 2>, scalar_prefetch = 0 : i64, scratch_operands = 0 : i64, tpu.core_type = #tpu.core_type<tc>, window_params = [{transform_indices = @transform_0, window_bounds = array<i64: 128, 16>}, {pipeline_mode = #tpu.pipeline_mode<synchronous>, transform_indices = @transform_1, window_bounds = array<i64: 16, 32>}, {pipeline_mode = #tpu.pipeline_mode<synchronous>, transform_indices = @transform_2, window_bounds = array<i64: 1, 32>}, {transform_indices = @transform_3, window_bounds = array<i64: 128, 32>}]} {
    %c0 = arith.constant 0 : index
    %c0_0 = arith.constant 0 : index
    %0 = vector.load %arg1[%c0, %c0_0] : memref<128x16xf32, #tpu.memory_space<vmem>>, vector<128x16xf32>
    %1 = arith.truncf %0 : vector<128x16xf32> to vector<128x16xbf16>
    %c0_1 = arith.constant 0 : index
    %c0_2 = arith.constant 0 : index
    %2 = vector.load %arg2[%c0_1, %c0_2] : memref<16x32xbf16, #tpu.memory_space<vmem>>, vector<16x32xbf16>
    %cst = arith.constant dense<0.000000e+00> : vector<128x32xf32>
    %3 = tpu.matmul %1, %2, %cst {dimension_numbers = #tpu.dot_dimension_numbers<[1], [0], [0], [1], [0, 0, 1, 1], [], []>} : vector<128x16xbf16>, vector<16x32xbf16>, vector<128x32xf32> -> vector<128x32xf32>
    %4 = tpu.iota {dimensions = array<i32: 0>} : vector<128x1xi32>
    %c16_i32 = arith.constant 16 : i32
    %c0_i32 = arith.constant 0 : i32
    %5 = arith.cmpi eq, %c16_i32, %c0_i32 : i32
    %c1_i32 = arith.constant 1 : i32
    %6 = arith.select %5, %c1_i32, %c16_i32 : i32
    %7 = vector.broadcast %6 : i32 to vector<128x1xi32>
    %8 = arith.remsi %4, %7 : vector<128x1xi32>
    %c0_i32_3 = arith.constant 0 : i32
    %9 = vector.broadcast %c0_i32_3 : i32 to vector<128x1xi32>
    %10 = arith.cmpi ne, %8, %9 : vector<128x1xi32>
    %c0_i32_4 = arith.constant 0 : i32
    %11 = vector.broadcast %c0_i32_4 : i32 to vector<128x1xi32>
    %12 = arith.cmpi slt, %8, %11 : vector<128x1xi32>
    %c0_i32_5 = arith.constant 0 : i32
    %13 = arith.cmpi slt, %6, %c0_i32_5 : i32
    %14 = vector.broadcast %13 : i1 to vector<128x1xi1>
    %15 = vector.broadcast %14 : vector<128x1xi1> to vector<128x1xi1>
    %16 = arith.xori %12, %15 : vector<128x1xi1>
    %17 = arith.andi %16, %10 : vector<128x1xi1>
    %18 = vector.broadcast %6 : i32 to vector<128x1xi32>
    %19 = arith.addi %8, %18 : vector<128x1xi32>
    %20 = arith.select %17, %19, %8 : vector<128x1xi1>, vector<128x1xi32>
    %c0_i32_6 = arith.constant 0 : i32
    %21 = vector.broadcast %c0_i32_6 : i32 to vector<128x1xi32>
    %22 = arith.cmpi eq, %20, %21 : vector<128x1xi32>
    %cst_7 = arith.constant 1.000000e+00 : f32
    %cst_8 = arith.constant 0.000000e+00 : f32
    %23 = vector.broadcast %cst_7 : f32 to vector<128x1xf32>
    %24 = vector.broadcast %cst_8 : f32 to vector<128x1xf32>
    %25 = arith.select %22, %23, %24 : vector<128x1xi1>, vector<128x1xf32>
    %c0_9 = arith.constant 0 : index
    %c0_10 = arith.constant 0 : index
    %26 = vector.load %arg3[%c0_9, %c0_10] : memref<1x32xf32, #tpu.memory_space<vmem>>, vector<1x32xf32>
    %27 = vector.broadcast %25 : vector<128x1xf32> to vector<128x32xf32>
    %28 = vector.broadcast %26 : vector<1x32xf32> to vector<128x32xf32>
    %29 = arith.mulf %27, %28 : vector<128x32xf32>
    %30 = arith.addf %3, %29 : vector<128x32xf32>
    %c0_11 = arith.constant 0 : index
    %c0_12 = arith.constant 0 : index
    %31 = vector.load %arg4[%c0_11, %c0_12] : memref<128x32xf32, #tpu.memory_space<vmem>>, vector<128x32xf32>
    tpu.vector_store %arg4[%c0_11, %c0_12], %30 {strides = array<i32>} : memref<128x32xf32, #tpu.memory_space<vmem>>, vector<128x32xf32>,
    return
  }
  func.func @transform_0(%arg0: i32) -> (i32, i32) {
    %c0_i32 = arith.constant 0 : i32
    %c0_i32_0 = arith.constant 0 : i32
    return %arg0, %c0_i32 : i32, i32
  }
  func.func @transform_1(%arg0: i32) -> (i32, i32) {
    %c0_i32 = arith.constant 0 : i32
    %c0_i32_0 = arith.constant 0 : i32
    %c0_i32_1 = arith.constant 0 : i32
    return %c0_i32, %c0_i32_0 : i32, i32
  }
  func.func @transform_2(%arg0: i32) -> (i32, i32) {
    %c0_i32 = arith.constant 0 : i32
    %c0_i32_0 = arith.constant 0 : i32
    %c0_i32_1 = arith.constant 0 : i32
    return %c0_i32, %c0_i32_0 : i32, i32
  }
  func.func @transform_3(%arg0: i32) -> (i32, i32) {
    %c0_i32 = arith.constant 0 : i32
    %c0_i32_0 = arith.constant 0 : i32
    return %arg0, %c0_i32 : i32, i32
  }
}

module attributes {stable_mosaic.version = 11 : i64} {
  func.func @_equi_linear_kernel(%arg0: i32, %arg1: memref<128x16xf32, #tpu.memory_space<vmem>>, %arg2: memref<16x64xbf16, #tpu.memory_space<vmem>>, %arg3: memref<1x64xf32, #tpu.memory_space<vmem>>, %arg4: memref<128x64xf32, #tpu.memory_space<vmem>>) attributes {dimension_semantics = [#tpu.dimension_semantics<parallel>], iteration_bounds = array<i64: 2>, scalar_prefetch = 0 : i64, scratch_operands = 0 : i64, tpu.core_type = #tpu.core_type<tc>, window_params = [{transform_indices = @transform_0, window_bounds = array<i64: 128, 16>}, {pipeline_mode = #tpu.pipeline_mode<synchronous>, transform_indices = @transform_1, window_bounds = array<i64: 16, 64>}, {pipeline_mode = #tpu.pipeline_mode<synchronous>, transform_indices = @transform_2, window_bounds = array<i64: 1, 64>}, {transform_indices = @transform_3, window_bounds = array<i64: 128, 64>}]} {
    %c0 = arith.constant 0 : index
    %c0_0 = arith.constant 0 : index
    %0 = vector.load %arg1[%c0, %c0_0] : memref<128x16xf32, #tpu.memory_space<vmem>>, vector<128x16xf32>
    %1 = arith.truncf %0 : vector<128x16xf32> to vector<128x16xbf16>
    %c0_1 = arith.constant 0 : index
    %c0_2 = arith.constant 0 : index
    %2 = vector.load %arg2[%c0_1, %c0_2] : memref<16x64xbf16, #tpu.memory_space<vmem>>, vector<16x64xbf16>
    %cst = arith.constant dense<0.000000e+00> : vector<128x64xf32>
    %3 = tpu.matmul %1, %2, %cst {dimension_numbers = #tpu.dot_dimension_numbers<[1], [0], [0], [1], [0, 0, 1, 1], [], []>} : vector<128x16xbf16>, vector<16x64xbf16>, vector<128x64xf32> -> vector<128x64xf32>
    %4 = tpu.iota {dimensions = array<i32: 0>} : vector<128x1xi32>
    %c16_i32 = arith.constant 16 : i32
    %c0_i32 = arith.constant 0 : i32
    %5 = arith.cmpi eq, %c16_i32, %c0_i32 : i32
    %c1_i32 = arith.constant 1 : i32
    %6 = arith.select %5, %c1_i32, %c16_i32 : i32
    %7 = vector.broadcast %6 : i32 to vector<128x1xi32>
    %8 = arith.remsi %4, %7 : vector<128x1xi32>
    %c0_i32_3 = arith.constant 0 : i32
    %9 = vector.broadcast %c0_i32_3 : i32 to vector<128x1xi32>
    %10 = arith.cmpi ne, %8, %9 : vector<128x1xi32>
    %c0_i32_4 = arith.constant 0 : i32
    %11 = vector.broadcast %c0_i32_4 : i32 to vector<128x1xi32>
    %12 = arith.cmpi slt, %8, %11 : vector<128x1xi32>
    %c0_i32_5 = arith.constant 0 : i32
    %13 = arith.cmpi slt, %6, %c0_i32_5 : i32
    %14 = vector.broadcast %13 : i1 to vector<128x1xi1>
    %15 = vector.broadcast %14 : vector<128x1xi1> to vector<128x1xi1>
    %16 = arith.xori %12, %15 : vector<128x1xi1>
    %17 = arith.andi %16, %10 : vector<128x1xi1>
    %18 = vector.broadcast %6 : i32 to vector<128x1xi32>
    %19 = arith.addi %8, %18 : vector<128x1xi32>
    %20 = arith.select %17, %19, %8 : vector<128x1xi1>, vector<128x1xi32>
    %c0_i32_6 = arith.constant 0 : i32
    %21 = vector.broadcast %c0_i32_6 : i32 to vector<128x1xi32>
    %22 = arith.cmpi eq, %20, %21 : vector<128x1xi32>
    %cst_7 = arith.constant 1.000000e+00 : f32
    %cst_8 = arith.constant 0.000000e+00 : f32
    %23 = vector.broadcast %cst_7 : f32 to vector<128x1xf32>
    %24 = vector.broadcast %cst_8 : f32 to vector<128x1xf32>
    %25 = arith.select %22, %23, %24 : vector<128x1xi1>, vector<128x1xf32>
    %c0_9 = arith.constant 0 : index
    %c0_10 = arith.constant 0 : index
    %26 = vector.load %arg3[%c0_9, %c0_10] : memref<1x64xf32, #tpu.memory_space<vmem>>, vector<1x64xf32>
    %27 = vector.broadcast %25 : vector<128x1xf32> to vector<128x64xf32>
    %28 = vector.broadcast %26 : vector<1x64xf32> to vector<128x64xf32>
    %29 = arith.mulf %27, %28 : vector<128x64xf32>
    %30 = arith.addf %3, %29 : vector<128x64xf32>
    %c0_11 = arith.constant 0 : index
    %c0_12 = arith.constant 0 : index
    %31 = vector.load %arg4[%c0_11, %c0_12] : memref<128x64xf32, #tpu.memory_space<vmem>>, vector<128x64xf32>
    tpu.vector_store %arg4[%c0_11, %c0_12], %30 {strides = array<i32>} : memref<128x64xf32, #tpu.memory_space<vmem>>, vector<128x64xf32>,
    return
  }
  func.func @transform_0(%arg0: i32) -> (i32, i32) {
    %c0_i32 = arith.constant 0 : i32
    %c0_i32_0 = arith.constant 0 : i32
    return %arg0, %c0_i32 : i32, i32
  }
  func.func @transform_1(%arg0: i32) -> (i32, i32) {
    %c0_i32 = arith.constant 0 : i32
    %c0_i32_0 = arith.constant 0 : i32
    %c0_i32_1 = arith.constant 0 : i32
    return %c0_i32, %c0_i32_0 : i32, i32
  }
  func.func @transform_2(%arg0: i32) -> (i32, i32) {
    %c0_i32 = arith.constant 0 : i32
    %c0_i32_0 = arith.constant 0 : i32
    %c0_i32_1 = arith.constant 0 : i32
    return %c0_i32, %c0_i32_0 : i32, i32
  }
  func.func @transform_3(%arg0: i32) -> (i32, i32) {
    %c0_i32 = arith.constant 0 : i32
    %c0_i32_0 = arith.constant 0 : i32
    return %arg0, %c0_i32 : i32, i32
  }
}

module attributes {stable_mosaic.version = 11 : i64} {
  func.func @_bilinear_kernel(%arg0: i32, %arg1: memref<8x128xf32, #tpu.memory_space<vmem>>, %arg2: memref<8x128xf32, #tpu.memory_space<vmem>>, %arg3: memref<16x128x128xbf16, #tpu.memory_space<vmem>>, %arg4: memref<8x128xf32, #tpu.memory_space<vmem>>) attributes {dimension_semantics = [#tpu.dimension_semantics<parallel>], iteration_bounds = array<i64: 2>, scalar_prefetch = 0 : i64, scratch_operands = 0 : i64, tpu.core_type = #tpu.core_type<tc>, window_params = [{transform_indices = @transform_0, window_bounds = array<i64: 8, 128>}, {transform_indices = @transform_1, window_bounds = array<i64: 8, 128>}, {pipeline_mode = #tpu.pipeline_mode<synchronous>, transform_indices = @transform_2, window_bounds = array<i64: 16, 128, 128>}, {transform_indices = @transform_3, window_bounds = array<i64: 8, 128>}]} {
    %c0 = arith.constant 0 : index
    %c0_0 = arith.constant 0 : index
    %0 = vector.load %arg1[%c0, %c0_0] : memref<8x128xf32, #tpu.memory_space<vmem>>, vector<8x128xf32>
    %c0_1 = arith.constant 0 : index
    %c0_2 = arith.constant 0 : index
    %1 = vector.load %arg2[%c0_1, %c0_2] : memref<8x128xf32, #tpu.memory_space<vmem>>, vector<8x128xf32>
    %2 = arith.truncf %1 : vector<8x128xf32> to vector<8x128xbf16>
    %cst = arith.constant 0.000000e+00 : f32
    %3 = vector.broadcast %cst : f32 to vector<8x128xf32>
    %c0_3 = arith.constant 0 : index
    %c0_4 = arith.constant 0 : index
    %c0_5 = arith.constant 0 : index
    %4 = vector.load %arg3[%c0_3, %c0_4, %c0_5] : memref<16x128x128xbf16, #tpu.memory_space<vmem>>, vector<1x128x128xbf16>
    %5 = vector.shape_cast %4 : vector<1x128x128xbf16> to vector<128x128xbf16>
    %cst_6 = arith.constant dense<0.000000e+00> : vector<8x128xf32>
    %6 = tpu.matmul %2, %5, %cst_6 {dimension_numbers = #tpu.dot_dimension_numbers<[1], [0], [0], [1], [0, 0, 1, 1], [], []>} : vector<8x128xbf16>, vector<128x128xbf16>, vector<8x128xf32> -> vector<8x128xf32>
    %7 = vector.extract_strided_slice %0 {offsets = [0, 0], sizes = [8, 8], strides = [1, 1]} : vector<8x128xf32> to vector<8x8xf32>
    %8 = tpu.concatenate %7, %7, %7, %7, %7, %7, %7, %7, %7, %7, %7, %7, %7, %7, %7, %7 in 1 : vector<8x8xf32>, vector<8x8xf32>, vector<8x8xf32>, vector<8x8xf32>, vector<8x8xf32>, vector<8x8xf32>, vector<8x8xf32>, vector<8x8xf32>, vector<8x8xf32>, vector<8x8xf32>, vector<8x8xf32>, vector<8x8xf32>, vector<8x8xf32>, vector<8x8xf32>, vector<8x8xf32>, vector<8x8xf32> -> vector<8x128xf32>
    %9 = arith.mulf %8, %6 : vector<8x128xf32>
    %10 = arith.addf %3, %9 : vector<8x128xf32>
    %c1 = arith.constant 1 : index
    %c0_7 = arith.constant 0 : index
    %c0_8 = arith.constant 0 : index
    %11 = vector.load %arg3[%c1, %c0_7, %c0_8] : memref<16x128x128xbf16, #tpu.memory_space<vmem>>, vector<1x128x128xbf16>
    %12 = vector.shape_cast %11 : vector<1x128x128xbf16> to vector<128x128xbf16>
    %cst_9 = arith.constant dense<0.000000e+00> : vector<8x128xf32>
    %13 = tpu.matmul %2, %12, %cst_9 {dimension_numbers = #tpu.dot_dimension_numbers<[1], [0], [0], [1], [0, 0, 1, 1], [], []>} : vector<8x128xbf16>, vector<128x128xbf16>, vector<8x128xf32> -> vector<8x128xf32>
    %14 = vector.extract_strided_slice %0 {offsets = [0, 8], sizes = [8, 8], strides = [1, 1]} : vector<8x128xf32> to vector<8x8xf32>
    %15 = tpu.concatenate %14, %14, %14, %14, %14, %14, %14, %14, %14, %14, %14, %14, %14, %14, %14, %14 in 1 : vector<8x8xf32>, vector<8x8xf32>, vector<8x8xf32>, vector<8x8xf32>, vector<8x8xf32>, vector<8x8xf32>, vector<8x8xf32>, vector<8x8xf32>, vector<8x8xf32>, vector<8x8xf32>, vector<8x8xf32>, vector<8x8xf32>, vector<8x8xf32>, vector<8x8xf32>, vector<8x8xf32>, vector<8x8xf32> -> vector<8x128xf32>
    %16 = arith.mulf %15, %13 : vector<8x128xf32>
    %17 = arith.addf %10, %16 : vector<8x128xf32>
    %c2 = arith.constant 2 : index
    %c0_10 = arith.constant 0 : index
    %c0_11 = arith.constant 0 : index
    %18 = vector.load %arg3[%c2, %c0_10, %c0_11] : memref<16x128x128xbf16, #tpu.memory_space<vmem>>, vector<1x128x128xbf16>
    %19 = vector.shape_cast %18 : vector<1x128x128xbf16> to vector<128x128xbf16>
    %cst_12 = arith.constant dense<0.000000e+00> : vector<8x128xf32>
    %20 = tpu.matmul %2, %19, %cst_12 {dimension_numbers = #tpu.dot_dimension_numbers<[1], [0], [0], [1], [0, 0, 1, 1], [], []>} : vector<8x128xbf16>, vector<128x128xbf16>, vector<8x128xf32> -> vector<8x128xf32>
    %21 = vector.extract_strided_slice %0 {offsets = [0, 16], sizes = [8, 8], strides = [1, 1]} : vector<8x128xf32> to vector<8x8xf32>
    %22 = tpu.concatenate %21, %21, %21, %21, %21, %21, %21, %21, %21, %21, %21, %21, %21, %21, %21, %21 in 1 : vector<8x8xf32>, vector<8x8xf32>, vector<8x8xf32>, vector<8x8xf32>, vector<8x8xf32>, vector<8x8xf32>, vector<8x8xf32>, vector<8x8xf32>, vector<8x8xf32>, vector<8x8xf32>, vector<8x8xf32>, vector<8x8xf32>, vector<8x8xf32>, vector<8x8xf32>, vector<8x8xf32>, vector<8x8xf32> -> vector<8x128xf32>
    %23 = arith.mulf %22, %20 : vector<8x128xf32>
    %24 = arith.addf %17, %23 : vector<8x128xf32>
    %c3 = arith.constant 3 : index
    %c0_13 = arith.constant 0 : index
    %c0_14 = arith.constant 0 : index
    %25 = vector.load %arg3[%c3, %c0_13, %c0_14] : memref<16x128x128xbf16, #tpu.memory_space<vmem>>, vector<1x128x128xbf16>
    %26 = vector.shape_cast %25 : vector<1x128x128xbf16> to vector<128x128xbf16>
    %cst_15 = arith.constant dense<0.000000e+00> : vector<8x128xf32>
    %27 = tpu.matmul %2, %26, %cst_15 {dimension_numbers = #tpu.dot_dimension_numbers<[1], [0], [0], [1], [0, 0, 1, 1], [], []>} : vector<8x128xbf16>, vector<128x128xbf16>, vector<8x128xf32> -> vector<8x128xf32>
    %28 = vector.extract_strided_slice %0 {offsets = [0, 24], sizes = [8, 8], strides = [1, 1]} : vector<8x128xf32> to vector<8x8xf32>
    %29 = tpu.concatenate %28, %28, %28, %28, %28, %28, %28, %28, %28, %28, %28, %28, %28, %28, %28, %28 in 1 : vector<8x8xf32>, vector<8x8xf32>, vector<8x8xf32>, vector<8x8xf32>, vector<8x8xf32>, vector<8x8xf32>, vector<8x8xf32>, vector<8x8xf32>, vector<8x8xf32>, vector<8x8xf32>, vector<8x8xf32>, vector<8x8xf32>, vector<8x8xf32>, vector<8x8xf32>, vector<8x8xf32>, vector<8x8xf32> -> vector<8x128xf32>
    %30 = arith.mulf %29, %27 : vector<8x128xf32>
    %31 = arith.addf %24, %30 : vector<8x128xf32>
    %c4 = arith.constant 4 : index
    %c0_16 = arith.constant 0 : index
    %c0_17 = arith.constant 0 : index
    %32 = vector.load %arg3[%c4, %c0_16, %c0_17] : memref<16x128x128xbf16, #tpu.memory_space<vmem>>, vector<1x128x128xbf16>
    %33 = vector.shape_cast %32 : vector<1x128x128xbf16> to vector<128x128xbf16>
    %cst_18 = arith.constant dense<0.000000e+00> : vector<8x128xf32>
    %34 = tpu.matmul %2, %33, %cst_18 {dimension_numbers = #tpu.dot_dimension_numbers<[1], [0], [0], [1], [0, 0, 1, 1], [], []>} : vector<8x128xbf16>, vector<128x128xbf16>, vector<8x128xf32> -> vector<8x128xf32>
    %35 = vector.extract_strided_slice %0 {offsets = [0, 32], sizes = [8, 8], strides = [1, 1]} : vector<8x128xf32> to vector<8x8xf32>
    %36 = tpu.concatenate %35, %35, %35, %35, %35, %35, %35, %35, %35, %35, %35, %35, %35, %35, %35, %35 in 1 : vector<8x8xf32>, vector<8x8xf32>, vector<8x8xf32>, vector<8x8xf32>, vector<8x8xf32>, vector<8x8xf32>, vector<8x8xf32>, vector<8x8xf32>, vector<8x8xf32>, vector<8x8xf32>, vector<8x8xf32>, vector<8x8xf32>, vector<8x8xf32>, vector<8x8xf32>, vector<8x8xf32>, vector<8x8xf32> -> vector<8x128xf32>
    %37 = arith.mulf %36, %34 : vector<8x128xf32>
    %38 = arith.addf %31, %37 : vector<8x128xf32>
    %c5 = arith.constant 5 : index
    %c0_19 = arith.constant 0 : index
    %c0_20 = arith.constant 0 : index
    %39 = vector.load %arg3[%c5, %c0_19, %c0_20] : memref<16x128x128xbf16, #tpu.memory_space<vmem>>, vector<1x128x128xbf16>
    %40 = vector.shape_cast %39 : vector<1x128x128xbf16> to vector<128x128xbf16>
    %cst_21 = arith.constant dense<0.000000e+00> : vector<8x128xf32>
    %41 = tpu.matmul %2, %40, %cst_21 {dimension_numbers = #tpu.dot_dimension_numbers<[1], [0], [0], [1], [0, 0, 1, 1], [], []>} : vector<8x128xbf16>, vector<128x128xbf16>, vector<8x128xf32> -> vector<8x128xf32>
    %42 = vector.extract_strided_slice %0 {offsets = [0, 40], sizes = [8, 8], strides = [1, 1]} : vector<8x128xf32> to vector<8x8xf32>
    %43 = tpu.concatenate %42, %42, %42, %42, %42, %42, %42, %42, %42, %42, %42, %42, %42, %42, %42, %42 in 1 : vector<8x8xf32>, vector<8x8xf32>, vector<8x8xf32>, vector<8x8xf32>, vector<8x8xf32>, vector<8x8xf32>, vector<8x8xf32>, vector<8x8xf32>, vector<8x8xf32>, vector<8x8xf32>, vector<8x8xf32>, vector<8x8xf32>, vector<8x8xf32>, vector<8x8xf32>, vector<8x8xf32>, vector<8x8xf32> -> vector<8x128xf32>
    %44 = arith.mulf %43, %41 : vector<8x128xf32>
    %45 = arith.addf %38, %44 : vector<8x128xf32>
    %c6 = arith.constant 6 : index
    %c0_22 = arith.constant 0 : index
    %c0_23 = arith.constant 0 : index
    %46 = vector.load %arg3[%c6, %c0_22, %c0_23] : memref<16x128x128xbf16, #tpu.memory_space<vmem>>, vector<1x128x128xbf16>
    %47 = vector.shape_cast %46 : vector<1x128x128xbf16> to vector<128x128xbf16>
    %cst_24 = arith.constant dense<0.000000e+00> : vector<8x128xf32>
    %48 = tpu.matmul %2, %47, %cst_24 {dimension_numbers = #tpu.dot_dimension_numbers<[1], [0], [0], [1], [0, 0, 1, 1], [], []>} : vector<8x128xbf16>, vector<128x128xbf16>, vector<8x128xf32> -> vector<8x128xf32>
    %49 = vector.extract_strided_slice %0 {offsets = [0, 48], sizes = [8, 8], strides = [1, 1]} : vector<8x128xf32> to vector<8x8xf32>
    %50 = tpu.concatenate %49, %49, %49, %49, %49, %49, %49, %49, %49, %49, %49, %49, %49, %49, %49, %49 in 1 : vector<8x8xf32>, vector<8x8xf32>, vector<8x8xf32>, vector<8x8xf32>, vector<8x8xf32>, vector<8x8xf32>, vector<8x8xf32>, vector<8x8xf32>, vector<8x8xf32>, vector<8x8xf32>, vector<8x8xf32>, vector<8x8xf32>, vector<8x8xf32>, vector<8x8xf32>, vector<8x8xf32>, vector<8x8xf32> -> vector<8x128xf32>
    %51 = arith.mulf %50, %48 : vector<8x128xf32>
    %52 = arith.addf %45, %51 : vector<8x128xf32>
    %c7 = arith.constant 7 : index
    %c0_25 = arith.constant 0 : index
    %c0_26 = arith.constant 0 : index
    %53 = vector.load %arg3[%c7, %c0_25, %c0_26] : memref<16x128x128xbf16, #tpu.memory_space<vmem>>, vector<1x128x128xbf16>
    %54 = vector.shape_cast %53 : vector<1x128x128xbf16> to vector<128x128xbf16>
    %cst_27 = arith.constant dense<0.000000e+00> : vector<8x128xf32>
    %55 = tpu.matmul %2, %54, %cst_27 {dimension_numbers = #tpu.dot_dimension_numbers<[1], [0], [0], [1], [0, 0, 1, 1], [], []>} : vector<8x128xbf16>, vector<128x128xbf16>, vector<8x128xf32> -> vector<8x128xf32>
    %56 = vector.extract_strided_slice %0 {offsets = [0, 56], sizes = [8, 8], strides = [1, 1]} : vector<8x128xf32> to vector<8x8xf32>
    %57 = tpu.concatenate %56, %56, %56, %56, %56, %56, %56, %56, %56, %56, %56, %56, %56, %56, %56, %56 in 1 : vector<8x8xf32>, vector<8x8xf32>, vector<8x8xf32>, vector<8x8xf32>, vector<8x8xf32>, vector<8x8xf32>, vector<8x8xf32>, vector<8x8xf32>, vector<8x8xf32>, vector<8x8xf32>, vector<8x8xf32>, vector<8x8xf32>, vector<8x8xf32>, vector<8x8xf32>, vector<8x8xf32>, vector<8x8xf32> -> vector<8x128xf32>
    %58 = arith.mulf %57, %55 : vector<8x128xf32>
    %59 = arith.addf %52, %58 : vector<8x128xf32>
    %c8 = arith.constant 8 : index
    %c0_28 = arith.constant 0 : index
    %c0_29 = arith.constant 0 : index
    %60 = vector.load %arg3[%c8, %c0_28, %c0_29] : memref<16x128x128xbf16, #tpu.memory_space<vmem>>, vector<1x128x128xbf16>
    %61 = vector.shape_cast %60 : vector<1x128x128xbf16> to vector<128x128xbf16>
    %cst_30 = arith.constant dense<0.000000e+00> : vector<8x128xf32>
    %62 = tpu.matmul %2, %61, %cst_30 {dimension_numbers = #tpu.dot_dimension_numbers<[1], [0], [0], [1], [0, 0, 1, 1], [], []>} : vector<8x128xbf16>, vector<128x128xbf16>, vector<8x128xf32> -> vector<8x128xf32>
    %63 = vector.extract_strided_slice %0 {offsets = [0, 64], sizes = [8, 8], strides = [1, 1]} : vector<8x128xf32> to vector<8x8xf32>
    %64 = tpu.concatenate %63, %63, %63, %63, %63, %63, %63, %63, %63, %63, %63, %63, %63, %63, %63, %63 in 1 : vector<8x8xf32>, vector<8x8xf32>, vector<8x8xf32>, vector<8x8xf32>, vector<8x8xf32>, vector<8x8xf32>, vector<8x8xf32>, vector<8x8xf32>, vector<8x8xf32>, vector<8x8xf32>, vector<8x8xf32>, vector<8x8xf32>, vector<8x8xf32>, vector<8x8xf32>, vector<8x8xf32>, vector<8x8xf32> -> vector<8x128xf32>
    %65 = arith.mulf %64, %62 : vector<8x128xf32>
    %66 = arith.addf %59, %65 : vector<8x128xf32>
    %c9 = arith.constant 9 : index
    %c0_31 = arith.constant 0 : index
    %c0_32 = arith.constant 0 : index
    %67 = vector.load %arg3[%c9, %c0_31, %c0_32] : memref<16x128x128xbf16, #tpu.memory_space<vmem>>, vector<1x128x128xbf16>
    %68 = vector.shape_cast %67 : vector<1x128x128xbf16> to vector<128x128xbf16>
    %cst_33 = arith.constant dense<0.000000e+00> : vector<8x128xf32>
    %69 = tpu.matmul %2, %68, %cst_33 {dimension_numbers = #tpu.dot_dimension_numbers<[1], [0], [0], [1], [0, 0, 1, 1], [], []>} : vector<8x128xbf16>, vector<128x128xbf16>, vector<8x128xf32> -> vector<8x128xf32>
    %70 = vector.extract_strided_slice %0 {offsets = [0, 72], sizes = [8, 8], strides = [1, 1]} : vector<8x128xf32> to vector<8x8xf32>
    %71 = tpu.concatenate %70, %70, %70, %70, %70, %70, %70, %70, %70, %70, %70, %70, %70, %70, %70, %70 in 1 : vector<8x8xf32>, vector<8x8xf32>, vector<8x8xf32>, vector<8x8xf32>, vector<8x8xf32>, vector<8x8xf32>, vector<8x8xf32>, vector<8x8xf32>, vector<8x8xf32>, vector<8x8xf32>, vector<8x8xf32>, vector<8x8xf32>, vector<8x8xf32>, vector<8x8xf32>, vector<8x8xf32>, vector<8x8xf32> -> vector<8x128xf32>
    %72 = arith.mulf %71, %69 : vector<8x128xf32>
    %73 = arith.addf %66, %72 : vector<8x128xf32>
    %c10 = arith.constant 10 : index
    %c0_34 = arith.constant 0 : index
    %c0_35 = arith.constant 0 : index
    %74 = vector.load %arg3[%c10, %c0_34, %c0_35] : memref<16x128x128xbf16, #tpu.memory_space<vmem>>, vector<1x128x128xbf16>
    %75 = vector.shape_cast %74 : vector<1x128x128xbf16> to vector<128x128xbf16>
    %cst_36 = arith.constant dense<0.000000e+00> : vector<8x128xf32>
    %76 = tpu.matmul %2, %75, %cst_36 {dimension_numbers = #tpu.dot_dimension_numbers<[1], [0], [0], [1], [0, 0, 1, 1], [], []>} : vector<8x128xbf16>, vector<128x128xbf16>, vector<8x128xf32> -> vector<8x128xf32>
    %77 = vector.extract_strided_slice %0 {offsets = [0, 80], sizes = [8, 8], strides = [1, 1]} : vector<8x128xf32> to vector<8x8xf32>
    %78 = tpu.concatenate %77, %77, %77, %77, %77, %77, %77, %77, %77, %77, %77, %77, %77, %77, %77, %77 in 1 : vector<8x8xf32>, vector<8x8xf32>, vector<8x8xf32>, vector<8x8xf32>, vector<8x8xf32>, vector<8x8xf32>, vector<8x8xf32>, vector<8x8xf32>, vector<8x8xf32>, vector<8x8xf32>, vector<8x8xf32>, vector<8x8xf32>, vector<8x8xf32>, vector<8x8xf32>, vector<8x8xf32>, vector<8x8xf32> -> vector<8x128xf32>
    %79 = arith.mulf %78, %76 : vector<8x128xf32>
    %80 = arith.addf %73, %79 : vector<8x128xf32>
    %c11 = arith.constant 11 : index
    %c0_37 = arith.constant 0 : index
    %c0_38 = arith.constant 0 : index
    %81 = vector.load %arg3[%c11, %c0_37, %c0_38] : memref<16x128x128xbf16, #tpu.memory_space<vmem>>, vector<1x128x128xbf16>
    %82 = vector.shape_cast %81 : vector<1x128x128xbf16> to vector<128x128xbf16>
    %cst_39 = arith.constant dense<0.000000e+00> : vector<8x128xf32>
    %83 = tpu.matmul %2, %82, %cst_39 {dimension_numbers = #tpu.dot_dimension_numbers<[1], [0], [0], [1], [0, 0, 1, 1], [], []>} : vector<8x128xbf16>, vector<128x128xbf16>, vector<8x128xf32> -> vector<8x128xf32>
    %84 = vector.extract_strided_slice %0 {offsets = [0, 88], sizes = [8, 8], strides = [1, 1]} : vector<8x128xf32> to vector<8x8xf32>
    %85 = tpu.concatenate %84, %84, %84, %84, %84, %84, %84, %84, %84, %84, %84, %84, %84, %84, %84, %84 in 1 : vector<8x8xf32>, vector<8x8xf32>, vector<8x8xf32>, vector<8x8xf32>, vector<8x8xf32>, vector<8x8xf32>, vector<8x8xf32>, vector<8x8xf32>, vector<8x8xf32>, vector<8x8xf32>, vector<8x8xf32>, vector<8x8xf32>, vector<8x8xf32>, vector<8x8xf32>, vector<8x8xf32>, vector<8x8xf32> -> vector<8x128xf32>
    %86 = arith.mulf %85, %83 : vector<8x128xf32>
    %87 = arith.addf %80, %86 : vector<8x128xf32>
    %c12 = arith.constant 12 : index
    %c0_40 = arith.constant 0 : index
    %c0_41 = arith.constant 0 : index
    %88 = vector.load %arg3[%c12, %c0_40, %c0_41] : memref<16x128x128xbf16, #tpu.memory_space<vmem>>, vector<1x128x128xbf16>
    %89 = vector.shape_cast %88 : vector<1x128x128xbf16> to vector<128x128xbf16>
    %cst_42 = arith.constant dense<0.000000e+00> : vector<8x128xf32>
    %90 = tpu.matmul %2, %89, %cst_42 {dimension_numbers = #tpu.dot_dimension_numbers<[1], [0], [0], [1], [0, 0, 1, 1], [], []>} : vector<8x128xbf16>, vector<128x128xbf16>, vector<8x128xf32> -> vector<8x128xf32>
    %91 = vector.extract_strided_slice %0 {offsets = [0, 96], sizes = [8, 8], strides = [1, 1]} : vector<8x128xf32> to vector<8x8xf32>
    %92 = tpu.concatenate %91, %91, %91, %91, %91, %91, %91, %91, %91, %91, %91, %91, %91, %91, %91, %91 in 1 : vector<8x8xf32>, vector<8x8xf32>, vector<8x8xf32>, vector<8x8xf32>, vector<8x8xf32>, vector<8x8xf32>, vector<8x8xf32>, vector<8x8xf32>, vector<8x8xf32>, vector<8x8xf32>, vector<8x8xf32>, vector<8x8xf32>, vector<8x8xf32>, vector<8x8xf32>, vector<8x8xf32>, vector<8x8xf32> -> vector<8x128xf32>
    %93 = arith.mulf %92, %90 : vector<8x128xf32>
    %94 = arith.addf %87, %93 : vector<8x128xf32>
    %c13 = arith.constant 13 : index
    %c0_43 = arith.constant 0 : index
    %c0_44 = arith.constant 0 : index
    %95 = vector.load %arg3[%c13, %c0_43, %c0_44] : memref<16x128x128xbf16, #tpu.memory_space<vmem>>, vector<1x128x128xbf16>
    %96 = vector.shape_cast %95 : vector<1x128x128xbf16> to vector<128x128xbf16>
    %cst_45 = arith.constant dense<0.000000e+00> : vector<8x128xf32>
    %97 = tpu.matmul %2, %96, %cst_45 {dimension_numbers = #tpu.dot_dimension_numbers<[1], [0], [0], [1], [0, 0, 1, 1], [], []>} : vector<8x128xbf16>, vector<128x128xbf16>, vector<8x128xf32> -> vector<8x128xf32>
    %98 = vector.extract_strided_slice %0 {offsets = [0, 104], sizes = [8, 8], strides = [1, 1]} : vector<8x128xf32> to vector<8x8xf32>
    %99 = tpu.concatenate %98, %98, %98, %98, %98, %98, %98, %98, %98, %98, %98, %98, %98, %98, %98, %98 in 1 : vector<8x8xf32>, vector<8x8xf32>, vector<8x8xf32>, vector<8x8xf32>, vector<8x8xf32>, vector<8x8xf32>, vector<8x8xf32>, vector<8x8xf32>, vector<8x8xf32>, vector<8x8xf32>, vector<8x8xf32>, vector<8x8xf32>, vector<8x8xf32>, vector<8x8xf32>, vector<8x8xf32>, vector<8x8xf32> -> vector<8x128xf32>
    %100 = arith.mulf %99, %97 : vector<8x128xf32>
    %101 = arith.addf %94, %100 : vector<8x128xf32>
    %c14 = arith.constant 14 : index
    %c0_46 = arith.constant 0 : index
    %c0_47 = arith.constant 0 : index
    %102 = vector.load %arg3[%c14, %c0_46, %c0_47] : memref<16x128x128xbf16, #tpu.memory_space<vmem>>, vector<1x128x128xbf16>
    %103 = vector.shape_cast %102 : vector<1x128x128xbf16> to vector<128x128xbf16>
    %cst_48 = arith.constant dense<0.000000e+00> : vector<8x128xf32>
    %104 = tpu.matmul %2, %103, %cst_48 {dimension_numbers = #tpu.dot_dimension_numbers<[1], [0], [0], [1], [0, 0, 1, 1], [], []>} : vector<8x128xbf16>, vector<128x128xbf16>, vector<8x128xf32> -> vector<8x128xf32>
    %105 = vector.extract_strided_slice %0 {offsets = [0, 112], sizes = [8, 8], strides = [1, 1]} : vector<8x128xf32> to vector<8x8xf32>
    %106 = tpu.concatenate %105, %105, %105, %105, %105, %105, %105, %105, %105, %105, %105, %105, %105, %105, %105, %105 in 1 : vector<8x8xf32>, vector<8x8xf32>, vector<8x8xf32>, vector<8x8xf32>, vector<8x8xf32>, vector<8x8xf32>, vector<8x8xf32>, vector<8x8xf32>, vector<8x8xf32>, vector<8x8xf32>, vector<8x8xf32>, vector<8x8xf32>, vector<8x8xf32>, vector<8x8xf32>, vector<8x8xf32>, vector<8x8xf32> -> vector<8x128xf32>
    %107 = arith.mulf %106, %104 : vector<8x128xf32>
    %108 = arith.addf %101, %107 : vector<8x128xf32>
    %c15 = arith.constant 15 : index
    %c0_49 = arith.constant 0 : index
    %c0_50 = arith.constant 0 : index
    %109 = vector.load %arg3[%c15, %c0_49, %c0_50] : memref<16x128x128xbf16, #tpu.memory_space<vmem>>, vector<1x128x128xbf16>
    %110 = vector.shape_cast %109 : vector<1x128x128xbf16> to vector<128x128xbf16>
    %cst_51 = arith.constant dense<0.000000e+00> : vector<8x128xf32>
    %111 = tpu.matmul %2, %110, %cst_51 {dimension_numbers = #tpu.dot_dimension_numbers<[1], [0], [0], [1], [0, 0, 1, 1], [], []>} : vector<8x128xbf16>, vector<128x128xbf16>, vector<8x128xf32> -> vector<8x128xf32>
    %112 = vector.extract_strided_slice %0 {offsets = [0, 120], sizes = [8, 8], strides = [1, 1]} : vector<8x128xf32> to vector<8x8xf32>
    %113 = tpu.concatenate %112, %112, %112, %112, %112, %112, %112, %112, %112, %112, %112, %112, %112, %112, %112, %112 in 1 : vector<8x8xf32>, vector<8x8xf32>, vector<8x8xf32>, vector<8x8xf32>, vector<8x8xf32>, vector<8x8xf32>, vector<8x8xf32>, vector<8x8xf32>, vector<8x8xf32>, vector<8x8xf32>, vector<8x8xf32>, vector<8x8xf32>, vector<8x8xf32>, vector<8x8xf32>, vector<8x8xf32>, vector<8x8xf32> -> vector<8x128xf32>
    %114 = arith.mulf %113, %111 : vector<8x128xf32>
    %115 = arith.addf %108, %114 : vector<8x128xf32>
    %c0_52 = arith.constant 0 : index
    %c0_53 = arith.constant 0 : index
    %116 = vector.load %arg4[%c0_52, %c0_53] : memref<8x128xf32, #tpu.memory_space<vmem>>, vector<8x128xf32>
    tpu.vector_store %arg4[%c0_52, %c0_53], %115 {strides = array<i32>} : memref<8x128xf32, #tpu.memory_space<vmem>>, vector<8x128xf32>,
    return
  }
  func.func @transform_0(%arg0: i32) -> (i32, i32) {
    %c0_i32 = arith.constant 0 : i32
    %c0_i32_0 = arith.constant 0 : i32
    return %arg0, %c0_i32 : i32, i32
  }
  func.func @transform_1(%arg0: i32) -> (i32, i32) {
    %c0_i32 = arith.constant 0 : i32
    %c0_i32_0 = arith.constant 0 : i32
    return %arg0, %c0_i32 : i32, i32
  }
  func.func @transform_2(%arg0: i32) -> (i32, i32, i32) {
    %c0_i32 = arith.constant 0 : i32
    %c0_i32_0 = arith.constant 0 : i32
    %c0_i32_1 = arith.constant 0 : i32
    %c0_i32_2 = arith.constant 0 : i32
    return %c0_i32, %c0_i32_0, %c0_i32_1 : i32, i32, i32
  }
  func.func @transform_3(%arg0: i32) -> (i32, i32) {
    %c0_i32 = arith.constant 0 : i32
    %c0_i32_0 = arith.constant 0 : i32
    return %arg0, %c0_i32 : i32, i32
  }
}

module attributes {stable_mosaic.version = 11 : i64} {
  func.func @_equi_linear_kernel(%arg0: i32, %arg1: memref<128x16xf32, #tpu.memory_space<vmem>>, %arg2: memref<16x16xbf16, #tpu.memory_space<vmem>>, %arg3: memref<1x16xf32, #tpu.memory_space<vmem>>, %arg4: memref<128x16xf32, #tpu.memory_space<vmem>>) attributes {dimension_semantics = [#tpu.dimension_semantics<parallel>], iteration_bounds = array<i64: 2>, scalar_prefetch = 0 : i64, scratch_operands = 0 : i64, tpu.core_type = #tpu.core_type<tc>, window_params = [{transform_indices = @transform_0, window_bounds = array<i64: 128, 16>}, {pipeline_mode = #tpu.pipeline_mode<synchronous>, transform_indices = @transform_1, window_bounds = array<i64: 16, 16>}, {pipeline_mode = #tpu.pipeline_mode<synchronous>, transform_indices = @transform_2, window_bounds = array<i64: 1, 16>}, {transform_indices = @transform_3, window_bounds = array<i64: 128, 16>}]} {
    %c0 = arith.constant 0 : index
    %c0_0 = arith.constant 0 : index
    %0 = vector.load %arg1[%c0, %c0_0] : memref<128x16xf32, #tpu.memory_space<vmem>>, vector<128x16xf32>
    %1 = arith.truncf %0 : vector<128x16xf32> to vector<128x16xbf16>
    %c0_1 = arith.constant 0 : index
    %c0_2 = arith.constant 0 : index
    %2 = vector.load %arg2[%c0_1, %c0_2] : memref<16x16xbf16, #tpu.memory_space<vmem>>, vector<16x16xbf16>
    %cst = arith.constant dense<0.000000e+00> : vector<128x16xf32>
    %3 = tpu.matmul %1, %2, %cst {dimension_numbers = #tpu.dot_dimension_numbers<[1], [0], [0], [1], [0, 0, 1, 1], [], []>} : vector<128x16xbf16>, vector<16x16xbf16>, vector<128x16xf32> -> vector<128x16xf32>
    %4 = tpu.iota {dimensions = array<i32: 0>} : vector<128x1xi32>
    %c16_i32 = arith.constant 16 : i32
    %c0_i32 = arith.constant 0 : i32
    %5 = arith.cmpi eq, %c16_i32, %c0_i32 : i32
    %c1_i32 = arith.constant 1 : i32
    %6 = arith.select %5, %c1_i32, %c16_i32 : i32
    %7 = vector.broadcast %6 : i32 to vector<128x1xi32>
    %8 = arith.remsi %4, %7 : vector<128x1xi32>
    %c0_i32_3 = arith.constant 0 : i32
    %9 = vector.broadcast %c0_i32_3 : i32 to vector<128x1xi32>
    %10 = arith.cmpi ne, %8, %9 : vector<128x1xi32>
    %c0_i32_4 = arith.constant 0 : i32
    %11 = vector.broadcast %c0_i32_4 : i32 to vector<128x1xi32>
    %12 = arith.cmpi slt, %8, %11 : vector<128x1xi32>
    %c0_i32_5 = arith.constant 0 : i32
    %13 = arith.cmpi slt, %6, %c0_i32_5 : i32
    %14 = vector.broadcast %13 : i1 to vector<128x1xi1>
    %15 = vector.broadcast %14 : vector<128x1xi1> to vector<128x1xi1>
    %16 = arith.xori %12, %15 : vector<128x1xi1>
    %17 = arith.andi %16, %10 : vector<128x1xi1>
    %18 = vector.broadcast %6 : i32 to vector<128x1xi32>
    %19 = arith.addi %8, %18 : vector<128x1xi32>
    %20 = arith.select %17, %19, %8 : vector<128x1xi1>, vector<128x1xi32>
    %c0_i32_6 = arith.constant 0 : i32
    %21 = vector.broadcast %c0_i32_6 : i32 to vector<128x1xi32>
    %22 = arith.cmpi eq, %20, %21 : vector<128x1xi32>
    %cst_7 = arith.constant 1.000000e+00 : f32
    %cst_8 = arith.constant 0.000000e+00 : f32
    %23 = vector.broadcast %cst_7 : f32 to vector<128x1xf32>
    %24 = vector.broadcast %cst_8 : f32 to vector<128x1xf32>
    %25 = arith.select %22, %23, %24 : vector<128x1xi1>, vector<128x1xf32>
    %c0_9 = arith.constant 0 : index
    %c0_10 = arith.constant 0 : index
    %26 = vector.load %arg3[%c0_9, %c0_10] : memref<1x16xf32, #tpu.memory_space<vmem>>, vector<1x16xf32>
    %27 = vector.broadcast %25 : vector<128x1xf32> to vector<128x16xf32>
    %28 = vector.broadcast %26 : vector<1x16xf32> to vector<128x16xf32>
    %29 = arith.mulf %27, %28 : vector<128x16xf32>
    %30 = arith.addf %3, %29 : vector<128x16xf32>
    %c0_11 = arith.constant 0 : index
    %c0_12 = arith.constant 0 : index
    %31 = vector.load %arg4[%c0_11, %c0_12] : memref<128x16xf32, #tpu.memory_space<vmem>>, vector<128x16xf32>
    tpu.vector_store %arg4[%c0_11, %c0_12], %30 {strides = array<i32>} : memref<128x16xf32, #tpu.memory_space<vmem>>, vector<128x16xf32>,
    return
  }
  func.func @transform_0(%arg0: i32) -> (i32, i32) {
    %c0_i32 = arith.constant 0 : i32
    %c0_i32_0 = arith.constant 0 : i32
    return %arg0, %c0_i32 : i32, i32
  }
  func.func @transform_1(%arg0: i32) -> (i32, i32) {
    %c0_i32 = arith.constant 0 : i32
    %c0_i32_0 = arith.constant 0 : i32
    %c0_i32_1 = arith.constant 0 : i32
    return %c0_i32, %c0_i32_0 : i32, i32
  }
  func.func @transform_2(%arg0: i32) -> (i32, i32) {
    %c0_i32 = arith.constant 0 : i32
    %c0_i32_0 = arith.constant 0 : i32
    %c0_i32_1 = arith.constant 0 : i32
    return %c0_i32, %c0_i32_0 : i32, i32
  }
  func.func @transform_3(%arg0: i32) -> (i32, i32) {
    %c0_i32 = arith.constant 0 : i32
    %c0_i32_0 = arith.constant 0 : i32
    return %arg0, %c0_i32 : i32, i32
  }
}

module attributes {stable_mosaic.version = 11 : i64} {
  func.func @_gated_gelu_kernel(%arg0: i32, %arg1: memref<8x256xf32, #tpu.memory_space<vmem>>, %arg2: memref<8x256xf32, #tpu.memory_space<vmem>>) attributes {dimension_semantics = [#tpu.dimension_semantics<parallel>], iteration_bounds = array<i64: 2>, scalar_prefetch = 0 : i64, scratch_operands = 0 : i64, tpu.core_type = #tpu.core_type<tc>, window_params = [{transform_indices = @transform_0, window_bounds = array<i64: 8, 256>}, {transform_indices = @transform_1, window_bounds = array<i64: 8, 256>}]} {
    %c0 = arith.constant 0 : index
    %c0_0 = arith.constant 0 : index
    %0 = vector.load %arg1[%c0, %c0_0] : memref<8x256xf32, #tpu.memory_space<vmem>>, vector<8x256xf32>
    %1 = vector.extract_strided_slice %0 {offsets = [0, 0], sizes = [8, 16], strides = [1, 1]} : vector<8x256xf32> to vector<8x16xf32>
    %2 = arith.mulf %1, %1 : vector<8x16xf32>
    %3 = arith.mulf %1, %2 : vector<8x16xf32>
    %cst = arith.constant 4.471500e-02 : f32
    %4 = vector.broadcast %cst : f32 to vector<8x16xf32>
    %5 = arith.mulf %4, %3 : vector<8x16xf32>
    %6 = arith.addf %1, %5 : vector<8x16xf32>
    %cst_1 = arith.constant 0.797884583 : f32
    %7 = vector.broadcast %cst_1 : f32 to vector<8x16xf32>
    %8 = arith.mulf %7, %6 : vector<8x16xf32>
    %9 = math.tanh %8 : vector<8x16xf32>
    %cst_2 = arith.constant 1.000000e+00 : f32
    %10 = vector.broadcast %cst_2 : f32 to vector<8x16xf32>
    %11 = arith.addf %10, %9 : vector<8x16xf32>
    %cst_3 = arith.constant 5.000000e-01 : f32
    %12 = vector.broadcast %cst_3 : f32 to vector<8x16xf32>
    %13 = arith.mulf %12, %11 : vector<8x16xf32>
    %14 = arith.mulf %1, %13 : vector<8x16xf32>
    %15 = tpu.concatenate %14, %14, %14, %14, %14, %14, %14, %14, %14, %14, %14, %14, %14, %14, %14, %14 in 1 : vector<8x16xf32>, vector<8x16xf32>, vector<8x16xf32>, vector<8x16xf32>, vector<8x16xf32>, vector<8x16xf32>, vector<8x16xf32>, vector<8x16xf32>, vector<8x16xf32>, vector<8x16xf32>, vector<8x16xf32>, vector<8x16xf32>, vector<8x16xf32>, vector<8x16xf32>, vector<8x16xf32>, vector<8x16xf32> -> vector<8x256xf32>
    %16 = arith.mulf %0, %15 : vector<8x256xf32>
    %c0_4 = arith.constant 0 : index
    %c0_5 = arith.constant 0 : index
    %17 = vector.load %arg2[%c0_4, %c0_5] : memref<8x256xf32, #tpu.memory_space<vmem>>, vector<8x256xf32>
    tpu.vector_store %arg2[%c0_4, %c0_5], %16 {strides = array<i32>} : memref<8x256xf32, #tpu.memory_space<vmem>>, vector<8x256xf32>,
    return
  }
  func.func @transform_0(%arg0: i32) -> (i32, i32) {
    %c0_i32 = arith.constant 0 : i32
    %c0_i32_0 = arith.constant 0 : i32
    return %arg0, %c0_i32 : i32, i32
  }
  func.func @transform_1(%arg0: i32) -> (i32, i32) {
    %c0_i32 = arith.constant 0 : i32
    %c0_i32_0 = arith.constant 0 : i32
    return %arg0, %c0_i32 : i32, i32
  }
}

module attributes {stable_mosaic.version = 11 : i64} {
  func.func @_equi_linear_res_kernel(%arg0: i32, %arg1: memref<128x16xf32, #tpu.memory_space<vmem>>, %arg2: memref<16x16xbf16, #tpu.memory_space<vmem>>, %arg3: memref<1x16xf32, #tpu.memory_space<vmem>>, %arg4: memref<128x16xf32, #tpu.memory_space<vmem>>, %arg5: memref<128x16xf32, #tpu.memory_space<vmem>>) attributes {dimension_semantics = [#tpu.dimension_semantics<parallel>], iteration_bounds = array<i64: 2>, scalar_prefetch = 0 : i64, scratch_operands = 0 : i64, tpu.core_type = #tpu.core_type<tc>, window_params = [{transform_indices = @transform_0, window_bounds = array<i64: 128, 16>}, {pipeline_mode = #tpu.pipeline_mode<synchronous>, transform_indices = @transform_1, window_bounds = array<i64: 16, 16>}, {pipeline_mode = #tpu.pipeline_mode<synchronous>, transform_indices = @transform_2, window_bounds = array<i64: 1, 16>}, {transform_indices = @transform_3, window_bounds = array<i64: 128, 16>}, {transform_indices = @transform_4, window_bounds = array<i64: 128, 16>}]} {
    %c0 = arith.constant 0 : index
    %c0_0 = arith.constant 0 : index
    %0 = vector.load %arg1[%c0, %c0_0] : memref<128x16xf32, #tpu.memory_space<vmem>>, vector<128x16xf32>
    %1 = arith.truncf %0 : vector<128x16xf32> to vector<128x16xbf16>
    %c0_1 = arith.constant 0 : index
    %c0_2 = arith.constant 0 : index
    %2 = vector.load %arg2[%c0_1, %c0_2] : memref<16x16xbf16, #tpu.memory_space<vmem>>, vector<16x16xbf16>
    %cst = arith.constant dense<0.000000e+00> : vector<128x16xf32>
    %3 = tpu.matmul %1, %2, %cst {dimension_numbers = #tpu.dot_dimension_numbers<[1], [0], [0], [1], [0, 0, 1, 1], [], []>} : vector<128x16xbf16>, vector<16x16xbf16>, vector<128x16xf32> -> vector<128x16xf32>
    %4 = tpu.iota {dimensions = array<i32: 0>} : vector<128x1xi32>
    %c16_i32 = arith.constant 16 : i32
    %c0_i32 = arith.constant 0 : i32
    %5 = arith.cmpi eq, %c16_i32, %c0_i32 : i32
    %c1_i32 = arith.constant 1 : i32
    %6 = arith.select %5, %c1_i32, %c16_i32 : i32
    %7 = vector.broadcast %6 : i32 to vector<128x1xi32>
    %8 = arith.remsi %4, %7 : vector<128x1xi32>
    %c0_i32_3 = arith.constant 0 : i32
    %9 = vector.broadcast %c0_i32_3 : i32 to vector<128x1xi32>
    %10 = arith.cmpi ne, %8, %9 : vector<128x1xi32>
    %c0_i32_4 = arith.constant 0 : i32
    %11 = vector.broadcast %c0_i32_4 : i32 to vector<128x1xi32>
    %12 = arith.cmpi slt, %8, %11 : vector<128x1xi32>
    %c0_i32_5 = arith.constant 0 : i32
    %13 = arith.cmpi slt, %6, %c0_i32_5 : i32
    %14 = vector.broadcast %13 : i1 to vector<128x1xi1>
    %15 = vector.broadcast %14 : vector<128x1xi1> to vector<128x1xi1>
    %16 = arith.xori %12, %15 : vector<128x1xi1>
    %17 = arith.andi %16, %10 : vector<128x1xi1>
    %18 = vector.broadcast %6 : i32 to vector<128x1xi32>
    %19 = arith.addi %8, %18 : vector<128x1xi32>
    %20 = arith.select %17, %19, %8 : vector<128x1xi1>, vector<128x1xi32>
    %c0_i32_6 = arith.constant 0 : i32
    %21 = vector.broadcast %c0_i32_6 : i32 to vector<128x1xi32>
    %22 = arith.cmpi eq, %20, %21 : vector<128x1xi32>
    %cst_7 = arith.constant 1.000000e+00 : f32
    %cst_8 = arith.constant 0.000000e+00 : f32
    %23 = vector.broadcast %cst_7 : f32 to vector<128x1xf32>
    %24 = vector.broadcast %cst_8 : f32 to vector<128x1xf32>
    %25 = arith.select %22, %23, %24 : vector<128x1xi1>, vector<128x1xf32>
    %c0_9 = arith.constant 0 : index
    %c0_10 = arith.constant 0 : index
    %26 = vector.load %arg3[%c0_9, %c0_10] : memref<1x16xf32, #tpu.memory_space<vmem>>, vector<1x16xf32>
    %27 = vector.broadcast %25 : vector<128x1xf32> to vector<128x16xf32>
    %28 = vector.broadcast %26 : vector<1x16xf32> to vector<128x16xf32>
    %29 = arith.mulf %27, %28 : vector<128x16xf32>
    %30 = arith.addf %3, %29 : vector<128x16xf32>
    %c0_11 = arith.constant 0 : index
    %c0_12 = arith.constant 0 : index
    %31 = vector.load %arg4[%c0_11, %c0_12] : memref<128x16xf32, #tpu.memory_space<vmem>>, vector<128x16xf32>
    %32 = arith.addf %30, %31 : vector<128x16xf32>
    %c0_13 = arith.constant 0 : index
    %c0_14 = arith.constant 0 : index
    %33 = vector.load %arg5[%c0_13, %c0_14] : memref<128x16xf32, #tpu.memory_space<vmem>>, vector<128x16xf32>
    tpu.vector_store %arg5[%c0_13, %c0_14], %32 {strides = array<i32>} : memref<128x16xf32, #tpu.memory_space<vmem>>, vector<128x16xf32>,
    return
  }
  func.func @transform_0(%arg0: i32) -> (i32, i32) {
    %c0_i32 = arith.constant 0 : i32
    %c0_i32_0 = arith.constant 0 : i32
    return %arg0, %c0_i32 : i32, i32
  }
  func.func @transform_1(%arg0: i32) -> (i32, i32) {
    %c0_i32 = arith.constant 0 : i32
    %c0_i32_0 = arith.constant 0 : i32
    %c0_i32_1 = arith.constant 0 : i32
    return %c0_i32, %c0_i32_0 : i32, i32
  }
  func.func @transform_2(%arg0: i32) -> (i32, i32) {
    %c0_i32 = arith.constant 0 : i32
    %c0_i32_0 = arith.constant 0 : i32
    %c0_i32_1 = arith.constant 0 : i32
    return %c0_i32, %c0_i32_0 : i32, i32
  }
  func.func @transform_3(%arg0: i32) -> (i32, i32) {
    %c0_i32 = arith.constant 0 : i32
    %c0_i32_0 = arith.constant 0 : i32
    return %arg0, %c0_i32 : i32, i32
  }
  func.func @transform_4(%arg0: i32) -> (i32, i32) {
    %c0_i32 = arith.constant 0 : i32
    %c0_i32_0 = arith.constant 0 : i32
    return %arg0, %c0_i32 : i32, i32
  }
}

</mosaic_0001>

<bundles_post_ra>
// kernel: _lambda_.17
= control target key start
LH: loop header
LB: loop body
LE: loop exit
PB: predicated region body
PF: predicated region fallthrough
CT: control target
= control target key end

     0   :  { %s319_s12 = smov 0   ;;  %s342_s0 = inlined_call_operand.vmem [shape: f32[16,256], index: 0, kind: input, shape index: {}]   ;;  %s343_s1 = inlined_call_operand.vmem [shape: f32[1,256], index: 1, kind: input, shape index: {}]   ;;  %s344_s2 = inlined_call_operand.vmem [shape: f32[1,256], index: 2, kind: input, shape index: {}]   ;;  %s345_s3 = inlined_call_operand.vmem [shape: f32[16,256], index: 3, kind: output, shape index: {}]  }
   0x1 LB: > { %s268_s13 = sadd.s32 4294967295, %s297_s12   ;;  %p272_p0 = scmp.ge.s32.totalorder %s297_s12, 1  ;;  %s297_s12 = sphi %s319_s12, %s13_s12  }
   0x2   : > { %p137_p1 = scmp.lt.s32.totalorder %s297_s12, 3 }
   0x4   : > { %p138_p2 = pnand %p272_p0, %p137_p1 }
   0x5   : > { %p161_p3 = scmp.lt.s32.totalorder (!%p138_p2), %s268_s13, 1  ;;  %v175_v0 = vlaneseq (!%p138_p2)  ;;  %v173_v2 = vld [vmem:[%s344_s2] sm:$0x3] (!%p138_p2) }
   0x6   : > { %141 = sbr.rel (%p138_p2) target bundleno = 185 (0xb9), region = 32  ;;  %v197_v17 = vld [vmem:[%s343_s1] sm:$0x3] (!%p138_p2) }
   0x7   : > { %v176_v1 = vshrl.u32 (!%p138_p2), %v175_v0, 7 }
   0x9   : > { %v177_v3 = vsub.s32 (!%p138_p2), 0, %v176_v1  ;;  %v181_v4 = vsub.s32 (!%p138_p2), 1, %v176_v1 }
   0xb   : > { %v178_v7 = vrot.slane (!%p138_p2), %v173_v2, %v177_v3  ;;  %v182_v8 = vrot.slane (!%p138_p2), %v173_v2, %v181_v4  ;;  %v202_v18 = vrot.slane (!%p138_p2), %v197_v17, %v177_v3  ;;  %v206_v19 = vrot.slane (!%p138_p2), %v197_v17, %v181_v4 }
   0xd   : > { %s347_s13 = smov (!%p161_p3, %s268_s13), 1 }
   0xe   : > { %s279_s16 = sshll.u32 %s347_s13, 4 }
   0xf   : > { %s165_s19 = scalar_lea.vmem %s342_s0, %s279_s16  ;;  %s170_s24 = scalar_lea.vmem %s345_s3, %s279_s16 }
  0x10   : > { %v171_v5 = vld [vmem:[%s165_s19] sm:$0xff]  ;;  %v172_v6 = vld [vmem:[%s165_s19 + $0x8] sm:$0xff] }
  0x11   : > { %v185_v9 = vmul.f32 %v178_v7, %v171_v5  ;;  %v186_v10 = vmul.f32 %v182_v8, %v172_v6 }
  0x13   : > { %v187_v11 = vmul.f32 %v185_v9, %v185_v9  ;;  %v188_v12 = vmul.f32 %v186_v10, %v186_v10 }
  0x15   : > { %v189_v13 = vadd.f32 %v188_v12, %v187_v11 }
  0x17   : > { %190 = vadd.xlane.f32.xlu0 %v189_v13 }
  0xa4   : > { %v191_v14 = vpop.xlane.xlu0 %190 }
  0xa5   : > { %v192_v15 = vmul.f32 0.0625, %v191_v14 }
  0xa7   : > { %v193_v16 = vadd.f32 1e-06, %v192_v15 }
  0xa9   : > { %289 = vrsqrt.f32 %v193_v16 }
  0xb3   : > { %v290_v20 = vpop.eup %289 }
  0xb4   : > { %v195_v21 = vmul.f32 %v290_v20, %v171_v5  ;;  %v196_v22 = vmul.f32 %v290_v20, %v172_v6 }
  0xb6   : > { %v209_v23 = vmul.f32 %v202_v18, %v195_v21  ;;  %v210_v24 = vmul.f32 %v206_v19, %v196_v22 }
  0xb8   : > { %211 = vst [vmem:[%s170_s24] sm:$0xff] %v209_v23  ;;  %212 = vst [vmem:[%s170_s24 + $0x8] sm:$0xff] %v210_v24 }
  0xb9 PF: > { %s13_s12 = sadd.s32 1, %s297_s12  }
  0xba   : > { %p10_p4 = scmp.ge.s32.totalorder %s13_s12, 4  }
  0xbc   :  { %12 = sbr.rel (!%p10_p4) target bundleno = 1 (0x1), region = 62 }

// kernel: squeeze.6
= control target key start
LH: loop header
LB: loop body
LE: loop exit
PB: predicated region body
PF: predicated region fallthrough
CT: control target
= control target key end

     0   :  { %vm125_vm0 = vcmask 1043458   ;;  %s165_s6 = smov 3  ;;  %vm130_vm1 = vcmask 1045508   ;;  %vm135_vm2 = vcmask 1047558   ;;  %s168_s9 = smov 12  ;;  %vm4_vm3 = vcmask 1047556   ;;  %s3058_s0 = inlined_call_operand.vmem [shape: f32[1,2,2,8,16,16], index: 0, kind: input, shape index: {}]   ;;  %s3059_s1 = inlined_call_operand.vmem [shape: f32[4,8,256], index: 1, kind: output, shape index: {}]  }
   0x1   :  { %v1454_v0 = vld [vmem:[%s3058_s0 + $0xf] ss:$16 sm:%s165_s6]   ;;  %s173_s10 = smov 48  ;;  %s178_s15 = smov 192  ;;  %vm6_vm4 = vcmask 130048   ;;  %vm139_vm5 = vcmask 1048448  }
   0x2   :  { %v1455_v1 = vld [vmem:[%s3058_s0 + $0xf] ss:$16 sm:%s168_s9]   ;;  %s120_s16 = smov 3  ;;  %s123_s21 = smov 12  ;;  %vm322_vm6 = vcmask 917248   ;;  %vm505_vm7 = vcmask 786048  }
   0x3   :  { %v1456_v2 = vld [vmem:[%s3058_s0 + $0xf] ss:$16 sm:%s173_s10]   ;;  %v171_v3 = vsel %vm125_vm0, %v1455_v1, %v1454_v0  ;;  %v1445_v5 = vld [vmem:[%s3058_s0 + $0x7] ss:$16 sm:%s120_s16]   ;;  %s128_s22 = smov 48  ;;  %s133_s27 = smov 192 }
   0x4   :  { %v1457_v4 = vld [vmem:[%s3058_s0 + $0xf] ss:$16 sm:%s178_s15]   ;;  %v176_v6 = vsel %vm130_vm1, %v1456_v2, %v171_v3  ;;  %v1446_v7 = vld [vmem:[%s3058_s0 + $0x7] ss:$16 sm:%s123_s21]   ;;  %s188_s28 = smov 3  ;;  %s191_s4 = smov 12 }
   0x5   :  { %v1447_v8 = vld [vmem:[%s3058_s0 + $0x7] ss:$16 sm:%s128_s22]   ;;  %v181_v9 = vsel %vm135_vm2, %v1457_v4, %v176_v6  ;;  %v126_v10 = vsel %vm125_vm0, %v1446_v7, %v1445_v5  ;;  %v1459_v12 = vld [vmem:[%s3058_s0 + $0x10f] ss:$16 sm:%s188_s28]   ;;  %s196_s5 = smov 48  ;;  %s1725_s6 = smov 112  }
   0x6   :  { %v1448_v11 = vld [vmem:[%s3058_s0 + $0x7] ss:$16 sm:%s133_s27]   ;;  %182 = vrot.lane.b32.xlu1 %v181_v9, %s1725_s6  ;;  %v131_v13 = vsel %vm130_vm1, %v1447_v8, %v126_v10  ;;  %s201_s9 = smov 192  ;;  %s142_s10 = smov 3  ;;  %vm688_vm8 = vcmask 654848   ;;  %vm871_vm9 = vcmask 523648  }
   0x7   :  { %v1460_v14 = vld [vmem:[%s3058_s0 + $0x10f] ss:$16 sm:%s191_s4]   ;;  %v136_v15 = vsel %vm135_vm2, %v1448_v11, %v131_v13  ;;  %s145_s15 = smov 12  ;;  %s150_s16 = smov 48  ;;  %v1449_v20 = vld [vmem:[%s3058_s0 + $0x107] ss:$16 sm:%s142_s10]  }
   0x8   :  { %v194_v16 = vsel %vm125_vm0, %v1460_v14, %v1459_v12  ;;  %v1461_v17 = vld [vmem:[%s3058_s0 + $0x10f] ss:$16 sm:%s196_s5]   ;;  %137 = vrot.lane.b32.xlu0 %v136_v15, %s1725_s6  ;;  %s155_s19 = smov 192  ;;  %s234_s20 = smov 3  ;;  %vm1054_vm10 = vcmask 392448   ;;  %vm1237_vm11 = vcmask 261248  }
   0x9   :  { %v1462_v18 = vld [vmem:[%s3058_s0 + $0x10f] ss:$16 sm:%s201_s9]   ;;  %v199_v19 = vsel %vm130_vm1, %v1461_v17, %v194_v16  ;;  %v1450_v22 = vld [vmem:[%s3058_s0 + $0x107] ss:$16 sm:%s145_s15]   ;;  %s237_s25 = smov 12  ;;  %s242_s26 = smov 48 }
   0xa   :  { %v204_v21 = vsel %vm135_vm2, %v1462_v18, %v199_v19  ;;  %v1451_v23 = vld [vmem:[%s3058_s0 + $0x107] ss:$16 sm:%s150_s16]   ;;  %v148_v24 = vsel %vm125_vm0, %v1450_v22, %v1449_v20  ;;  %s247_s29 = smov 192  ;;  %s211_s30 = smov 3 }
   0xb   :  { %205 = vrot.lane.b32.xlu1 %v204_v21, %s1725_s6  ;;  %v1452_v25 = vld [vmem:[%s3058_s0 + $0x107] ss:$16 sm:%s155_s19]   ;;  %v153_v26 = vsel %vm130_vm1, %v1451_v23, %v148_v24  ;;  %s214_s7 = smov 12  ;;  %s219_s8 = smov 48 }
   0xc   :  { %v1469_v27 = vld [vmem:[%s3058_s0 + $0x187] ss:$16 sm:%s234_s20]   ;;  %v158_v29 = vsel %vm135_vm2, %v1452_v25, %v153_v26  ;;  %s224_s13 = smov 192  ;;  %s280_s16 = smov 3 }
   0xd   :  { %v1470_v28 = vld [vmem:[%s3058_s0 + $0x187] ss:$16 sm:%s237_s25]   ;;  %159 = vrot.lane.b32.xlu0 %v158_v29, %s1725_s6  ;;  %s283_s17 = smov 12  ;;  %s288_s22 = smov 48 }
   0xe   :  { %v240_v30 = vsel %vm125_vm0, %v1470_v28, %v1469_v27  ;;  %v1471_v31 = vld [vmem:[%s3058_s0 + $0x187] ss:$16 sm:%s242_s26]   ;;  %s293_s23 = smov 192  ;;  %s257_s26 = smov 3  ;;  %v1479_v41 = vld [vmem:[%s3058_s0 + $0x18f] ss:$16 sm:%s280_s16]  }
   0xf   :  { %v1472_v32 = vld [vmem:[%s3058_s0 + $0x187] ss:$16 sm:%s247_s29]   ;;  %v245_v33 = vsel %vm130_vm1, %v1471_v31, %v240_v30  ;;  %v1480_v42 = vld [vmem:[%s3058_s0 + $0x18f] ss:$16 sm:%s283_s17]   ;;  %s260_s2 = smov 12  ;;  %s265_s3 = smov 48 }
  0x10   :  { %v1464_v34 = vld [vmem:[%s3058_s0 + $0x87] ss:$16 sm:%s211_s30]   ;;  %v250_v35 = vsel %vm135_vm2, %v1472_v32, %v245_v33  ;;  %v286_v44 = vsel %vm125_vm0, %v1480_v42, %v1479_v41  ;;  %v1481_v45 = vld [vmem:[%s3058_s0 + $0x18f] ss:$16 sm:%s288_s22]   ;;  %s270_s9 = smov 192  ;;  %s325_s12 = smov 3 }
  0x11   :  { %v1465_v36 = vld [vmem:[%s3058_s0 + $0x87] ss:$16 sm:%s214_s7]   ;;  %251 = vrot.lane.b32.xlu1 %v250_v35, %s1725_s6  ;;  %v291_v47 = vsel %vm130_vm1, %v1481_v45, %v286_v44  ;;  %s333_s18 = smov 48  ;;  %s338_s19 = smov 192 }
  0x12   :  { %v1466_v37 = vld [vmem:[%s3058_s0 + $0x87] ss:$16 sm:%s219_s8]   ;;  %v217_v38 = vsel %vm125_vm0, %v1465_v36, %v1464_v34  ;;  %v1482_v46 = vld [vmem:[%s3058_s0 + $0x18f] ss:$16 sm:%s293_s23]   ;;  %s303_s22 = smov 3  ;;  %s306_s27 = smov 12 }
  0x13   :  { %v1467_v39 = vld [vmem:[%s3058_s0 + $0x87] ss:$16 sm:%s224_s13]   ;;  %v222_v40 = vsel %vm130_vm1, %v1466_v37, %v217_v38  ;;  %v1474_v48 = vld [vmem:[%s3058_s0 + $0x8f] ss:$16 sm:%s257_s26]   ;;  %s328_s13 = smov 12  ;;  %v296_v49 = vsel %vm135_vm2, %v1482_v46, %v291_v47  ;;  %s311_s28 = smov 48 }
  0x14   :  { %v227_v43 = vsel %vm135_vm2, %v1467_v39, %v222_v40  ;;  %v1475_v50 = vld [vmem:[%s3058_s0 + $0x8f] ss:$16 sm:%s260_s2]   ;;  %v1488_v55 = vld [vmem:[%s3058_s0 + $0x106] ss:$16 sm:%s325_s12]   ;;  %s316_s4 = smov 192  ;;  %s371_s7 = smov 3 }
  0x15   :  { %228 = vrot.lane.b32.xlu0 %v227_v43, %s1725_s6  ;;  %v1476_v51 = vld [vmem:[%s3058_s0 + $0x8f] ss:$16 sm:%s265_s3]   ;;  %297 = vrot.lane.b32.xlu1 %v296_v49, %s1725_s6  ;;  %v263_v52 = vsel %vm125_vm0, %v1475_v50, %v1474_v48  ;;  %s374_s8 = smov 12  ;;  %s384_s14 = smov 192 }
  0x16   :  { %v1477_v53 = vld [vmem:[%s3058_s0 + $0x8f] ss:$16 sm:%s270_s9]   ;;  %v268_v54 = vsel %vm130_vm1, %v1476_v51, %v263_v52  ;;  %v1489_v56 = vld [vmem:[%s3058_s0 + $0x106] ss:$16 sm:%s328_s13]   ;;  %s379_s13 = smov 48  ;;  %s1726_s15 = smov 96  }
  0x17   :  { %v273_v57 = vsel %vm135_vm2, %v1477_v53, %v268_v54  ;;  %v331_v58 = vsel %vm125_vm0, %v1489_v56, %v1488_v55  ;;  %v1490_v59 = vld [vmem:[%s3058_s0 + $0x106] ss:$16 sm:%s333_s18]   ;;  %s348_s18 = smov 3  ;;  %v1498_v5 = vld [vmem:[%s3058_s0 + $0x10e] ss:$16 sm:%s371_s7]   ;;  %s351_s23 = smov 12 }
  0x18   :  { %v1491_v60 = vld [vmem:[%s3058_s0 + $0x106] ss:$16 sm:%s338_s19]   ;;  %v336_v61 = vsel %vm130_vm1, %v1490_v59, %v331_v58  ;;  %v1499_v6 = vld [vmem:[%s3058_s0 + $0x10e] ss:$16 sm:%s374_s8]   ;;  %s356_s24 = smov 48  ;;  %s361_s29 = smov 192 }
  0x19   :  { %274 = vrot.lane.b32.xlu0 %v273_v57, %s1725_s6  ;;  %v1484_v62 = vld [vmem:[%s3058_s0 + $0x6] ss:$16 sm:%s303_s22]   ;;  %v341_v63 = vsel %vm135_vm2, %v1491_v60, %v336_v61  ;;  %v377_v8 = vsel %vm125_vm0, %v1499_v6, %v1498_v5  ;;  %s417_s3 = smov 3  ;;  %s425_s9 = smov 48 }
  0x1a   :  { %v1485_v0 = vld [vmem:[%s3058_s0 + $0x6] ss:$16 sm:%s306_s27]   ;;  %342 = vrot.lane.b32.xlu1 %v341_v63, %s1726_s15  ;;  %s430_s10 = smov 192  ;;  %s397_s19 = smov 12 }
  0x1b   :  { %v1486_v1 = vld [vmem:[%s3058_s0 + $0x6] ss:$16 sm:%s311_s28]   ;;  %v309_v2 = vsel %vm125_vm0, %v1485_v0, %v1484_v62  ;;  %v1500_v9 = vld [vmem:[%s3058_s0 + $0x10e] ss:$16 sm:%s379_s13]   ;;  %s394_s13 = smov 3  ;;  %s402_s20 = smov 48 }
  0x1c   :  { %v1487_v3 = vld [vmem:[%s3058_s0 + $0x6] ss:$16 sm:%s316_s4]   ;;  %v314_v4 = vsel %vm130_vm1, %v1486_v1, %v309_v2  ;;  %v1501_v10 = vld [vmem:[%s3058_s0 + $0x10e] ss:$16 sm:%s384_s14]   ;;  %v382_v11 = vsel %vm130_vm1, %v1500_v9, %v377_v8  ;;  %s420_s4 = smov 12  ;;  %s407_s25 = smov 192 }
  0x1d   :  { %v319_v7 = vsel %vm135_vm2, %v1487_v3, %v314_v4  ;;  %v1493_v12 = vld [vmem:[%s3058_s0 + $0xe] ss:$16 sm:%s348_s18]   ;;  %v387_v13 = vsel %vm135_vm2, %v1501_v10, %v382_v11  ;;  %v1508_v19 = vld [vmem:[%s3058_s0 + $0x186] ss:$16 sm:%s417_s3]   ;;  %s463_s28 = smov 3  ;;  %s471_s6 = smov 48 }
  0x1e   :  { %320 = vrot.lane.b32.xlu0 %v319_v7, %s1726_s15  ;;  %v1494_v14 = vld [vmem:[%s3058_s0 + $0xe] ss:$16 sm:%s351_s23]   ;;  %388 = vrot.lane.b32.xlu1 %v387_v13, %s1726_s15  ;;  %s476_s5 = smov 192  ;;  %s443_s14 = smov 12 }
  0x1f   :  { %v1495_v15 = vld [vmem:[%s3058_s0 + $0xe] ss:$16 sm:%s356_s24]   ;;  %v354_v16 = vsel %vm125_vm0, %v1494_v14, %v1493_v12  ;;  %v1509_v20 = vld [vmem:[%s3058_s0 + $0x186] ss:$16 sm:%s420_s4]   ;;  %s448_s16 = smov 48  ;;  %s453_s21 = smov 192 }
  0x20   :  { %v1496_v17 = vld [vmem:[%s3058_s0 + $0xe] ss:$16 sm:%s361_s29]   ;;  %v359_v18 = vsel %vm130_vm1, %v1495_v15, %v354_v16  ;;  %v423_v22 = vsel %vm125_vm0, %v1509_v20, %v1508_v19  ;;  %v1510_v23 = vld [vmem:[%s3058_s0 + $0x186] ss:$16 sm:%s425_s9]   ;;  %s466_s29 = smov 12  ;;  %s440_s9 = smov 3 }
  0x21   :  { %v364_v21 = vsel %vm135_vm2, %v1496_v17, %v359_v18  ;;  %v1511_v24 = vld [vmem:[%s3058_s0 + $0x186] ss:$16 sm:%s430_s10]   ;;  %v428_v25 = vsel %vm130_vm1, %v1510_v23, %v423_v22  ;;  %v1518_v33 = vld [vmem:[%s3058_s0 + $0x18e] ss:$16 sm:%s463_s28]   ;;  %s508_s24 = smov 3  ;;  %s516_s30 = smov 48 }
  0x22   :  { %365 = vrot.lane.b32.xlu0 %v364_v21, %s1726_s15  ;;  %v1503_v26 = vld [vmem:[%s3058_s0 + $0x86] ss:$16 sm:%s394_s13]   ;;  %v433_v27 = vsel %vm135_vm2, %v1511_v24, %v428_v25  ;;  %s521_s2 = smov 192  ;;  %s489_s10 = smov 12 }
  0x23   :  { %v1504_v28 = vld [vmem:[%s3058_s0 + $0x86] ss:$16 sm:%s397_s19]   ;;  %434 = vrot.lane.b32.xlu1 %v433_v27, %s1726_s15  ;;  %s494_s11 = smov 48  ;;  %s499_s17 = smov 192 }
  0x24   :  { %v1505_v29 = vld [vmem:[%s3058_s0 + $0x86] ss:$16 sm:%s402_s20]   ;;  %v400_v30 = vsel %vm125_vm0, %v1504_v28, %v1503_v26  ;;  %v1519_v34 = vld [vmem:[%s3058_s0 + $0x18e] ss:$16 sm:%s466_s29]   ;;  %s554_s19 = smov 3  ;;  %s557_s20 = smov 12 }
  0x25   :  { %v1506_v31 = vld [vmem:[%s3058_s0 + $0x86] ss:$16 sm:%s407_s25]   ;;  %v405_v32 = vsel %vm130_vm1, %v1505_v29, %v400_v30  ;;  %v469_v36 = vsel %vm125_vm0, %v1519_v34, %v1518_v33  ;;  %v1520_v37 = vld [vmem:[%s3058_s0 + $0x18e] ss:$16 sm:%s471_s6]   ;;  %s511_s25 = smov 12  ;;  %s486_s6 = smov 3 }
  0x26   :  { %v410_v35 = vsel %vm135_vm2, %v1506_v31, %v405_v32  ;;  %v1521_v38 = vld [vmem:[%s3058_s0 + $0x18e] ss:$16 sm:%s476_s5]   ;;  %v474_v39 = vsel %vm130_vm1, %v1520_v37, %v469_v36  ;;  %v1527_v47 = vld [vmem:[%s3058_s0 + $0x105] ss:$16 sm:%s508_s24]   ;;  %s567_s26 = smov 192  ;;  %s1727_s27 = smov 80  }
  0x27   :  { %411 = vrot.lane.b32.xlu0 %v410_v35, %s1726_s15  ;;  %v1513_v40 = vld [vmem:[%s3058_s0 + $0x8e] ss:$16 sm:%s440_s9]   ;;  %v479_v41 = vsel %vm135_vm2, %v1521_v38, %v474_v39  ;;  %s534_s5 = smov 12  ;;  %s539_s7 = smov 48 }
  0x28   :  { %v1514_v42 = vld [vmem:[%s3058_s0 + $0x8e] ss:$16 sm:%s443_s14]   ;;  %480 = vrot.lane.b32.xlu1 %v479_v41, %s1726_s15  ;;  %s544_s12 = smov 192  ;;  %s613_s22 = smov 192 }
  0x29   :  { %v1515_v43 = vld [vmem:[%s3058_s0 + $0x8e] ss:$16 sm:%s448_s16]   ;;  %v446_v44 = vsel %vm125_vm0, %v1514_v42, %v1513_v40  ;;  %v1528_v48 = vld [vmem:[%s3058_s0 + $0x105] ss:$16 sm:%s511_s25]   ;;  %s562_s25 = smov 48  ;;  %s600_s16 = smov 3 }
  0x2a   :  { %v1516_v45 = vld [vmem:[%s3058_s0 + $0x8e] ss:$16 sm:%s453_s21]   ;;  %v451_v46 = vsel %vm130_vm1, %v1515_v43, %v446_v44  ;;  %v514_v50 = vsel %vm125_vm0, %v1528_v48, %v1527_v47  ;;  %v1529_v51 = vld [vmem:[%s3058_s0 + $0x105] ss:$16 sm:%s516_s30]   ;;  %s531_s30 = smov 3  ;;  %s608_s21 = smov 48 }
  0x2b   :  { %v456_v49 = vsel %vm135_vm2, %v1516_v45, %v451_v46  ;;  %v1530_v52 = vld [vmem:[%s3058_s0 + $0x105] ss:$16 sm:%s521_s2]   ;;  %v519_v53 = vsel %vm130_vm1, %v1529_v51, %v514_v50  ;;  %v1537_v61 = vld [vmem:[%s3058_s0 + $0x10d] ss:$16 sm:%s554_s19]   ;;  %s580_s2 = smov 12  ;;  %s585_s3 = smov 48 }
  0x2c   :  { %457 = vrot.lane.b32.xlu0 %v456_v49, %s1726_s15  ;;  %v1523_v54 = vld [vmem:[%s3058_s0 + $0x5] ss:$16 sm:%s486_s6]   ;;  %v524_v55 = vsel %vm135_vm2, %v1530_v52, %v519_v53  ;;  %s590_s8 = smov 192  ;;  %s654_s15 = smov 48 }
  0x2d   :  { %v1524_v56 = vld [vmem:[%s3058_s0 + $0x5] ss:$16 sm:%s489_s10]   ;;  %525 = vrot.lane.b32.xlu1 %v524_v55, %s1727_s27  ;;  %s659_s18 = smov 192  ;;  %s631_s28 = smov 48 }
  0x2e   :  { %v1525_v57 = vld [vmem:[%s3058_s0 + $0x5] ss:$16 sm:%s494_s11]   ;;  %v492_v58 = vsel %vm125_vm0, %v1524_v56, %v1523_v54  ;;  %v1538_v62 = vld [vmem:[%s3058_s0 + $0x10d] ss:$16 sm:%s557_s20]   ;;  %s646_s11 = smov 3  ;;  %s636_s4 = smov 192 }
  0x2f   :  { %v1526_v59 = vld [vmem:[%s3058_s0 + $0x5] ss:$16 sm:%s499_s17]   ;;  %v497_v60 = vsel %vm130_vm1, %v1525_v57, %v492_v58  ;;  %v560_v0 = vsel %vm125_vm0, %v1538_v62, %v1537_v61  ;;  %v1539_v1 = vld [vmem:[%s3058_s0 + $0x10d] ss:$16 sm:%s562_s25]   ;;  %s603_s17 = smov 12  ;;  %s577_s25 = smov 3 }
  0x30   :  { %v502_v63 = vsel %vm135_vm2, %v1526_v59, %v497_v60  ;;  %v1540_v2 = vld [vmem:[%s3058_s0 + $0x10d] ss:$16 sm:%s567_s26]   ;;  %v565_v3 = vsel %vm130_vm1, %v1539_v1, %v560_v0  ;;  %v1547_v11 = vld [vmem:[%s3058_s0 + $0x185] ss:$16 sm:%s600_s16]   ;;  %s626_s26 = smov 12  ;;  %s699_s13 = smov 48 }
  0x31   :  { %503 = vrot.lane.b32.xlu0 %v502_v63, %s1727_s27  ;;  %v1532_v4 = vld [vmem:[%s3058_s0 + $0xd] ss:$16 sm:%s531_s30]   ;;  %v570_v5 = vsel %vm135_vm2, %v1540_v2, %v565_v3  ;;  %s704_s14 = smov 192  ;;  %s677_s23 = smov 48 }
  0x32   :  { %v1533_v6 = vld [vmem:[%s3058_s0 + $0xd] ss:$16 sm:%s534_s5]   ;;  %571 = vrot.lane.b32.xlu1 %v570_v5, %s1727_s27  ;;  %s682_s29 = smov 192  ;;  %s750_s9 = smov 192 }
  0x33   :  { %v1534_v7 = vld [vmem:[%s3058_s0 + $0xd] ss:$16 sm:%s539_s7]   ;;  %v537_v8 = vsel %vm125_vm0, %v1533_v6, %v1532_v4  ;;  %v1548_v12 = vld [vmem:[%s3058_s0 + $0x185] ss:$16 sm:%s603_s17]   ;;  %s691_s7 = smov 3  ;;  %s1728_s10 = smov 64  }
  0x34   :  { %v1535_v9 = vld [vmem:[%s3058_s0 + $0xd] ss:$16 sm:%s544_s12]   ;;  %v542_v10 = vsel %vm130_vm1, %v1534_v7, %v537_v8  ;;  %v606_v14 = vsel %vm125_vm0, %v1548_v12, %v1547_v11  ;;  %v1549_v15 = vld [vmem:[%s3058_s0 + $0x185] ss:$16 sm:%s608_s21]   ;;  %s649_s12 = smov 12  ;;  %s623_s21 = smov 3 }
  0x35   :  { %v547_v13 = vsel %vm135_vm2, %v1535_v9, %v542_v10  ;;  %v1550_v16 = vld [vmem:[%s3058_s0 + $0x185] ss:$16 sm:%s613_s22]   ;;  %v611_v17 = vsel %vm130_vm1, %v1549_v15, %v606_v14  ;;  %v1557_v25 = vld [vmem:[%s3058_s0 + $0x18d] ss:$16 sm:%s646_s11]   ;;  %s672_s22 = smov 12  ;;  %s722_s19 = smov 48 }
  0x36   :  { %548 = vrot.lane.b32.xlu0 %v547_v13, %s1727_s27  ;;  %v1542_v18 = vld [vmem:[%s3058_s0 + $0x85] ss:$16 sm:%s577_s25]   ;;  %v616_v19 = vsel %vm135_vm2, %v1550_v16, %v611_v17  ;;  %s727_s24 = smov 192  ;;  %s796_s6 = smov 192 }
  0x37   :  { %v1543_v20 = vld [vmem:[%s3058_s0 + $0x85] ss:$16 sm:%s580_s2]   ;;  %617 = vrot.lane.b32.xlu1 %v616_v19, %s1727_s27  ;;  %s737_s2 = smov 3  ;;  %s768_s16 = smov 48 }
  0x38   :  { %v1544_v21 = vld [vmem:[%s3058_s0 + $0x85] ss:$16 sm:%s585_s3]   ;;  %v583_v22 = vsel %vm125_vm0, %v1543_v20, %v1542_v18  ;;  %v1558_v26 = vld [vmem:[%s3058_s0 + $0x18d] ss:$16 sm:%s649_s12]   ;;  %s740_s3 = smov 12  ;;  %s773_s20 = smov 192 }
  0x39   :  { %v1545_v23 = vld [vmem:[%s3058_s0 + $0x85] ss:$16 sm:%s590_s8]   ;;  %v588_v24 = vsel %vm130_vm1, %v1544_v21, %v583_v22  ;;  %v652_v28 = vsel %vm125_vm0, %v1558_v26, %v1557_v25  ;;  %v1559_v29 = vld [vmem:[%s3058_s0 + $0x18d] ss:$16 sm:%s654_s15]   ;;  %s694_s8 = smov 12  ;;  %s669_s15 = smov 3 }
  0x3a   :  { %v593_v27 = vsel %vm135_vm2, %v1545_v23, %v588_v24  ;;  %v1560_v30 = vld [vmem:[%s3058_s0 + $0x18d] ss:$16 sm:%s659_s18]   ;;  %v657_v31 = vsel %vm130_vm1, %v1559_v29, %v652_v28  ;;  %v1566_v39 = vld [vmem:[%s3058_s0 + $0x104] ss:$16 sm:%s691_s7]   ;;  %s717_s18 = smov 12  ;;  %s842_s30 = smov 192 }
  0x3b   :  { %594 = vrot.lane.b32.xlu0 %v593_v27, %s1727_s27  ;;  %v1552_v32 = vld [vmem:[%s3058_s0 + $0x8d] ss:$16 sm:%s623_s21]   ;;  %v662_v33 = vsel %vm135_vm2, %v1560_v30, %v657_v31  ;;  %s814_s11 = smov 48  ;;  %s819_s17 = smov 192 }
  0x3c   :  { %v1553_v34 = vld [vmem:[%s3058_s0 + $0x8d] ss:$16 sm:%s626_s26]   ;;  %663 = vrot.lane.b32.xlu1 %v662_v33, %s1727_s27  ;;  %s882_s25 = smov 48  ;;  %s887_s26 = smov 192 }
  0x3d   :  { %v1554_v35 = vld [vmem:[%s3058_s0 + $0x8d] ss:$16 sm:%s631_s28]   ;;  %v629_v36 = vsel %vm125_vm0, %v1553_v34, %v1552_v32  ;;  %v1567_v40 = vld [vmem:[%s3058_s0 + $0x104] ss:$16 sm:%s694_s8]   ;;  %s745_s8 = smov 48  ;;  %s783_s28 = smov 3 }
  0x3e   :  { %v1555_v37 = vld [vmem:[%s3058_s0 + $0x8d] ss:$16 sm:%s636_s4]   ;;  %v634_v38 = vsel %vm130_vm1, %v1554_v35, %v629_v36  ;;  %v697_v42 = vsel %vm125_vm0, %v1567_v40, %v1566_v39  ;;  %v1568_v43 = vld [vmem:[%s3058_s0 + $0x104] ss:$16 sm:%s699_s13]   ;;  %s714_s13 = smov 3  ;;  %s791_s4 = smov 48 }
  0x3f   :  { %v639_v41 = vsel %vm135_vm2, %v1555_v37, %v634_v38  ;;  %v1569_v44 = vld [vmem:[%s3058_s0 + $0x104] ss:$16 sm:%s704_s14]   ;;  %v702_v45 = vsel %vm130_vm1, %v1568_v43, %v697_v42  ;;  %v1576_v53 = vld [vmem:[%s3058_s0 + $0x10c] ss:$16 sm:%s737_s2]   ;;  %s763_s14 = smov 12  ;;  %s860_s5 = smov 48 }
  0x40   :  { %640 = vrot.lane.b32.xlu0 %v639_v41, %s1727_s27  ;;  %v1562_v46 = vld [vmem:[%s3058_s0 + $0x4] ss:$16 sm:%s669_s15]   ;;  %v707_v47 = vsel %vm135_vm2, %v1569_v44, %v702_v45  ;;  %s837_s27 = smov 48  ;;  %s865_s12 = smov 192 }
  0x41   :  { %v1563_v48 = vld [vmem:[%s3058_s0 + $0x4] ss:$16 sm:%s672_s22]   ;;  %708 = vrot.lane.b32.xlu1 %v707_v47, %s1728_s10  ;;  %s933_s21 = smov 192  ;;  %s1729_s22 = smov 48  }
  0x42   :  { %v1564_v49 = vld [vmem:[%s3058_s0 + $0x4] ss:$16 sm:%s677_s23]   ;;  %v675_v50 = vsel %vm125_vm0, %v1563_v48, %v1562_v46  ;;  %v1577_v54 = vld [vmem:[%s3058_s0 + $0x10c] ss:$16 sm:%s740_s3]   ;;  %s829_s23 = smov 3  ;;  %s905_s2 = smov 48 }
  0x43   :  { %v1565_v51 = vld [vmem:[%s3058_s0 + $0x4] ss:$16 sm:%s682_s29]   ;;  %v680_v52 = vsel %vm130_vm1, %v1564_v49, %v675_v50  ;;  %v743_v56 = vsel %vm125_vm0, %v1577_v54, %v1576_v53  ;;  %v1578_v57 = vld [vmem:[%s3058_s0 + $0x10c] ss:$16 sm:%s745_s8]   ;;  %s786_s29 = smov 12  ;;  %s760_s8 = smov 3 }
  0x44   :  { %v685_v55 = vsel %vm135_vm2, %v1565_v51, %v680_v52  ;;  %v1579_v58 = vld [vmem:[%s3058_s0 + $0x10c] ss:$16 sm:%s750_s9]   ;;  %v748_v59 = vsel %vm130_vm1, %v1578_v57, %v743_v56  ;;  %v1586_v3 = vld [vmem:[%s3058_s0 + $0x184] ss:$16 sm:%s783_s28]   ;;  %s809_s9 = smov 12  ;;  %s910_s7 = smov 192 }
  0x45   :  { %686 = vrot.lane.b32.xlu0 %v685_v55, %s1728_s10  ;;  %v1571_v60 = vld [vmem:[%s3058_s0 + $0xc] ss:$16 sm:%s714_s13]   ;;  %v753_v61 = vsel %vm135_vm2, %v1579_v58, %v748_v59  ;;  %s979_s15 = smov 192  ;;  %s951_s28 = smov 48 }
  0x46   :  { %v1572_v62 = vld [vmem:[%s3058_s0 + $0xc] ss:$16 sm:%s717_s18]   ;;  %754 = vrot.lane.b32.xlu1 %v753_v61, %s1728_s10  ;;  %s956_s3 = smov 192  ;;  %s1025_s13 = smov 192 }
  0x47   :  { %v1573_v63 = vld [vmem:[%s3058_s0 + $0xc] ss:$16 sm:%s722_s19]   ;;  %v720_v0 = vsel %vm125_vm0, %v1572_v62, %v1571_v60  ;;  %v1587_v4 = vld [vmem:[%s3058_s0 + $0x184] ss:$16 sm:%s786_s29]   ;;  %s874_s19 = smov 3  ;;  %s1002_s29 = smov 192 }
  0x48   :  { %v1574_v1 = vld [vmem:[%s3058_s0 + $0xc] ss:$16 sm:%s727_s24]   ;;  %v725_v2 = vsel %vm130_vm1, %v1573_v63, %v720_v0  ;;  %v789_v6 = vsel %vm125_vm0, %v1587_v4, %v1586_v3  ;;  %v1588_v7 = vld [vmem:[%s3058_s0 + $0x184] ss:$16 sm:%s791_s4]   ;;  %s832_s24 = smov 12  ;;  %s806_s4 = smov 3 }
  0x49   :  { %v730_v5 = vsel %vm135_vm2, %v1574_v1, %v725_v2  ;;  %v1589_v8 = vld [vmem:[%s3058_s0 + $0x184] ss:$16 sm:%s796_s6]   ;;  %v794_v9 = vsel %vm130_vm1, %v1588_v7, %v789_v6  ;;  %v1596_v17 = vld [vmem:[%s3058_s0 + $0x18c] ss:$16 sm:%s829_s23]   ;;  %s855_s6 = smov 12  ;;  %s997_s23 = smov 48 }
  0x4a   :  { %731 = vrot.lane.b32.xlu0 %v730_v5, %s1728_s10  ;;  %v1581_v10 = vld [vmem:[%s3058_s0 + $0x84] ss:$16 sm:%s760_s8]   ;;  %v799_v11 = vsel %vm135_vm2, %v1589_v8, %v794_v9  ;;  %s1065_s8 = smov 48  ;;  %s1043_s18 = smov 48 }
  0x4b   :  { %v1582_v12 = vld [vmem:[%s3058_s0 + $0x84] ss:$16 sm:%s763_s14]   ;;  %800 = vrot.lane.b32.xlu1 %v799_v11, %s1728_s10  ;;  %s920_s14 = smov 3 }
  0x4c   :  { %v1583_v13 = vld [vmem:[%s3058_s0 + $0x84] ss:$16 sm:%s768_s16]   ;;  %v766_v14 = vsel %vm125_vm0, %v1582_v12, %v1581_v10  ;;  %v1597_v18 = vld [vmem:[%s3058_s0 + $0x18c] ss:$16 sm:%s832_s24]   ;;  %s923_s16 = smov 12  ;;  %s1048_s24 = smov 192 }
  0x4d   :  { %v1584_v15 = vld [vmem:[%s3058_s0 + $0x84] ss:$16 sm:%s773_s20]   ;;  %v771_v16 = vsel %vm130_vm1, %v1583_v13, %v766_v14  ;;  %v835_v20 = vsel %vm125_vm0, %v1597_v18, %v1596_v17  ;;  %v1598_v21 = vld [vmem:[%s3058_s0 + $0x18c] ss:$16 sm:%s837_s27]   ;;  %s877_s20 = smov 12  ;;  %s852_s27 = smov 3 }
  0x4e   :  { %v776_v19 = vsel %vm135_vm2, %v1584_v15, %v771_v16  ;;  %v1599_v22 = vld [vmem:[%s3058_s0 + $0x18c] ss:$16 sm:%s842_s30]   ;;  %v840_v23 = vsel %vm130_vm1, %v1598_v21, %v835_v20  ;;  %v1605_v31 = vld [vmem:[%s3058_s0 + $0x103] ss:$16 sm:%s874_s19]   ;;  %s900_s30 = smov 12  ;;  %s1093_s19 = smov 192 }
  0x4f   :  { %777 = vrot.lane.b32.xlu0 %v776_v19, %s1728_s10  ;;  %v1591_v24 = vld [vmem:[%s3058_s0 + $0x8c] ss:$16 sm:%s806_s4]   ;;  %v845_v25 = vsel %vm135_vm2, %v1599_v22, %v840_v23  ;;  %s1116_s4 = smov 192 }
  0x50   :  { %v1592_v26 = vld [vmem:[%s3058_s0 + $0x8c] ss:$16 sm:%s809_s9]   ;;  %846 = vrot.lane.b32.xlu1 %v845_v25, %s1728_s10  ;;  %s1070_s9 = smov 192 }
  0x51   :  { %v1593_v27 = vld [vmem:[%s3058_s0 + $0x8c] ss:$16 sm:%s814_s11]   ;;  %v812_v28 = vsel %vm125_vm0, %v1592_v26, %v1591_v24  ;;  %v1606_v32 = vld [vmem:[%s3058_s0 + $0x103] ss:$16 sm:%s877_s20]   ;;  %s928_s20 = smov 48  ;;  %s966_s11 = smov 3 }
  0x52   :  { %v1594_v29 = vld [vmem:[%s3058_s0 + $0x8c] ss:$16 sm:%s819_s17]   ;;  %v817_v30 = vsel %vm130_vm1, %v1593_v27, %v812_v28  ;;  %v880_v34 = vsel %vm125_vm0, %v1606_v32, %v1605_v31  ;;  %v1607_v35 = vld [vmem:[%s3058_s0 + $0x103] ss:$16 sm:%s882_s25]   ;;  %s897_s25 = smov 3  ;;  %s974_s17 = smov 48 }
  0x53   :  { %v822_v33 = vsel %vm135_vm2, %v1594_v29, %v817_v30  ;;  %v1608_v36 = vld [vmem:[%s3058_s0 + $0x103] ss:$16 sm:%s887_s26]   ;;  %v885_v37 = vsel %vm130_vm1, %v1607_v35, %v880_v34  ;;  %v1615_v45 = vld [vmem:[%s3058_s0 + $0x10b] ss:$16 sm:%s920_s14]   ;;  %s946_s26 = smov 12  ;;  %s1088_s14 = smov 48 }
  0x54   :  { %823 = vrot.lane.b32.xlu0 %v822_v33, %s1728_s10  ;;  %v1601_v38 = vld [vmem:[%s3058_s0 + $0x3] ss:$16 sm:%s852_s27]   ;;  %v890_v39 = vsel %vm135_vm2, %v1608_v36, %v885_v37  ;;  %s1020_s10 = smov 48  ;;  %s1162_s27 = smov 192 }
  0x55   :  { %v1602_v40 = vld [vmem:[%s3058_s0 + $0x3] ss:$16 sm:%s855_s6]   ;;  %891 = vrot.lane.b32.xlu1 %v890_v39, %s1729_s22  ;;  %s1730_s6 = smov 32  }
  0x56   :  { %v1603_v41 = vld [vmem:[%s3058_s0 + $0x3] ss:$16 sm:%s860_s5]   ;;  %v858_v42 = vsel %vm125_vm0, %v1602_v40, %v1601_v38  ;;  %v1616_v46 = vld [vmem:[%s3058_s0 + $0x10b] ss:$16 sm:%s923_s16]   ;;  %s1012_s5 = smov 3  ;;  %s1139_s16 = smov 192 }
  0x57   :  { %v1604_v43 = vld [vmem:[%s3058_s0 + $0x3] ss:$16 sm:%s865_s12]   ;;  %v863_v44 = vsel %vm130_vm1, %v1603_v41, %v858_v42  ;;  %v926_v48 = vsel %vm125_vm0, %v1616_v46, %v1615_v45  ;;  %v1617_v49 = vld [vmem:[%s3058_s0 + $0x10b] ss:$16 sm:%s928_s20]   ;;  %s969_s12 = smov 12  ;;  %s943_s20 = smov 3 }
  0x58   :  { %v868_v47 = vsel %vm135_vm2, %v1604_v43, %v863_v44  ;;  %v1618_v50 = vld [vmem:[%s3058_s0 + $0x10b] ss:$16 sm:%s933_s21]   ;;  %v931_v51 = vsel %vm130_vm1, %v1617_v49, %v926_v48  ;;  %v1625_v59 = vld [vmem:[%s3058_s0 + $0x183] ss:$16 sm:%s966_s11]   ;;  %s992_s21 = smov 12  ;;  %s1134_s11 = smov 48 }
  0x59   :  { %869 = vrot.lane.b32.xlu0 %v868_v47, %s1729_s22  ;;  %v1610_v52 = vld [vmem:[%s3058_s0 + $0xb] ss:$16 sm:%s897_s25]   ;;  %v936_v53 = vsel %vm135_vm2, %v1618_v50, %v931_v51  ;;  %s1208_s25 = smov 192 }
  0x5a   :  { %v1611_v54 = vld [vmem:[%s3058_s0 + $0xb] ss:$16 sm:%s900_s30]   ;;  %937 = vrot.lane.b32.xlu1 %v936_v53, %s1729_s22  ;;  %s1276_s30 = smov 192 }
  0x5b   :  { %v1612_v55 = vld [vmem:[%s3058_s0 + $0xb] ss:$16 sm:%s905_s2]   ;;  %v903_v56 = vsel %vm125_vm0, %v1611_v54, %v1610_v52  ;;  %v1626_v60 = vld [vmem:[%s3058_s0 + $0x183] ss:$16 sm:%s969_s12]   ;;  %s1057_s2 = smov 3 }
  0x5c   :  { %v1613_v57 = vld [vmem:[%s3058_s0 + $0xb] ss:$16 sm:%s910_s7]   ;;  %v908_v58 = vsel %vm130_vm1, %v1612_v55, %v903_v56  ;;  %v972_v62 = vsel %vm125_vm0, %v1626_v60, %v1625_v59  ;;  %v1627_v63 = vld [vmem:[%s3058_s0 + $0x183] ss:$16 sm:%s974_s17]   ;;  %s1015_s7 = smov 12  ;;  %s989_s17 = smov 3 }
  0x5d   :  { %v913_v61 = vsel %vm135_vm2, %v1613_v57, %v908_v58  ;;  %v1628_v0 = vld [vmem:[%s3058_s0 + $0x183] ss:$16 sm:%s979_s15]   ;;  %v977_v1 = vsel %vm130_vm1, %v1627_v63, %v972_v62  ;;  %v1635_v9 = vld [vmem:[%s3058_s0 + $0x18b] ss:$16 sm:%s1012_s5]   ;;  %s1038_s15 = smov 12 }
  0x5e   :  { %914 = vrot.lane.b32.xlu0 %v913_v61, %s1729_s22  ;;  %v1620_v2 = vld [vmem:[%s3058_s0 + $0x83] ss:$16 sm:%s943_s20]   ;;  %v982_v3 = vsel %vm135_vm2, %v1628_v0, %v977_v1  ;;  %s1203_s20 = smov 48  ;;  %v1421_v0 = vld [vmem:[%s3058_s0 + $0x100] ss:$8 sm:$0xf]  }
  0x5f   :  { %v1621_v4 = vld [vmem:[%s3058_s0 + $0x83] ss:$16 sm:%s946_s26]   ;;  %983 = vrot.lane.b32.xlu1 %v982_v3, %s1729_s22  ;;  %s1103_s26 = smov 3 }
  0x60   :  { %v1622_v5 = vld [vmem:[%s3058_s0 + $0x83] ss:$16 sm:%s951_s28]   ;;  %v949_v6 = vsel %vm125_vm0, %v1621_v4, %v1620_v2  ;;  %v1636_v10 = vld [vmem:[%s3058_s0 + $0x18b] ss:$16 sm:%s1015_s7]   ;;  %s1106_s28 = smov 12  ;;  %s1335_s7 = smov 12 }
  0x61   :  { %v1623_v7 = vld [vmem:[%s3058_s0 + $0x83] ss:$16 sm:%s956_s3]   ;;  %v954_v8 = vsel %vm130_vm1, %v1622_v5, %v949_v6  ;;  %v1018_v12 = vsel %vm125_vm0, %v1636_v10, %v1635_v9  ;;  %v1637_v13 = vld [vmem:[%s3058_s0 + $0x18b] ss:$16 sm:%s1020_s10]   ;;  %s1060_s3 = smov 12  ;;  %s1035_s10 = smov 3 }
  0x62   :  { %v959_v11 = vsel %vm135_vm2, %v1623_v7, %v954_v8  ;;  %v1638_v14 = vld [vmem:[%s3058_s0 + $0x18b] ss:$16 sm:%s1025_s13]   ;;  %v1023_v15 = vsel %vm130_vm1, %v1637_v13, %v1018_v12  ;;  %v1644_v23 = vld [vmem:[%s3058_s0 + $0x102] ss:$16 sm:%s1057_s2]   ;;  %s1083_s13 = smov 12  ;;  %s1294_s2 = smov 48 }
  0x63   :  { %960 = vrot.lane.b32.xlu0 %v959_v11, %s1729_s22  ;;  %v1630_v16 = vld [vmem:[%s3058_s0 + $0x8b] ss:$16 sm:%s989_s17]   ;;  %v1028_v17 = vsel %vm135_vm2, %v1638_v14, %v1023_v15  ;;  %s1195_s17 = smov 3  ;;  %v1422_v10 = vld [vmem:[%s3058_s0 + $0x100] ss:$8 sm:$0xf0]  }
  0x64   :  { %v1631_v18 = vld [vmem:[%s3058_s0 + $0x8b] ss:$16 sm:%s992_s21]   ;;  %1029 = vrot.lane.b32.xlu1 %v1028_v17, %s1729_s22  ;;  %v64_v14 = vsel %vm4_vm3, %v1422_v10, %v1421_v0  ;;  %s1231_s21 = smov 192 }
  0x65   :  { %v1632_v19 = vld [vmem:[%s3058_s0 + $0x8b] ss:$16 sm:%s997_s23]   ;;  %v995_v20 = vsel %vm125_vm0, %v1631_v18, %v1630_v16  ;;  %v1645_v24 = vld [vmem:[%s3058_s0 + $0x102] ss:$16 sm:%s1060_s3]   ;;  %s1111_s3 = smov 48  ;;  %s1149_s23 = smov 3 }
  0x66   :  { %v1633_v21 = vld [vmem:[%s3058_s0 + $0x8b] ss:$16 sm:%s1002_s29]   ;;  %v1000_v22 = vsel %vm130_vm1, %v1632_v19, %v995_v20  ;;  %v1063_v26 = vsel %vm125_vm0, %v1645_v24, %v1644_v23  ;;  %v1646_v27 = vld [vmem:[%s3058_s0 + $0x102] ss:$16 sm:%s1065_s8]   ;;  %s1080_s8 = smov 3  ;;  %s1157_s29 = smov 48 }
  0x67   :  { %v1005_v25 = vsel %vm135_vm2, %v1633_v21, %v1000_v22  ;;  %v1647_v28 = vld [vmem:[%s3058_s0 + $0x102] ss:$16 sm:%s1070_s9]   ;;  %v1068_v29 = vsel %vm130_vm1, %v1646_v27, %v1063_v26  ;;  %v1654_v37 = vld [vmem:[%s3058_s0 + $0x10a] ss:$16 sm:%s1103_s26]   ;;  %s1129_s9 = smov 12  ;;  %s1172_s26 = smov 3 }
  0x68   :  { %1006 = vrot.lane.b32.xlu0 %v1005_v25, %s1729_s22  ;;  %v1640_v30 = vld [vmem:[%s3058_s0 + $0x2] ss:$16 sm:%s1035_s10]   ;;  %v1073_v31 = vsel %vm135_vm2, %v1647_v28, %v1068_v29  ;;  %s1248_s22 = smov 48  ;;  %1423 = vst.msk [vmem:[%s3059_s1 + $0x20] ss:$8 sm:$0x3] %vm6_vm4, %v64_v14  }
  0x69   :  { %v1641_v32 = vld [vmem:[%s3058_s0 + $0x2] ss:$16 sm:%s1038_s15]   ;;  %1074 = vrot.lane.b32.xlu1 %v1073_v31, %s1730_s6  ;;  %s1243_s15 = smov 12  ;;  %1424 = vst.msk [vmem:[%s3059_s1 + $0x11] ss:$8 sm:$0xc] %vm6_vm4, %v64_v14  }
  0x6a   :  { %v1642_v33 = vld [vmem:[%s3058_s0 + $0x2] ss:$16 sm:%s1043_s18]   ;;  %v1041_v34 = vsel %vm125_vm0, %v1641_v32, %v1640_v30  ;;  %v1655_v38 = vld [vmem:[%s3058_s0 + $0x10a] ss:$16 sm:%s1106_s28]   ;;  %s1355_s28 = smov 3 }
  0x6b   :  { %v1643_v35 = vld [vmem:[%s3058_s0 + $0x2] ss:$16 sm:%s1048_s24]   ;;  %v1046_v36 = vsel %vm130_vm1, %v1642_v33, %v1041_v34  ;;  %v1109_v40 = vsel %vm125_vm0, %v1655_v38, %v1654_v37  ;;  %v1656_v41 = vld [vmem:[%s3058_s0 + $0x10a] ss:$16 sm:%s1111_s3]   ;;  %s1152_s24 = smov 12  ;;  %s1126_s3 = smov 3 }
  0x6c   :  { %v1051_v39 = vsel %vm135_vm2, %v1643_v35, %v1046_v36  ;;  %v1657_v42 = vld [vmem:[%s3058_s0 + $0x10a] ss:$16 sm:%s1116_s4]   ;;  %v1114_v43 = vsel %vm130_vm1, %v1656_v41, %v1109_v40  ;;  %v1664_v51 = vld [vmem:[%s3058_s0 + $0x182] ss:$16 sm:%s1149_s23]   ;;  %s1286_s23 = smov 3  ;;  %s1731_s4 = smov 16  }
  0x6d   :  { %1052 = vrot.lane.b32.xlu0 %v1051_v39, %s1730_s6  ;;  %v1649_v44 = vld [vmem:[%s3058_s0 + $0xa] ss:$16 sm:%s1080_s8]   ;;  %v1119_v45 = vsel %vm135_vm2, %v1657_v42, %v1114_v43  ;;  %s1180_s8 = smov 48  ;;  %1425 = vst.msk [vmem:[%s3059_s1 + $0x2] ss:$8 sm:$0x30] %vm6_vm4, %v64_v14  }
  0x6e   :  { %v1650_v46 = vld [vmem:[%s3058_s0 + $0xa] ss:$16 sm:%s1083_s13]   ;;  %1120 = vrot.lane.b32.xlu1 %v1119_v45, %s1730_s6  ;;  %1426 = vst.msk [vmem:[%s3059_s1 - $0xd] ss:$8 sm:$0xc0] %vm6_vm4, %v64_v14   ;;  %s1322_s13 = smov 192 }
  0x6f   :  { %v1651_v47 = vld [vmem:[%s3058_s0 + $0xa] ss:$16 sm:%s1088_s14]   ;;  %v1086_v48 = vsel %vm125_vm0, %v1650_v46, %v1649_v44  ;;  %v1665_v52 = vld [vmem:[%s3058_s0 + $0x182] ss:$16 sm:%s1152_s24]   ;;  %s1240_s14 = smov 3  ;;  %s1271_s24 = smov 48 }
  0x70   :  { %v1652_v49 = vld [vmem:[%s3058_s0 + $0xa] ss:$16 sm:%s1093_s19]   ;;  %v1091_v50 = vsel %vm130_vm1, %v1651_v47, %v1086_v48  ;;  %v1155_v54 = vsel %vm125_vm0, %v1665_v52, %v1664_v51  ;;  %v1666_v55 = vld [vmem:[%s3058_s0 + $0x182] ss:$16 sm:%s1157_s29]   ;;  %s1198_s19 = smov 12  ;;  %s1218_s29 = smov 3 }
  0x71   :  { %v1096_v53 = vsel %vm135_vm2, %v1652_v49, %v1091_v50  ;;  %v1667_v56 = vld [vmem:[%s3058_s0 + $0x182] ss:$16 sm:%s1162_s27]   ;;  %v1160_v57 = vsel %vm130_vm1, %v1666_v55, %v1155_v54  ;;  %s1175_s27 = smov 12  ;;  %v1674_v2 = vld [vmem:[%s3058_s0 + $0x18a] ss:$16 sm:%s1195_s17]   ;;  %s1226_s17 = smov 48 }
  0x72   :  { %1097 = vrot.lane.b32.xlu0 %v1096_v53, %s1730_s6  ;;  %v1659_v58 = vld [vmem:[%s3058_s0 + $0x82] ss:$16 sm:%s1126_s3]   ;;  %v1165_v59 = vsel %vm135_vm2, %v1667_v56, %v1160_v57  ;;  %v1427_v18 = vld [vmem:[%s3058_s0 + $0x140] ss:$8 sm:$0xf]   ;;  %s1299_s3 = smov 192 }
  0x73   :  { %v1660_v60 = vld [vmem:[%s3058_s0 + $0x82] ss:$16 sm:%s1129_s9]   ;;  %1166 = vrot.lane.b32.xlu1 %v1165_v59, %s1730_s6  ;;  %s1185_s9 = smov 192  ;;  %v1428_v29 = vld [vmem:[%s3058_s0 + $0x140] ss:$8 sm:$0xf0]  }
  0x74   :  { %v1661_v61 = vld [vmem:[%s3058_s0 + $0x82] ss:$16 sm:%s1134_s11]   ;;  %v1132_v62 = vsel %vm125_vm0, %v1660_v60, %v1659_v58  ;;  %v1675_v3 = vld [vmem:[%s3058_s0 + $0x18a] ss:$16 sm:%s1198_s19]   ;;  %v79_v34 = vsel %vm4_vm3, %v1428_v29, %v1427_v18 }
  0x75   :  { %v1662_v63 = vld [vmem:[%s3058_s0 + $0x82] ss:$16 sm:%s1139_s16]   ;;  %v1137_v1 = vsel %vm130_vm1, %v1661_v61, %v1132_v62  ;;  %v1201_v5 = vsel %vm125_vm0, %v1675_v3, %v1674_v2  ;;  %v1676_v6 = vld [vmem:[%s3058_s0 + $0x18a] ss:$16 sm:%s1203_s20]   ;;  %s1221_s16 = smov 12  ;;  %s1309_s20 = smov 3 }
  0x76   :  { %v1142_v4 = vsel %vm135_vm2, %v1662_v63, %v1137_v1  ;;  %v1677_v7 = vld [vmem:[%s3058_s0 + $0x18a] ss:$16 sm:%s1208_s25]   ;;  %v1206_v8 = vsel %vm130_vm1, %v1676_v6, %v1201_v5  ;;  %s1253_s25 = smov 192  ;;  %v1683_v20 = vld [vmem:[%s3058_s0 + $0x101] ss:$16 sm:%s1240_s14]   ;;  %s1378_s14 = smov 3 }
  0x77   :  { %1143 = vrot.lane.b32.xlu0 %v1142_v4, %s1730_s6  ;;  %v1669_v9 = vld [vmem:[%s3058_s0 + $0x8a] ss:$16 sm:%s1172_s26]   ;;  %v1211_v11 = vsel %vm135_vm2, %v1677_v7, %v1206_v8  ;;  %1429 = vst.msk [vmem:[%s3059_s1 + $0x24] ss:$8 sm:$0x3] %vm6_vm4, %v79_v34  }
  0x78   :  { %v1670_v12 = vld [vmem:[%s3058_s0 + $0x8a] ss:$16 sm:%s1175_s27]   ;;  %1212 = vrot.lane.b32.xlu1 %v1211_v11, %s1730_s6  ;;  %v2514_v17 = vpop.permute.xlu1 %182   ;;  %1430 = vst.msk [vmem:[%s3059_s1 + $0x15] ss:$8 sm:$0xc] %vm6_vm4, %v79_v34  }
  0x79   :  { %v1671_v13 = vld [vmem:[%s3058_s0 + $0x8a] ss:$16 sm:%s1180_s8]   ;;  %v1178_v15 = vsel %vm125_vm0, %v1670_v12, %v1669_v9  ;;  %v1684_v21 = vld [vmem:[%s3058_s0 + $0x101] ss:$16 sm:%s1243_s15]   ;;  %s1263_s8 = smov 3  ;;  %s1345_s15 = smov 192 }
  0x7a   :  { %v1672_v16 = vld [vmem:[%s3058_s0 + $0x8a] ss:$16 sm:%s1185_s9]   ;;  %v1183_v19 = vsel %vm130_vm1, %v1671_v13, %v1178_v15  ;;  %v1246_v23 = vsel %vm125_vm0, %v1684_v21, %v1683_v20  ;;  %v1685_v24 = vld [vmem:[%s3058_s0 + $0x101] ss:$16 sm:%s1248_s22]   ;;  %v2550_v26 = vpop.permute.xlu0 %137   ;;  %s1289_s22 = smov 12 }
  0x7b   :  { %v1188_v22 = vsel %vm135_vm2, %v1672_v16, %v1183_v19  ;;  %v1686_v25 = vld [vmem:[%s3058_s0 + $0x101] ss:$16 sm:%s1253_s25]   ;;  %v1251_v27 = vsel %vm130_vm1, %v1685_v24, %v1246_v23  ;;  %1431 = vst.msk [vmem:[%s3059_s1 + $0x6] ss:$8 sm:$0x30] %vm6_vm4, %v79_v34  }
  0x7c   :  { %1189 = vrot.lane.b32.xlu0 %v1188_v22, %s1730_s6  ;;  %v1679_v28 = vld [vmem:[%s3058_s0 + $0x1] ss:$16 sm:%s1218_s29]   ;;  %v1256_v30 = vsel %vm135_vm2, %v1686_v25, %v1251_v27  ;;  %1432 = vst.msk [vmem:[%s3059_s1 - $0x9] ss:$8 sm:$0xc0] %vm6_vm4, %v79_v34   ;;  %s1266_s6 = smov 12 }
  0x7d   :  { %v1680_v31 = vld [vmem:[%s3058_s0 + $0x1] ss:$16 sm:%s1221_s16]   ;;  %v206_v33 = vpop.permute.xlu1 %205   ;;  %1257 = vrot.lane.b32.xlu1 %v1256_v30, %s1731_s4  ;;  %v2_v37 = vld [vmem:[%s3058_s0] ss:$8 sm:$0xf]   ;;  %s1358_s16 = smov 12 }
  0x7e   :  { %v1681_v32 = vld [vmem:[%s3058_s0 + $0x1] ss:$16 sm:%s1226_s17]   ;;  %v1224_v35 = vsel %vm125_vm0, %v1680_v31, %v1679_v28  ;;  %v1693_v39 = vld [vmem:[%s3058_s0 + $0x109] ss:$16 sm:%s1286_s23]   ;;  %s1340_s17 = smov 48 }
  0x7f   :  { %v1682_v36 = vld [vmem:[%s3058_s0 + $0x1] ss:$16 sm:%s1231_s21]   ;;  %v1229_v38 = vsel %vm130_vm1, %v1681_v32, %v1224_v35  ;;  %v1694_v40 = vld [vmem:[%s3058_s0 + $0x109] ss:$16 sm:%s1289_s22]   ;;  %v160_v45 = vpop.permute.xlu0 %159   ;;  %s1391_s22 = smov 192 }
  0x80   :  { %1463 = vst.msk [vmem:[%s3059_s1 + $0x28] sm:$0xff] %vm139_vm5, %v206_v33   ;;  %v1234_v41 = vsel %vm135_vm2, %v1682_v36, %v1229_v38  ;;  %v1292_v42 = vsel %vm125_vm0, %v1694_v40, %v1693_v39  ;;  %v1695_v43 = vld [vmem:[%s3058_s0 + $0x109] ss:$16 sm:%s1294_s2]   ;;  %s1332_s2 = smov 3  ;;  %1453 = vst.msk [vmem:[%s3059_s1 + $0x20] sm:$0xff] %vm139_vm5, %v160_v45  }
  0x81   :  { %v1696_v44 = vld [vmem:[%s3058_s0 + $0x109] ss:$16 sm:%s1299_s3]   ;;  %1235 = vrot.lane.b32.xlu0 %v1234_v41, %s1731_s4  ;;  %v1297_v46 = vsel %vm130_vm1, %v1695_v43, %v1292_v42  ;;  %v3_v48 = vld [vmem:[%s3058_s0] ss:$8 sm:$0xf0]  }
  0x82   :  { %v1688_v47 = vld [vmem:[%s3058_s0 + $0x9] ss:$16 sm:%s1263_s8]   ;;  %v1302_v49 = vsel %vm135_vm2, %v1696_v44, %v1297_v46  ;;  %v5_v53 = vsel %vm4_vm3, %v3_v48, %v2_v37  ;;  %v1403_v56 = vld [vmem:[%s3058_s0 + $0x40] ss:$8 sm:$0xf]   ;;  %s1317_s8 = smov 48 }
  0x83   :  { %v1689_v50 = vld [vmem:[%s3058_s0 + $0x9] ss:$16 sm:%s1266_s6]   ;;  %v2630_v52 = vpop.permute.xlu1 %251   ;;  %1303 = vrot.lane.b32.xlu1 %v1302_v49, %s1731_s4  ;;  %7 = vst.msk [vmem:[%s3059_s1] ss:$8 sm:$0x3] %vm6_vm4, %v5_v53  }
  0x84   :  { %v1690_v51 = vld [vmem:[%s3058_s0 + $0x9] ss:$16 sm:%s1271_s24]   ;;  %v1269_v54 = vsel %vm125_vm0, %v1689_v50, %v1688_v47  ;;  %1400 = vst.msk [vmem:[%s3059_s1 - $0xf] ss:$8 sm:$0xc] %vm6_vm4, %v5_v53   ;;  %s1386_s24 = smov 48 }
  0x85   :  { %v1691_v55 = vld [vmem:[%s3058_s0 + $0x9] ss:$16 sm:%s1276_s30]   ;;  %1401 = vst.msk [vmem:[%s3059_s1 - $0x1e] ss:$8 sm:$0x30] %vm6_vm4, %v5_v53   ;;  %v1274_v57 = vsel %vm130_vm1, %v1690_v51, %v1269_v54 }
  0x86   :  { %1402 = vst.msk [vmem:[%s3059_s1 - $0x2d] ss:$8 sm:$0xc0] %vm6_vm4, %v5_v53   ;;  %v1703_v58 = vld [vmem:[%s3058_s0 + $0x181] ss:$16 sm:%s1332_s2]   ;;  %v1279_v60 = vsel %vm135_vm2, %v1691_v55, %v1274_v57 }
  0x87   :  { %v1704_v59 = vld [vmem:[%s3058_s0 + $0x181] ss:$16 sm:%s1335_s7]   ;;  %s1312_s7 = smov 12  ;;  %v2672_v0 = vpop.permute.xlu0 %228   ;;  %1280 = vrot.lane.b32.xlu0 %v1279_v60, %s1731_s4  ;;  %v1404_v3 = vld [vmem:[%s3058_s0 + $0x40] ss:$8 sm:$0xf0]   ;;  %v298_v7 = vpop.permute.xlu1 %297  }
  0x88   :  { %v1338_v61 = vsel %vm125_vm0, %v1704_v59, %v1703_v58  ;;  %v1705_v62 = vld [vmem:[%s3058_s0 + $0x181] ss:$16 sm:%s1340_s17]   ;;  %v19_v8 = vsel %vm4_vm3, %v1404_v3, %v1403_v56  ;;  %v1433_v11 = vld [vmem:[%s3058_s0 + $0x180] ss:$8 sm:$0xf]   ;;  %s1363_s17 = smov 48 }
  0x89   :  { %v1706_v63 = vld [vmem:[%s3058_s0 + $0x181] ss:$16 sm:%s1345_s15]   ;;  %v1343_v1 = vsel %vm130_vm1, %v1705_v62, %v1338_v61  ;;  %s1381_s15 = smov 12  ;;  %1405 = vst.msk [vmem:[%s3059_s1 + $0x4] ss:$8 sm:$0x3] %vm6_vm4, %v19_v8  }
  0x8a   :  { %v1698_v2 = vld [vmem:[%s3058_s0 + $0x81] ss:$16 sm:%s1309_s20]   ;;  %v1348_v4 = vsel %vm135_vm2, %v1706_v63, %v1343_v1  ;;  %1406 = vst.msk [vmem:[%s3059_s1 - $0xb] ss:$8 sm:$0xc] %vm6_vm4, %v19_v8  }
  0x8b   :  { %v1699_v5 = vld [vmem:[%s3058_s0 + $0x81] ss:$16 sm:%s1312_s7]   ;;  %1349 = vrot.lane.b32.xlu1 %v1348_v4, %s1731_s4  ;;  %1407 = vst.msk [vmem:[%s3059_s1 - $0x1a] ss:$8 sm:$0x30] %vm6_vm4, %v19_v8   ;;  %v275_v19 = vpop.permute.xlu0 %274  }
  0x8c   :  { %v1700_v6 = vld [vmem:[%s3058_s0 + $0x81] ss:$16 sm:%s1317_s8]   ;;  %v1315_v9 = vsel %vm125_vm0, %v1699_v5, %v1698_v2  ;;  %1408 = vst.msk [vmem:[%s3059_s1 - $0x29] ss:$8 sm:$0xc0] %vm6_vm4, %v19_v8  }
  0x8d   :  { %v1701_v10 = vld [vmem:[%s3058_s0 + $0x81] ss:$16 sm:%s1322_s13]   ;;  %v1320_v12 = vsel %vm130_vm1, %v1700_v6, %v1315_v9  ;;  %v1713_v13 = vld [vmem:[%s3058_s0 + $0x189] ss:$16 sm:%s1378_s14]  }
  0x8e   :  { %v1714_v14 = vld [vmem:[%s3058_s0 + $0x189] ss:$16 sm:%s1381_s15]   ;;  %140 = vst.msk [vmem:[%s3059_s1] sm:$0xff] %vm139_vm5, %v2550_v26   ;;  %1458 = vst.msk [vmem:[%s3059_s1 + $0x8] sm:$0xff] %vm139_vm5, %v2514_v17   ;;  %v1325_v15 = vsel %vm135_vm2, %v1701_v10, %v1320_v12  ;;  %v343_v26 = vpop.permute.xlu1 %342  }
  0x8f   :  { %v1384_v16 = vsel %vm125_vm0, %v1714_v14, %v1713_v13  ;;  %v1715_v17 = vld [vmem:[%s3058_s0 + $0x189] ss:$16 sm:%s1386_s24]   ;;  %1326 = vrot.lane.b32.xlu0 %v1325_v15, %s1731_s4  ;;  %v1434_v22 = vld [vmem:[%s3058_s0 + $0x180] ss:$8 sm:$0xf0]  }
  0x90   :  { %v1716_v18 = vld [vmem:[%s3058_s0 + $0x189] ss:$16 sm:%s1391_s22]   ;;  %s1368_s22 = smov 192  ;;  %v1389_v20 = vsel %vm130_vm1, %v1715_v17, %v1384_v16  ;;  %v94_v27 = vsel %vm4_vm3, %v1434_v22, %v1433_v11  ;;  %1492 = vst.msk [vmem:[%s3059_s1 + $0x20] sm:$0xff] %vm322_vm6, %v343_v26   ;;  %v321_v35 = vpop.permute.xlu0 %320  }
  0x91   :  { %v1708_v21 = vld [vmem:[%s3058_s0 + $0x89] ss:$16 sm:%s1355_s28]   ;;  %v1394_v23 = vsel %vm135_vm2, %v1716_v18, %v1389_v20  ;;  %1435 = vst.msk [vmem:[%s3059_s1 + $0x30] ss:$8 sm:$0x3] %vm6_vm4, %v94_v27  }
  0x92   :  { %v1709_v24 = vld [vmem:[%s3058_s0 + $0x89] ss:$16 sm:%s1358_s16]   ;;  %1395 = vrot.lane.b32.xlu1 %v1394_v23, %s1731_s4  ;;  %1436 = vst.msk [vmem:[%s3059_s1 + $0x21] ss:$8 sm:$0xc] %vm6_vm4, %v94_v27   ;;  %v389_v41 = vpop.permute.xlu1 %388  }
  0x93   :  { %v1710_v25 = vld [vmem:[%s3058_s0 + $0x89] ss:$16 sm:%s1363_s17]   ;;  %v1361_v28 = vsel %vm125_vm0, %v1709_v24, %v1708_v21  ;;  %1437 = vst.msk [vmem:[%s3059_s1 + $0x12] ss:$8 sm:$0x30] %vm6_vm4, %v94_v27  }
  0x94   :  { %v1711_v29 = vld [vmem:[%s3058_s0 + $0x89] ss:$16 sm:%s1368_s22]   ;;  %1438 = vst.msk [vmem:[%s3059_s1 + $0x3] ss:$8 sm:$0xc0] %vm6_vm4, %v94_v27   ;;  %v1366_v31 = vsel %vm130_vm1, %v1710_v25, %v1361_v28  ;;  %v366_v43 = vpop.permute.xlu0 %365  }
  0x95   :  { %v1439_v30 = vld [vmem:[%s3058_s0 + $0x1c0] ss:$8 sm:$0xf]   ;;  %v1371_v34 = vsel %vm135_vm2, %v1711_v29, %v1366_v31  ;;  %323 = vst.msk [vmem:[%s3059_s1] sm:$0xff] %vm322_vm6, %v321_v35   ;;  %1502 = vst.msk [vmem:[%s3059_s1 + $0x28] sm:$0xff] %vm322_vm6, %v389_v41  }
  0x96   :  { %v1440_v32 = vld [vmem:[%s3058_s0 + $0x1c0] ss:$8 sm:$0xf0]   ;;  %1372 = vrot.lane.b32.xlu0 %v1371_v34, %s1731_s4  ;;  %1497 = vst.msk [vmem:[%s3059_s1 + $0x8] sm:$0xff] %vm322_vm6, %v366_v43   ;;  %v435_v44 = vpop.permute.xlu1 %434  }
  0x97   :  { %v1409_v33 = vld [vmem:[%s3058_s0 + $0x80] ss:$8 sm:$0xf]   ;;  %v109_v36 = vsel %vm4_vm3, %v1440_v32, %v1439_v30 }
  0x98   :  { %v1410_v37 = vld [vmem:[%s3058_s0 + $0x80] ss:$8 sm:$0xf0]   ;;  %1441 = vst.msk [vmem:[%s3059_s1 + $0x34] ss:$8 sm:$0x3] %vm6_vm4, %v109_v36  }
  0x99   :  { %v1415_v38 = vld [vmem:[%s3058_s0 + $0xc0] ss:$8 sm:$0xf]   ;;  %1442 = vst.msk [vmem:[%s3059_s1 + $0x25] ss:$8 sm:$0xc] %vm6_vm4, %v109_v36   ;;  %v34_v39 = vsel %vm4_vm3, %v1410_v37, %v1409_v33  ;;  %v412_v45 = vpop.permute.xlu0 %411  }
  0x9a   :  { %1443 = vst.msk [vmem:[%s3059_s1 + $0x16] ss:$8 sm:$0x30] %vm6_vm4, %v109_v36   ;;  %1444 = vst.msk [vmem:[%s3059_s1 + $0x7] ss:$8 sm:$0xc0] %vm6_vm4, %v109_v36   ;;  %v481_v46 = vpop.permute.xlu1 %480  }
  0x9b   :  { %v1416_v40 = vld [vmem:[%s3058_s0 + $0xc0] ss:$8 sm:$0xf0]   ;;  %1473 = vst.msk [vmem:[%s3059_s1 + $0x30] sm:$0xff] %vm139_vm5, %v2630_v52   ;;  %1483 = vst.msk [vmem:[%s3059_s1 + $0x38] sm:$0xff] %vm139_vm5, %v298_v7  }
  0x9c   :  { %1411 = vst.msk [vmem:[%s3059_s1 + $0x10] ss:$8 sm:$0x3] %vm6_vm4, %v34_v39   ;;  %1412 = vst.msk [vmem:[%s3059_s1 + $0x1] ss:$8 sm:$0xc] %vm6_vm4, %v34_v39   ;;  %v49_v42 = vsel %vm4_vm3, %v1416_v40, %v1415_v38 }
  0x9d   :  { %1413 = vst.msk [vmem:[%s3059_s1 - $0xe] ss:$8 sm:$0x30] %vm6_vm4, %v34_v39   ;;  %1414 = vst.msk [vmem:[%s3059_s1 - $0x1d] ss:$8 sm:$0xc0] %vm6_vm4, %v34_v39  }
  0x9e   :  { %1417 = vst.msk [vmem:[%s3059_s1 + $0x14] ss:$8 sm:$0x3] %vm6_vm4, %v49_v42   ;;  %1418 = vst.msk [vmem:[%s3059_s1 + $0x5] ss:$8 sm:$0xc] %vm6_vm4, %v49_v42   ;;  %v458_v47 = vpop.permute.xlu0 %457  }
  0x9f   :  { %1419 = vst.msk [vmem:[%s3059_s1 - $0xa] ss:$8 sm:$0x30] %vm6_vm4, %v49_v42   ;;  %1420 = vst.msk [vmem:[%s3059_s1 - $0x19] ss:$8 sm:$0xc0] %vm6_vm4, %v49_v42   ;;  %v526_v48 = vpop.permute.xlu1 %525  }
  0xa0   :  { %1468 = vst.msk [vmem:[%s3059_s1 + $0x10] sm:$0xff] %vm139_vm5, %v2672_v0   ;;  %1478 = vst.msk [vmem:[%s3059_s1 + $0x18] sm:$0xff] %vm139_vm5, %v275_v19  }
  0xa1   :  { %1512 = vst.msk [vmem:[%s3059_s1 + $0x30] sm:$0xff] %vm322_vm6, %v435_v44   ;;  %1507 = vst.msk [vmem:[%s3059_s1 + $0x10] sm:$0xff] %vm322_vm6, %v412_v45  }
  0xa2   :  { %1522 = vst.msk [vmem:[%s3059_s1 + $0x38] sm:$0xff] %vm322_vm6, %v481_v46   ;;  %1517 = vst.msk [vmem:[%s3059_s1 + $0x18] sm:$0xff] %vm322_vm6, %v458_v47  }
  0xa3   :  { %1531 = vst.msk [vmem:[%s3059_s1 + $0x20] sm:$0xff] %vm505_vm7, %v526_v48   ;;  %v504_v49 = vpop.permute.xlu0 %503  }
  0xa4   :  { %506 = vst.msk [vmem:[%s3059_s1] sm:$0xff] %vm505_vm7, %v504_v49   ;;  %v572_v50 = vpop.permute.xlu1 %571  }
  0xa5   :  { %1541 = vst.msk [vmem:[%s3059_s1 + $0x28] sm:$0xff] %vm505_vm7, %v572_v50  }
  0xa8   :  { %v549_v51 = vpop.permute.xlu0 %548  }
  0xa9   :  { %1536 = vst.msk [vmem:[%s3059_s1 + $0x8] sm:$0xff] %vm505_vm7, %v549_v51   ;;  %v618_v52 = vpop.permute.xlu1 %617  }
  0xaa   :  { %1551 = vst.msk [vmem:[%s3059_s1 + $0x30] sm:$0xff] %vm505_vm7, %v618_v52  }
  0xad   :  { %v595_v53 = vpop.permute.xlu0 %594  }
  0xae   :  { %1546 = vst.msk [vmem:[%s3059_s1 + $0x10] sm:$0xff] %vm505_vm7, %v595_v53   ;;  %v664_v54 = vpop.permute.xlu1 %663  }
  0xaf   :  { %1561 = vst.msk [vmem:[%s3059_s1 + $0x38] sm:$0xff] %vm505_vm7, %v664_v54  }
  0xb2   :  { %v641_v55 = vpop.permute.xlu0 %640  }
  0xb3   :  { %1556 = vst.msk [vmem:[%s3059_s1 + $0x18] sm:$0xff] %vm505_vm7, %v641_v55   ;;  %v709_v56 = vpop.permute.xlu1 %708  }
  0xb4   :  { %1570 = vst.msk [vmem:[%s3059_s1 + $0x20] sm:$0xff] %vm688_vm8, %v709_v56  }
  0xb7   :  { %v687_v57 = vpop.permute.xlu0 %686  }
  0xb8   :  { %689 = vst.msk [vmem:[%s3059_s1] sm:$0xff] %vm688_vm8, %v687_v57   ;;  %v755_v58 = vpop.permute.xlu1 %754  }
  0xb9   :  { %1580 = vst.msk [vmem:[%s3059_s1 + $0x28] sm:$0xff] %vm688_vm8, %v755_v58  }
  0xbc   :  { %v732_v59 = vpop.permute.xlu0 %731  }
  0xbd   :  { %1575 = vst.msk [vmem:[%s3059_s1 + $0x8] sm:$0xff] %vm688_vm8, %v732_v59   ;;  %v801_v60 = vpop.permute.xlu1 %800  }
  0xbe   :  { %1590 = vst.msk [vmem:[%s3059_s1 + $0x30] sm:$0xff] %vm688_vm8, %v801_v60  }
  0xc1   :  { %v778_v61 = vpop.permute.xlu0 %777  }
  0xc2   :  { %1585 = vst.msk [vmem:[%s3059_s1 + $0x10] sm:$0xff] %vm688_vm8, %v778_v61   ;;  %v847_v62 = vpop.permute.xlu1 %846  }
  0xc3   :  { %1600 = vst.msk [vmem:[%s3059_s1 + $0x38] sm:$0xff] %vm688_vm8, %v847_v62  }
  0xc6   :  { %v824_v63 = vpop.permute.xlu0 %823  }
  0xc7   :  { %1595 = vst.msk [vmem:[%s3059_s1 + $0x18] sm:$0xff] %vm688_vm8, %v824_v63   ;;  %v892_v0 = vpop.permute.xlu1 %891  }
  0xc8   :  { %1609 = vst.msk [vmem:[%s3059_s1 + $0x20] sm:$0xff] %vm871_vm9, %v892_v0  }
  0xcb   :  { %v870_v1 = vpop.permute.xlu0 %869  }
  0xcc   :  { %872 = vst.msk [vmem:[%s3059_s1] sm:$0xff] %vm871_vm9, %v870_v1   ;;  %v938_v2 = vpop.permute.xlu1 %937  }
  0xcd   :  { %1619 = vst.msk [vmem:[%s3059_s1 + $0x28] sm:$0xff] %vm871_vm9, %v938_v2  }
  0xd0   :  { %v915_v3 = vpop.permute.xlu0 %914  }
  0xd1   :  { %1614 = vst.msk [vmem:[%s3059_s1 + $0x8] sm:$0xff] %vm871_vm9, %v915_v3   ;;  %v984_v4 = vpop.permute.xlu1 %983  }
  0xd2   :  { %1629 = vst.msk [vmem:[%s3059_s1 + $0x30] sm:$0xff] %vm871_vm9, %v984_v4  }
  0xd5   :  { %v961_v5 = vpop.permute.xlu0 %960  }
  0xd6   :  { %1624 = vst.msk [vmem:[%s3059_s1 + $0x10] sm:$0xff] %vm871_vm9, %v961_v5   ;;  %v1030_v6 = vpop.permute.xlu1 %1029  }
  0xd7   :  { %1639 = vst.msk [vmem:[%s3059_s1 + $0x38] sm:$0xff] %vm871_vm9, %v1030_v6  }
  0xda   :  { %v1007_v7 = vpop.permute.xlu0 %1006  }
  0xdb   :  { %1634 = vst.msk [vmem:[%s3059_s1 + $0x18] sm:$0xff] %vm871_vm9, %v1007_v7   ;;  %v1075_v8 = vpop.permute.xlu1 %1074  }
  0xdc   :  { %1648 = vst.msk [vmem:[%s3059_s1 + $0x20] sm:$0xff] %vm1054_vm10, %v1075_v8  }
  0xdf   :  { %v1053_v9 = vpop.permute.xlu0 %1052  }
  0xe0   :  { %1055 = vst.msk [vmem:[%s3059_s1] sm:$0xff] %vm1054_vm10, %v1053_v9   ;;  %v1121_v10 = vpop.permute.xlu1 %1120  }
  0xe1   :  { %1658 = vst.msk [vmem:[%s3059_s1 + $0x28] sm:$0xff] %vm1054_vm10, %v1121_v10  }
  0xe4   :  { %v1098_v11 = vpop.permute.xlu0 %1097  }
  0xe5   :  { %1653 = vst.msk [vmem:[%s3059_s1 + $0x8] sm:$0xff] %vm1054_vm10, %v1098_v11   ;;  %v1167_v12 = vpop.permute.xlu1 %1166  }
  0xe6   :  { %1668 = vst.msk [vmem:[%s3059_s1 + $0x30] sm:$0xff] %vm1054_vm10, %v1167_v12  }
  0xe9   :  { %v1144_v13 = vpop.permute.xlu0 %1143  }
  0xea   :  { %1663 = vst.msk [vmem:[%s3059_s1 + $0x10] sm:$0xff] %vm1054_vm10, %v1144_v13   ;;  %v1213_v14 = vpop.permute.xlu1 %1212  }
  0xeb   :  { %1678 = vst.msk [vmem:[%s3059_s1 + $0x38] sm:$0xff] %vm1054_vm10, %v1213_v14  }
  0xee   :  { %v1190_v15 = vpop.permute.xlu0 %1189  }
  0xef   :  { %1673 = vst.msk [vmem:[%s3059_s1 + $0x18] sm:$0xff] %vm1054_vm10, %v1190_v15   ;;  %v1258_v16 = vpop.permute.xlu1 %1257  }
  0xf0   :  { %1687 = vst.msk [vmem:[%s3059_s1 + $0x20] sm:$0xff] %vm1237_vm11, %v1258_v16  }
  0xf3   :  { %v1236_v17 = vpop.permute.xlu0 %1235  }
  0xf4   :  { %1238 = vst.msk [vmem:[%s3059_s1] sm:$0xff] %vm1237_vm11, %v1236_v17  }
  0xf5   :  { %v1304_v18 = vpop.permute.xlu1 %1303  }
  0xf6   :  { %1697 = vst.msk [vmem:[%s3059_s1 + $0x28] sm:$0xff] %vm1237_vm11, %v1304_v18  }
  0xf9   :  { %v1281_v19 = vpop.permute.xlu0 %1280  }
  0xfa   :  { %1692 = vst.msk [vmem:[%s3059_s1 + $0x8] sm:$0xff] %vm1237_vm11, %v1281_v19  }
  0xfd   :  { %v1350_v20 = vpop.permute.xlu1 %1349  }
  0xfe   :  { %1707 = vst.msk [vmem:[%s3059_s1 + $0x30] sm:$0xff] %vm1237_vm11, %v1350_v20  }
 0x101   :  { %v1327_v21 = vpop.permute.xlu0 %1326  }
 0x102   :  { %1702 = vst.msk [vmem:[%s3059_s1 + $0x10] sm:$0xff] %vm1237_vm11, %v1327_v21  }
 0x104   :  { %v1396_v22 = vpop.permute.xlu1 %1395  }
 0x105   :  { %1717 = vst.msk [vmem:[%s3059_s1 + $0x38] sm:$0xff] %vm1237_vm11, %v1396_v22  }
 0x108   :  { %v1373_v23 = vpop.permute.xlu0 %1372  }
 0x109   :  { %1712 = vst.msk [vmem:[%s3059_s1 + $0x18] sm:$0xff] %vm1237_vm11, %v1373_v23  }

// kernel: _lambda_.18
= control target key start
LH: loop header
LB: loop body
LE: loop exit
PB: predicated region body
PF: predicated region fallthrough
CT: control target
= control target key end

     0   :  { %s755_s12 = smov 0   ;;  %s845_s0 = inlined_call_operand.vmem [shape: f32[256,16], index: 0, kind: input, shape index: {}]   ;;  %s846_s1 = inlined_call_operand.vmem [shape: bf16[16,96], index: 1, kind: input, shape index: {}]   ;;  %s847_s2 = inlined_call_operand.vmem [shape: f32[1,96], index: 2, kind: input, shape index: {}]   ;;  %s848_s3 = inlined_call_operand.vmem [shape: f32[256,96], index: 3, kind: output, shape index: {}]  }
   0x1 LB: > { %s666_s13 = sadd.s32 4294967295, %s732_s12   ;;  %p670_p0 = scmp.ge.s32.totalorder %s732_s12, 1  ;;  %s732_s12 = sphi %s755_s12, %s13_s12  }
   0x2   : > { %p138_p1 = scmp.lt.s32.totalorder %s732_s12, 3 }
   0x4   : > { %p139_p2 = pnand %p670_p0, %p138_p1 }
   0x5   : > { %v725_v0 = vld [vmem:[%s846_s1] sm:$0xff] (!%p139_p2)   ;;  %s671_s16 = sshll.u32 (!%p139_p2), %s666_s13, 4  ;;  %vm471_vm0 = vcmask (!%p139_p2), 130048   ;;  %v201_v25 = vlaneseq (!%p139_p2)  ;;  %v734_v38 = vmov (!%p139_p2), 0.0   ;;  %vm593_vm6 = vcmask (!%p139_p2), 785408  }
   0x6   : > { %142 = sbr.rel (%p139_p2) target bundleno = 247 (0xf7), region = 32  ;;  %p163_p3 = scmp.lt.s32.totalorder (!%p139_p2), %s671_s16, 31  ;;  %696 = vmatprep.subr.bf16.mxu0 (!%p139_p2), %v725_v0  ;;  %714 = vmatprep.subr.bf16.mxu1 (!%p139_p2), %v725_v0  ;;  %v675_v40 = vld [vmem:[%s847_s2] ss:$0 sm:$0xff] (!%p139_p2) }
   0x7   : > { %697 = vmatpush3.bf16.msra.mxu0 (!%p139_p2), %v725_v0  ;;  %715 = vmatpush3.bf16.msra.mxu1 (!%p139_p2), %v725_v0  ;;  %v202_v26 = vshrl.u32 (!%p139_p2), %v201_v25, 7  ;;  %v450_v52 = vmul.f32 (!%p139_p2), 0.0, %v675_v40 }
   0x9   : > { %v204_v27 = vadd.s32 (!%p139_p2), 16, %v202_v26  ;;  %v212_v28 = vadd.s32 (!%p139_p2), 80, %v202_v26  ;;  %v210_v29 = vadd.s32 (!%p139_p2), 64, %v202_v26  ;;  %v222_v32 = vand.u32 (!%p139_p2), 15, %v202_v26 }
   0xa   : > { %v208_v34 = vadd.s32 (!%p139_p2), 48, %v202_v26  ;;  %v216_v35 = vadd.s32 (!%p139_p2), 112, %v202_v26  ;;  %v206_v36 = vadd.s32 (!%p139_p2), 32, %v202_v26  ;;  %v214_v37 = vadd.s32 (!%p139_p2), 96, %v202_v26 }
   0xb   : > { %v236_v30 = vand.u32 (!%p139_p2), 15, %v204_v27  ;;  %v292_v31 = vand.u32 (!%p139_p2), 15, %v212_v28  ;;  %v278_v33 = vand.u32 (!%p139_p2), 15, %v210_v29  ;;  %vm410_vm3 = vcmp.eq.s32.totalorder (!%p139_p2), %v222_v32, 0 }
   0xc   : > { %v426_v42 = vsel (!%p139_p2), %vm410_vm3, 1.0, %v734_v38  ;;  %v264_v43 = vand.u32 (!%p139_p2), 15, %v208_v34  ;;  %v320_v45 = vand.u32 (!%p139_p2), 15, %v216_v35  ;;  %v250_v46 = vand.u32 (!%p139_p2), 15, %v206_v36 }
   0xd   : > { %s856_s16 = smov (!%p163_p3, %s671_s16), 31  ;;  %vm412_vm1 = vcmp.eq.s32.totalorder %v236_v30, 0  ;;  %vm420_vm2 = vcmp.eq.s32.totalorder %v292_v31, 0  ;;  %vm418_vm4 = vcmp.eq.s32.totalorder %v278_v33, 0  ;;  %v306_v48 = vand.u32 15, %v214_v37 }
   0xe   : > { %s672_s17 = sshll.u32 %s856_s16, 3  ;;  %v428_v39 = vsel %vm412_vm1, 1.0, %v734_v38  ;;  %v436_v41 = vsel %vm420_vm2, 1.0, %v734_v38  ;;  %v434_v44 = vsel %vm418_vm4, 1.0, %v734_v38  ;;  %v449_v50 = vmul.f32 %v675_v40, %v426_v42 }
   0xf   : > { %s166_s20 = scalar_lea.vmem %s845_s0, %s672_s17  ;;  %v451_v47 = vmul.f32 %v675_v40, %v428_v39  ;;  %v459_v49 = vmul.f32 %v675_v40, %v436_v41  ;;  %v457_v51 = vmul.f32 %v675_v40, %v434_v44  ;;  %vm416_vm5 = vcmp.eq.s32.totalorder %v264_v43, 0  ;;  %s790_s25 = scalar_lea.vmem %s848_s3, %s672_s17 }
  0x10   : > { %v175_v1 = vld [vmem:[%s166_s20] sm:$0xff]  ;;  %v176_v2 = vld [vmem:[%s166_s20 + $0x8] sm:$0xff]  ;;  %v177_v6 = vld [vmem:[%s166_s20 + $0x10] sm:$0xff]  ;;  %vm792_vm7 = vcmp.eq.s32.totalorder %v320_v45, 0  ;;  %vm796_vm8 = vcmp.eq.s32.totalorder %v250_v46, 0  ;;  %vm800_vm9 = vcmp.eq.s32.totalorder %v306_v48, 0 }
  0x11   : > { %v183_v3 = vld [vmem:[%s166_s20 + $0x40] sm:$0xff]  ;;  %v191_v4 = vpack.c.bf16 %v176_v2, %v175_v1  ;;  %v184_v5 = vld [vmem:[%s166_s20 + $0x48] sm:$0xff]  ;;  %v178_v7 = vld [vmem:[%s166_s20 + $0x18] sm:$0xff]  ;;  %v432_v0 = vsel %vm416_vm5, 1.0, %v734_v38 }
  0x12   : > { %v195_v8 = vpack.c.bf16 %v184_v5, %v183_v3  ;;  %v192_v9 = vpack.c.bf16 %v178_v7, %v177_v6  ;;  %v185_v10 = vld [vmem:[%s166_s20 + $0x50] sm:$0xff]  ;;  %v186_v11 = vld [vmem:[%s166_s20 + $0x58] sm:$0xff]  ;;  %v179_v12 = vld [vmem:[%s166_s20 + $0x20] sm:$0xff]  ;;  %v440_v5 = vsel %vm792_vm7, 1.0, %v734_v38  ;;  %v430_v6 = vsel %vm796_vm8, 1.0, %v734_v38 }
  0x13   : > { %698 = vmatprep.mubr.msk.bf16.mxu0 %vm471_vm0, %v191_v4  ;;  %v196_v13 = vpack.c.bf16 %v186_v11, %v185_v10  ;;  %v180_v14 = vld [vmem:[%s166_s20 + $0x28] sm:$0xff]  ;;  %v187_v15 = vld [vmem:[%s166_s20 + $0x60] sm:$0xff]  ;;  %v181_v19 = vld [vmem:[%s166_s20 + $0x30] sm:$0xff]  ;;  %v438_v10 = vsel %vm800_vm9, 1.0, %v734_v38 }
  0x14   : > { %v188_v16 = vld [vmem:[%s166_s20 + $0x68] sm:$0xff]  ;;  %706 = vmatprep.mubr.msk.bf16.mxu1 %vm471_vm0, %v195_v8  ;;  %699 = vmatmul.mubr.msk.bf16.vlgmr.msra.gmra.mrb[0].mxu0 %vm471_vm0, %v192_v9  ;;  %v193_v17 = vpack.c.bf16 %v180_v14, %v179_v12  ;;  %v182_v20 = vld [vmem:[%s166_s20 + $0x38] sm:$0xff]  ;;  %v189_v21 = vld [vmem:[%s166_s20 + $0x70] sm:$0xff]  ;;  %v455_v12 = vmul.f32 %v675_v40, %v432_v0  ;;  %v453_v14 = vmul.f32 %v675_v40, %v430_v6 }
  0x15   : > { %v197_v18 = vpack.c.bf16 %v188_v16, %v187_v15  ;;  %707 = vmatmul.mubr.msk.bf16.vlgmr.msra.gmra.mrb[0].mxu1 %vm471_vm0, %v196_v13  ;;  %v190_v22 = vld [vmem:[%s166_s20 + $0x78] sm:$0xff]  ;;  %v194_v23 = vpack.c.bf16 %v182_v20, %v181_v19  ;;  %v463_v13 = vmul.f32 %v675_v40, %v440_v5  ;;  %v461_v15 = vmul.f32 %v675_v40, %v438_v10 }
  0x16   : > { %702 = vmatprep.mubr.msk.bf16.mxu0 %vm471_vm0, %v193_v17  ;;  %v198_v24 = vpack.c.bf16 %v190_v22, %v189_v21 }
  0x17   : > { %710 = vmatprep.mubr.msk.bf16.mxu1 %vm471_vm0, %v197_v18 }
  0x1c   : > { %703 = vmatmul.mubr.msk.bf16.gmra.mrb[4].mxu0 %vm471_vm0, %v194_v23 }
  0x1d   : > { %711 = vmatmul.mubr.msk.bf16.gmra.mrb[4].mxu1 %vm471_vm0, %v198_v24 }
  0xe7   : > { %v700_v53 = vpop.f32.mrb[0].mxu0 }
  0xe8   : > { %v539_v56 = vadd.f32 %v700_v53, %v451_v47  ;;  %v708_v57 = vpop.f32.mrb[0].mxu1  ;;  %v530_v58 = vpop.f32.mrb[1].mxu0 }
  0xe9   : > { %v571_v60 = vadd.f32 %v708_v57, %v459_v49  ;;  %v531_v61 = vadd.f32 %v530_v58, %v449_v50  ;;  %v562_v62 = vpop.f32.mrb[1].mxu1  ;;  %v701_v63 = vpop.f32.mrb[2].mxu0 }
  0xea   : > { %596 = vst.msk [vmem:[%s790_s25 + $0x10] sm:$0xff] %vm593_vm6, %v539_v56  ;;  %v563_v1 = vadd.f32 %v562_v62, %v457_v51  ;;  %v542_v2 = vadd.f32 %v701_v63, %v450_v52  ;;  %v709_v3 = vpop.f32.mrb[2].mxu1  ;;  %v533_v4 = vpop.f32.mrb[3].mxu0 }
  0xeb   : > { %604 = vst.msk [vmem:[%s790_s25 + $0x50] sm:$0xff] %vm593_vm6, %v571_v60  ;;  %594 = vst.msk [vmem:[%s790_s25] sm:$0xff] %vm593_vm6, %v531_v61  ;;  %v574_v7 = vadd.f32 %v709_v3, %v450_v52  ;;  %v534_v8 = vadd.f32 %v533_v4, %v450_v52  ;;  %v565_v9 = vpop.f32.mrb[3].mxu1 }
  0xec   : > { %602 = vst.msk [vmem:[%s790_s25 + $0x40] sm:$0xff] %vm593_vm6, %v563_v1  ;;  %597 = vst.msk [vmem:[%s790_s25 + $0x18] sm:$0xff] %vm593_vm6, %v542_v2  ;;  %v566_v11 = vadd.f32 %v565_v9, %v450_v52 }
  0xed   : > { %605 = vst.msk [vmem:[%s790_s25 + $0x58] sm:$0xff] %vm593_vm6, %v574_v7  ;;  %595 = vst.msk [vmem:[%s790_s25 + $0x8] sm:$0xff] %vm593_vm6, %v534_v8 }
  0xee   : > { %603 = vst.msk [vmem:[%s790_s25 + $0x48] sm:$0xff] %vm593_vm6, %v566_v11 }
  0xef   : > { %v704_v16 = vpop.f32.mrb[4].mxu0 }
  0xf0   : > { %v555_v17 = vadd.f32 %v704_v16, %v455_v12  ;;  %v712_v18 = vpop.f32.mrb[4].mxu1  ;;  %v546_v19 = vpop.f32.mrb[5].mxu0 }
  0xf1   : > { %v587_v20 = vadd.f32 %v712_v18, %v463_v13  ;;  %v547_v21 = vadd.f32 %v546_v19, %v453_v14  ;;  %v578_v22 = vpop.f32.mrb[5].mxu1  ;;  %v705_v23 = vpop.f32.mrb[6].mxu0 }
  0xf2   : > { %600 = vst.msk [vmem:[%s790_s25 + $0x30] sm:$0xff] %vm593_vm6, %v555_v17  ;;  %v579_v24 = vadd.f32 %v578_v22, %v461_v15  ;;  %v558_v25 = vadd.f32 %v705_v23, %v450_v52  ;;  %v713_v26 = vpop.f32.mrb[6].mxu1  ;;  %v549_v27 = vpop.f32.mrb[7].mxu0 }
  0xf3   : > { %608 = vst.msk [vmem:[%s790_s25 + $0x70] sm:$0xff] %vm593_vm6, %v587_v20  ;;  %598 = vst.msk [vmem:[%s790_s25 + $0x20] sm:$0xff] %vm593_vm6, %v547_v21  ;;  %v590_v28 = vadd.f32 %v713_v26, %v450_v52  ;;  %v550_v29 = vadd.f32 %v549_v27, %v450_v52  ;;  %v581_v30 = vpop.f32.mrb[7].mxu1 }
  0xf4   : > { %606 = vst.msk [vmem:[%s790_s25 + $0x60] sm:$0xff] %vm593_vm6, %v579_v24  ;;  %601 = vst.msk [vmem:[%s790_s25 + $0x38] sm:$0xff] %vm593_vm6, %v558_v25  ;;  %v582_v31 = vadd.f32 %v581_v30, %v450_v52 }
  0xf5   : > { %609 = vst.msk [vmem:[%s790_s25 + $0x78] sm:$0xff] %vm593_vm6, %v590_v28  ;;  %599 = vst.msk [vmem:[%s790_s25 + $0x28] sm:$0xff] %vm593_vm6, %v550_v29 }
  0xf6   : > { %607 = vst.msk [vmem:[%s790_s25 + $0x68] sm:$0xff] %vm593_vm6, %v582_v31 }
  0xf7 PF: > { %s13_s12 = sadd.s32 1, %s732_s12  }
  0xf8   : > { %p10_p4 = scmp.ge.s32.totalorder %s13_s12, 4  }
  0xfa   :  { %12 = sbr.rel (!%p10_p4) target bundleno = 1 (0x1), region = 62 }

// kernel: _lambda_.19
= control target key start
LH: loop header
LB: loop body
LE: loop exit
PB: predicated region body
PF: predicated region fallthrough
CT: control target
= control target key end

     0   :  { %s767_s21 = smov 0   ;;  %s769_s22 = smov 0   ;;  %s824_s0 = inlined_call_operand.vmem [shape: f32[4,8,256], index: 0, kind: input, shape index: {}]   ;;  %s825_s1 = inlined_call_operand.vmem [shape: f32[4,8,256], index: 1, kind: input, shape index: {}]   ;;  %s826_s2 = inlined_call_operand.vmem [shape: f32[4,8,256], index: 2, kind: input, shape index: {}]   ;;  %s827_s3 = inlined_call_operand.vmem [shape: f32[1,256], index: 3, kind: input, shape index: {}]   ;;  %s828_s4 = inlined_call_operand.vmem [shape: f32[1,256], index: 4, kind: input, shape index: {}]   ;;  %s829_s5 = inlined_call_operand.vmem [shape: f32[1,256], index: 5, kind: input, shape index: {}]   ;;  %s830_s6 = inlined_call_operand.vmem [shape: f32[4,8,256], index: 6, kind: output, shape index: {}]  }
   0x1   :  { %s771_s23 = smov 0  }
   0x2 LB: > { %s28_s24 = sadd.s32 1, %s725_s22  ;;  %p660_p0 = scmp.ge.s32.totalorder %s729_s23, 1  ;;  %s729_s23 = sphi %s771_s23, %s16_s23   ;;  %s725_s22 = sphi %s769_s22, %s832_s22   ;;  %s721_s21 = sphi %s767_s21, %s831_s21  }
   0x3   : > { %p30_p1 = scmp.ge.s32.totalorder %s28_s24, 4  ;;  %p252_p2 = scmp.lt.s32.totalorder %s729_s23, 5 }
   0x5   : > { %s834_s24 = smov (%p30_p1, %s28_s24), 0  ;;  %p253_p3 = pnand %p660_p0, %p252_p2 }
   0x6   : > { %p300_p4 = scmp.lt.s32.totalorder (!%p253_p3), %s721_s21, 3  ;;  %v337_v0 = vlaneseq (!%p253_p3)  ;;  %v407_v2 = vld [vmem:[%s829_s5] sm:$0x3] (!%p253_p3)  ;;  %vm472_vm0 = vcmask (!%p253_p3), 64512   ;;  %vm490_vm1 = vcmask (!%p253_p3), 1043456   ;;  %v731_v54 = vmov (!%p253_p3), 0  }
   0x7   : > { %256 = sbr.rel (%p253_p3) target bundleno = 832 (0x340), region = 44  ;;  %v351_v3 = vld [vmem:[%s828_s4] sm:$0x3] (!%p253_p3)  ;;  %529 = vmatprep.mubr.bf16.mxu1 (!%p253_p3), %v731_v54 }
   0x8   : > { %v338_v1 = vshrl.u32 (!%p253_p3), %v337_v0, 7  ;;  %v335_v6 = vld [vmem:[%s827_s3] sm:$0x3] (!%p253_p3) }
   0xa   : > { %v339_v4 = vsub.s32 (!%p253_p3), 0, %v338_v1  ;;  %v343_v5 = vsub.s32 (!%p253_p3), 1, %v338_v1 }
   0xc   : > { %v412_v9 = vrot.slane (!%p253_p3), %v407_v2, %v339_v4  ;;  %v416_v10 = vrot.slane (!%p253_p3), %v407_v2, %v343_v5  ;;  %v360_v11 = vrot.slane (!%p253_p3), %v351_v3, %v343_v5  ;;  %v356_v12 = vrot.slane (!%p253_p3), %v351_v3, %v339_v4 }
   0xd   : > { %v340_v14 = vrot.slane (!%p253_p3), %v335_v6, %v339_v4  ;;  %v344_v15 = vrot.slane (!%p253_p3), %v335_v6, %v343_v5 }
   0xe   : > { %s836_s21 = smov (!%p300_p4, %s721_s21), 3 }
   0xf   : > { %s791_s29 = sshll.u32 %s836_s21, 4 }
  0x10   : > { %s313_s10 = scalar_lea.vmem %s825_s1, %s791_s29  ;;  %s308_s13 = scalar_lea.vmem %s824_s0, %s791_s29 }
  0x11   : > { %v331_v7 = vld [vmem:[%s313_s10] sm:$0xff]  ;;  %v332_v8 = vld [vmem:[%s313_s10 + $0x8] sm:$0xff]  ;;  %s318_s16 = scalar_lea.vmem %s826_s2, %s791_s29  ;;  %s327_s19 = scalar_lea.vmem %s830_s6, %s791_s29 }
  0x12   : > { %v330_v13 = vld [vmem:[%s308_s13 + $0x8] sm:$0xff]  ;;  %v421_v16 = vmul.f32 %v412_v9, %v331_v7  ;;  %v422_v17 = vmul.f32 %v416_v10, %v332_v8  ;;  %v364_v18 = vmul.f32 %v360_v11, %v332_v8  ;;  %v363_v19 = vmul.f32 %v356_v12, %v331_v7  ;;  %v329_v20 = vld [vmem:[%s308_s13] sm:$0xff] }
  0x13   : > { %v348_v21 = vmul.f32 %v344_v15, %v330_v13  ;;  %v420_v22 = vmul.f32 %v416_v10, %v330_v13  ;;  %v419_v23 = vmul.f32 %v412_v9, %v329_v20  ;;  %v347_v32 = vmul.f32 %v340_v14, %v329_v20  ;;  %v334_v52 = vld [vmem:[%s318_s16 + $0x8] sm:$0xff]  ;;  %v333_v53 = vld [vmem:[%s318_s16] sm:$0xff] }
  0x14   : > { %v428_v24 = vmul.f32 %v421_v16, %v421_v16  ;;  %v429_v25 = vmul.f32 %v422_v17, %v422_v17  ;;  %v366_v26 = vpack.c.bf16 %v364_v18, %v364_v18  ;;  %v365_v27 = vpack.c.bf16 %v363_v19, %v363_v19 }
  0x15   : > { %v350_v28 = vpack.c.bf16 %v348_v21, %v348_v21  ;;  %v424_v29 = vmul.f32 %v420_v22, %v420_v22  ;;  %v423_v30 = vmul.f32 %v419_v23, %v419_v23  ;;  %v349_v34 = vpack.c.bf16 %v347_v32, %v347_v32 }
  0x16   : > { %v430_v31 = vadd.f32 %v429_v25, %v428_v24  ;;  %367 = vmatprep.subr.bf16.mxu0 %v366_v26  ;;  %v486_v55 = vpack.c.bf16 %v334_v52, %v334_v52  ;;  %v485_v56 = vpack.c.bf16 %v333_v53, %v333_v53 }
  0x17   : > { %368 = vmatpush1.bf16.xpose.msra.mxu0 %v365_v27  ;;  %399 = vmatprep.mubr.bf16.mxu0 %v350_v28  ;;  %v425_v33 = vadd.f32 %v424_v29, %v423_v30 }
  0x18   : > { %431 = vadd.xlane.f32.xlu0 %v430_v31  ;;  %669 = vmatprep.subr.msk.bf16.mxu1 %vm490_vm1, %v486_v55  ;;  %v492_v57 = vsel %vm490_vm1, %v485_v56, 0 }
  0x19   : > { %498 = vmatpush1.bf16.msra.mxu1 %v492_v57 }
  0x1c   : > { %426 = vadd.xlane.f32.xlu0 %v425_v33 }
  0x1e   : > { %400 = vmatmul.mubr.bf16.vlgmr.msra.gmra.mrb[0].mxu0 %v349_v34 }
  0xa5   : > { %v432_v35 = vpop.xlane.xlu0 %431 }
  0xa6   : > { %434 = vxpose.xlu1.b32.start.end [1/1] (short) (narrow) %v432_v35, 8 }
  0xa9   : > { %v427_v40 = vpop.xlane.xlu0 %426 }
  0xf1   : > { %v401_v36 = vpop.f32.mrb[0].mxu0 }
  0xf2   : > { %v403_v37 = vpop.f32.mrb[1].mxu0  ;;  %v433_v41 = vsub.f32 %v401_v36, %v427_v40 }
  0xf3   : > { %v404_v38 = vpop.f32.mrb[2].mxu0 }
  0xf4   : > { %v405_v39 = vpop.f32.mrb[3].mxu0 }
 0x126   : > { %v450_v42 = vpop.trf.xlu1 }
 0x127   : > { %v469_v43 = vrot.slane %v450_v42, %v339_v4 }
 0x129   : > { %v470_v44 = vsub.f32 %v433_v41, %v469_v43 }
 0x12b   : > { %v471_v45 = vmul.f32 0.088388346, %v470_v44 }
 0x12d   : > { %v473_v46 = vsel %vm472_vm0, %v471_v45, -inf }
 0x12e   : > { %474 = vmax.xlane.f32.xlu1 %v473_v46 }
 0x1bb   : > { %v475_v47 = vpop.xlane.xlu1 %474 }
 0x1bc   : > { %v476_v48 = vsub.f32 %v471_v45, %v475_v47 }
 0x1be   : > { %v477_v49 = vmul.f32 1.442695, %v476_v48 }
 0x1c0   : > { %703 = vpow2.f32 %v477_v49 }
 0x1ca   : > { %v704_v50 = vpop.eup %703 }
 0x1cb   : > { %v479_v51 = vsel %vm472_vm0, %v704_v50, 0.0 }
 0x1cc   : > { %480 = vadd.xlane.f32.xlu0 %v479_v51 }
 0x259   : > { %v481_v58 = vpop.xlane.xlu0 %480 }
 0x25a   : > { %705 = vrcp.f32 %v481_v58 }
 0x264   : > { %v706_v59 = vpop.eup %705 }
 0x265   : > { %v483_v60 = vmul.f32 %v706_v59, %v704_v50 }
 0x267   : > { %v484_v61 = vpack.c.bf16 %v483_v60, %v483_v60 }
 0x269   : > { %670 = vmatmul.mubr.msk.bf16.vlgmr.msra.gmra.mrb[0].mxu1 %vm472_vm0, %v484_v61 }
 0x33c   : > { %v531_v62 = vpop.f32.mrb[0].mxu1 }
 0x33d   : > { %538 = vst [vmem:[%s327_s19] sm:$0xff] %v531_v62  ;;  %v533_v63 = vpop.f32.mrb[1].mxu1 }
 0x33e   : > { %539 = vst [vmem:[%s327_s19 + $0x8] sm:$0xff] %v533_v63  ;;  %v535_v0 = vpop.f32.mrb[2].mxu1 }
 0x33f   : > { %v536_v1 = vpop.f32.mrb[3].mxu1 }
 0x340 PF: > { %s16_s23 = sadd.s32 1, %s729_s23   ;;  %s831_s21 = smov %s725_s22 }
 0x341   : > { %p13_p5 = scmp.ge.s32.totalorder %s16_s23, 6   ;;  %s832_s22 = smov %s834_s24 }
 0x343   :  { %15 = sbr.rel (!%p13_p5) target bundleno = 2 (0x2), region = 80 }

// kernel: _lambda_.20
= control target key start
LH: loop header
LB: loop body
LE: loop exit
PB: predicated region body
PF: predicated region fallthrough
CT: control target
= control target key end

     0   :  { %s870_s15 = smov 0   ;;  %s1021_s0 = inlined_call_operand.vmem [shape: f32[256,32], index: 0, kind: input, shape index: {}]   ;;  %s1022_s1 = inlined_call_operand.vmem [shape: bf16[32,16], index: 1, kind: input, shape index: {}]   ;;  %s1023_s2 = inlined_call_operand.vmem [shape: f32[1,16], index: 2, kind: input, shape index: {}]   ;;  %s1024_s3 = inlined_call_operand.vmem [shape: f32[256,16], index: 3, kind: input, shape index: {}]   ;;  %s1025_s4 = inlined_call_operand.vmem [shape: f32[256,16], index: 4, kind: output, shape index: {}]  }
   0x1 LB: > { %s767_s16 = sadd.s32 4294967295, %s842_s15   ;;  %p771_p0 = scmp.ge.s32.totalorder %s842_s15, 1  ;;  %s842_s15 = sphi %s870_s15, %s14_s15  }
   0x2   : > { %p174_p1 = scmp.lt.s32.totalorder %s842_s15, 3 }
   0x4   : > { %p175_p2 = pnand %p771_p0, %p174_p1 }
   0x5   : > { %v834_v0 = vld [vmem:[%s1022_s1] sm:$0xff] (!%p175_p2)   ;;  %s772_s19 = sshll.u32 (!%p175_p2), %s767_s16, 4  ;;  %v835_v1 = vld [vmem:[%s1022_s1 + $0x8] sm:$0xff] (!%p175_p2)   ;;  %vm528_vm0 = vcmask (!%p175_p2), 261120   ;;  %v252_v26 = vlaneseq (!%p175_p2)  ;;  %v844_v39 = vmov (!%p175_p2), 0.0   ;;  %vm682_vm9 = vcmask (!%p175_p2), 130048  }
   0x6   : > { %178 = sbr.rel (%p175_p2) target bundleno = 249 (0xf9), region = 36  ;;  %p206_p3 = scmp.lt.s32.totalorder (!%p175_p2), %s772_s19, 31  ;;  %801 = vmatprep.subr.bf16.mxu0 (!%p175_p2), %v834_v0  ;;  %821 = vmatprep.subr.bf16.mxu1 (!%p175_p2), %v834_v0  ;;  %v919_v41 = vld [vmem:[%s1023_s2] ss:$0 sm:$0xff] (!%p175_p2) }
   0x7   : > { %802 = vmatpush3.bf16.msra.mxu0 (!%p175_p2), %v834_v0  ;;  %823 = vmatpush3.bf16.msra.mxu1 (!%p175_p2), %v834_v0  ;;  %v253_v27 = vshrl.u32 (!%p175_p2), %v252_v26, 7  ;;  %v932_v53 = vmul.f32 (!%p175_p2), 0.0, %v919_v41 }
   0x8   : > { %803 = vmatprep.subr.bf16.mxu0 (!%p175_p2), %v835_v1  ;;  %822 = vmatprep.subr.bf16.mxu1 (!%p175_p2), %v835_v1 }
   0x9   : > { %v255_v28 = vadd.s32 (!%p175_p2), 16, %v253_v27  ;;  %v263_v29 = vadd.s32 (!%p175_p2), 80, %v253_v27  ;;  %v261_v30 = vadd.s32 (!%p175_p2), 64, %v253_v27  ;;  %v273_v33 = vand.u32 (!%p175_p2), 15, %v253_v27 }
   0xa   : > { %v259_v35 = vadd.s32 (!%p175_p2), 48, %v253_v27  ;;  %v267_v36 = vadd.s32 (!%p175_p2), 112, %v253_v27  ;;  %v257_v37 = vadd.s32 (!%p175_p2), 32, %v253_v27  ;;  %v265_v38 = vadd.s32 (!%p175_p2), 96, %v253_v27 }
   0xb   : > { %804 = vmatpush3.bf16.msra.mxu0 (!%p175_p2), %v835_v1  ;;  %824 = vmatpush3.bf16.msra.mxu1 (!%p175_p2), %v835_v1  ;;  %v287_v31 = vand.u32 (!%p175_p2), 15, %v255_v28  ;;  %v343_v32 = vand.u32 (!%p175_p2), 15, %v263_v29  ;;  %v329_v34 = vand.u32 (!%p175_p2), 15, %v261_v30  ;;  %vm461_vm3 = vcmp.eq.s32.totalorder (!%p175_p2), %v273_v33, 0 }
   0xc   : > { %v315_v42 = vand.u32 (!%p175_p2), 15, %v259_v35  ;;  %v477_v44 = vsel (!%p175_p2), %vm461_vm3, 1.0, %v844_v39  ;;  %v371_v45 = vand.u32 (!%p175_p2), 15, %v267_v36  ;;  %v301_v46 = vand.u32 (!%p175_p2), 15, %v257_v37 }
   0xd   : > { %s1033_s19 = smov (!%p206_p3, %s772_s19), 31  ;;  %vm463_vm1 = vcmp.eq.s32.totalorder %v287_v31, 0  ;;  %vm471_vm2 = vcmp.eq.s32.totalorder %v343_v32, 0  ;;  %vm469_vm4 = vcmp.eq.s32.totalorder %v329_v34, 0  ;;  %v357_v48 = vand.u32 15, %v265_v38 }
   0xe   : > { %s884_s22 = sshll.u32 %s1033_s19, 3  ;;  %v479_v40 = vsel %vm463_vm1, 1.0, %v844_v39  ;;  %v487_v43 = vsel %vm471_vm2, 1.0, %v844_v39  ;;  %v485_v47 = vsel %vm469_vm4, 1.0, %v844_v39  ;;  %v500_v51 = vmul.f32 %v919_v41, %v477_v44 }
   0xf   : > { %s890_s25 = scalar_lea.vmem %s1021_s0, %s884_s22  ;;  %s925_s30 = scalar_lea.vmem %s1024_s3, %s884_s22  ;;  %v502_v49 = vmul.f32 %v919_v41, %v479_v40  ;;  %v510_v50 = vmul.f32 %v919_v41, %v487_v43  ;;  %vm467_vm5 = vcmp.eq.s32.totalorder %v315_v42, 0  ;;  %v508_v52 = vmul.f32 %v919_v41, %v485_v47 }
  0x10   : > { %v224_v2 = vld [vmem:[%s890_s25] sm:$0xff]  ;;  %v225_v3 = vld [vmem:[%s890_s25 + $0x8] sm:$0xff]  ;;  %v226_v7 = vld [vmem:[%s890_s25 + $0x10] sm:$0xff]  ;;  %vm934_vm6 = vcmp.eq.s32.totalorder %v371_v45, 0  ;;  %vm938_vm7 = vcmp.eq.s32.totalorder %v301_v46, 0  ;;  %vm943_vm8 = vcmp.eq.s32.totalorder %v357_v48, 0  ;;  %s953_s7 = scalar_lea.vmem %s1025_s4, %s884_s22 }
  0x11   : > { %v232_v4 = vld [vmem:[%s890_s25 + $0x40] sm:$0xff]  ;;  %v240_v5 = vpack.c.bf16 %v225_v3, %v224_v2  ;;  %v233_v6 = vld [vmem:[%s890_s25 + $0x48] sm:$0xff]  ;;  %v227_v8 = vld [vmem:[%s890_s25 + $0x18] sm:$0xff]  ;;  %v483_v0 = vsel %vm467_vm5, 1.0, %v844_v39 }
  0x12   : > { %v244_v9 = vpack.c.bf16 %v233_v6, %v232_v4  ;;  %v241_v10 = vpack.c.bf16 %v227_v8, %v226_v7  ;;  %v234_v11 = vld [vmem:[%s890_s25 + $0x50] sm:$0xff]  ;;  %v235_v12 = vld [vmem:[%s890_s25 + $0x58] sm:$0xff]  ;;  %v228_v13 = vld [vmem:[%s890_s25 + $0x20] sm:$0xff]  ;;  %v491_v7 = vsel %vm934_vm6, 1.0, %v844_v39  ;;  %v481_v8 = vsel %vm938_vm7, 1.0, %v844_v39 }
  0x13   : > { %805 = vmatprep.mubr.msk.bf16.mxu0 %vm528_vm0, %v240_v5  ;;  %v245_v14 = vpack.c.bf16 %v235_v12, %v234_v11  ;;  %v229_v15 = vld [vmem:[%s890_s25 + $0x28] sm:$0xff]  ;;  %v236_v16 = vld [vmem:[%s890_s25 + $0x60] sm:$0xff]  ;;  %v230_v20 = vld [vmem:[%s890_s25 + $0x30] sm:$0xff]  ;;  %v506_v26 = vmul.f32 %v919_v41, %v483_v0  ;;  %v514_v29 = vmul.f32 %v919_v41, %v491_v7  ;;  %v504_v30 = vmul.f32 %v919_v41, %v481_v8 }
  0x14   : > { %v237_v17 = vld [vmem:[%s890_s25 + $0x68] sm:$0xff]  ;;  %813 = vmatprep.mubr.msk.bf16.mxu1 %vm528_vm0, %v244_v9  ;;  %806 = vmatmul.mubr.msk.bf16.vlgmr.msra.gmra.mrb[0].mxu0 %vm528_vm0, %v241_v10  ;;  %v242_v18 = vpack.c.bf16 %v229_v15, %v228_v13  ;;  %v231_v21 = vld [vmem:[%s890_s25 + $0x38] sm:$0xff]  ;;  %v238_v22 = vld [vmem:[%s890_s25 + $0x70] sm:$0xff] }
  0x15   : > { %v246_v19 = vpack.c.bf16 %v237_v17, %v236_v16  ;;  %814 = vmatmul.mubr.msk.bf16.vlgmr.msra.gmra.mrb[0].mxu1 %vm528_vm0, %v245_v14  ;;  %v239_v23 = vld [vmem:[%s890_s25 + $0x78] sm:$0xff]  ;;  %v243_v24 = vpack.c.bf16 %v231_v21, %v230_v20  ;;  %v652_v57 = vld [vmem:[%s925_s30 + $0x10] sm:$0xff]  ;;  %v650_v63 = vld [vmem:[%s925_s30] sm:$0xff]  ;;  %v489_v16 = vsel %vm943_vm8, 1.0, %v844_v39 }
  0x16   : > { %809 = vmatprep.mubr.msk.bf16.mxu0 %vm528_vm0, %v242_v18  ;;  %v247_v25 = vpack.c.bf16 %v239_v23, %v238_v22  ;;  %v660_v61 = vld [vmem:[%s925_s30 + $0x50] sm:$0xff]  ;;  %v658_v4 = vld [vmem:[%s925_s30 + $0x40] sm:$0xff]  ;;  %v653_v6 = vld [vmem:[%s925_s30 + $0x18] sm:$0xff]  ;;  %v512_v32 = vmul.f32 %v919_v41, %v489_v16 }
  0x17   : > { %817 = vmatprep.mubr.msk.bf16.mxu1 %vm528_vm0, %v246_v19  ;;  %v661_v13 = vld [vmem:[%s925_s30 + $0x58] sm:$0xff]  ;;  %v651_v15 = vld [vmem:[%s925_s30 + $0x8] sm:$0xff]  ;;  %v656_v34 = vld [vmem:[%s925_s30 + $0x30] sm:$0xff] }
  0x18   : > { %v659_v22 = vld [vmem:[%s925_s30 + $0x48] sm:$0xff]  ;;  %v664_v37 = vld [vmem:[%s925_s30 + $0x70] sm:$0xff]  ;;  %v654_v39 = vld [vmem:[%s925_s30 + $0x20] sm:$0xff] }
  0x19   : > { %v662_v41 = vld [vmem:[%s925_s30 + $0x60] sm:$0xff]  ;;  %v657_v45 = vld [vmem:[%s925_s30 + $0x38] sm:$0xff] }
  0x1c   : > { %810 = vmatmul.mubr.msk.bf16.gmra.mrb[4].mxu0 %vm528_vm0, %v243_v24 }
  0x1d   : > { %818 = vmatmul.mubr.msk.bf16.gmra.mrb[4].mxu1 %vm528_vm0, %v247_v25 }
  0xe7   : > { %v807_v56 = vpop.f32.mrb[0].mxu0 }
  0xe8   : > { %v596_v59 = vadd.f32 %v807_v56, %v502_v49  ;;  %v815_v60 = vpop.f32.mrb[0].mxu1  ;;  %v587_v62 = vpop.f32.mrb[1].mxu0 }
  0xe9   : > { %v628_v1 = vadd.f32 %v815_v60, %v510_v50  ;;  %v588_v2 = vadd.f32 %v587_v62, %v500_v51  ;;  %v619_v3 = vpop.f32.mrb[1].mxu1  ;;  %v808_v5 = vpop.f32.mrb[2].mxu0  ;;  %v665_v50 = vld [vmem:[%s925_s30 + $0x78] sm:$0xff] }
  0xea   : > { %v668_v9 = vadd.f32 %v652_v57, %v596_v59  ;;  %v620_v10 = vadd.f32 %v619_v3, %v508_v52  ;;  %v599_v11 = vadd.f32 %v808_v5, %v932_v53  ;;  %v816_v12 = vpop.f32.mrb[2].mxu1  ;;  %v590_v14 = vpop.f32.mrb[3].mxu0  ;;  %v655_v52 = vld [vmem:[%s925_s30 + $0x28] sm:$0xff] }
  0xeb   : > { %v676_v17 = vadd.f32 %v660_v61, %v628_v1  ;;  %v666_v18 = vadd.f32 %v650_v63, %v588_v2  ;;  %v631_v19 = vadd.f32 %v816_v12, %v932_v53  ;;  %v591_v20 = vadd.f32 %v590_v14, %v932_v53  ;;  %v622_v21 = vpop.f32.mrb[3].mxu1  ;;  %v663_v59 = vld [vmem:[%s925_s30 + $0x68] sm:$0xff] }
  0xec   : > { %685 = vst.msk [vmem:[%s953_s7 + $0x10] sm:$0xff] %vm682_vm9, %v668_v9  ;;  %v674_v23 = vadd.f32 %v658_v4, %v620_v10  ;;  %v669_v24 = vadd.f32 %v653_v6, %v599_v11  ;;  %v623_v25 = vadd.f32 %v622_v21, %v932_v53 }
  0xed   : > { %693 = vst.msk [vmem:[%s953_s7 + $0x50] sm:$0xff] %vm682_vm9, %v676_v17  ;;  %683 = vst.msk [vmem:[%s953_s7] sm:$0xff] %vm682_vm9, %v666_v18  ;;  %v677_v27 = vadd.f32 %v661_v13, %v631_v19  ;;  %v667_v28 = vadd.f32 %v651_v15, %v591_v20 }
  0xee   : > { %691 = vst.msk [vmem:[%s953_s7 + $0x40] sm:$0xff] %vm682_vm9, %v674_v23  ;;  %686 = vst.msk [vmem:[%s953_s7 + $0x18] sm:$0xff] %vm682_vm9, %v669_v24  ;;  %v675_v31 = vadd.f32 %v659_v22, %v623_v25 }
  0xef   : > { %694 = vst.msk [vmem:[%s953_s7 + $0x58] sm:$0xff] %vm682_vm9, %v677_v27  ;;  %684 = vst.msk [vmem:[%s953_s7 + $0x8] sm:$0xff] %vm682_vm9, %v667_v28  ;;  %v811_v33 = vpop.f32.mrb[4].mxu0 }
  0xf0   : > { %692 = vst.msk [vmem:[%s953_s7 + $0x48] sm:$0xff] %vm682_vm9, %v675_v31  ;;  %v612_v35 = vadd.f32 %v811_v33, %v506_v26  ;;  %v819_v36 = vpop.f32.mrb[4].mxu1  ;;  %v603_v38 = vpop.f32.mrb[5].mxu0 }
  0xf1   : > { %v644_v40 = vadd.f32 %v819_v36, %v514_v29  ;;  %v604_v42 = vadd.f32 %v603_v38, %v504_v30  ;;  %v635_v43 = vpop.f32.mrb[5].mxu1  ;;  %v812_v44 = vpop.f32.mrb[6].mxu0 }
  0xf2   : > { %v672_v46 = vadd.f32 %v656_v34, %v612_v35  ;;  %v636_v47 = vadd.f32 %v635_v43, %v512_v32  ;;  %v615_v48 = vadd.f32 %v812_v44, %v932_v53  ;;  %v820_v49 = vpop.f32.mrb[6].mxu1  ;;  %v606_v51 = vpop.f32.mrb[7].mxu0 }
  0xf3   : > { %v680_v54 = vadd.f32 %v664_v37, %v644_v40  ;;  %v670_v55 = vadd.f32 %v654_v39, %v604_v42  ;;  %v647_v56 = vadd.f32 %v820_v49, %v932_v53  ;;  %v607_v57 = vadd.f32 %v606_v51, %v932_v53  ;;  %v638_v58 = vpop.f32.mrb[7].mxu1 }
  0xf4   : > { %689 = vst.msk [vmem:[%s953_s7 + $0x30] sm:$0xff] %vm682_vm9, %v672_v46  ;;  %v678_v60 = vadd.f32 %v662_v41, %v636_v47  ;;  %v673_v61 = vadd.f32 %v657_v45, %v615_v48  ;;  %v639_v62 = vadd.f32 %v638_v58, %v932_v53 }
  0xf5   : > { %697 = vst.msk [vmem:[%s953_s7 + $0x70] sm:$0xff] %vm682_vm9, %v680_v54  ;;  %687 = vst.msk [vmem:[%s953_s7 + $0x20] sm:$0xff] %vm682_vm9, %v670_v55  ;;  %v681_v63 = vadd.f32 %v665_v50, %v647_v56  ;;  %v671_v0 = vadd.f32 %v655_v52, %v607_v57 }
  0xf6   : > { %695 = vst.msk [vmem:[%s953_s7 + $0x60] sm:$0xff] %vm682_vm9, %v678_v60  ;;  %690 = vst.msk [vmem:[%s953_s7 + $0x38] sm:$0xff] %vm682_vm9, %v673_v61  ;;  %v679_v1 = vadd.f32 %v663_v59, %v639_v62 }
  0xf7   : > { %698 = vst.msk [vmem:[%s953_s7 + $0x78] sm:$0xff] %vm682_vm9, %v681_v63  ;;  %688 = vst.msk [vmem:[%s953_s7 + $0x28] sm:$0xff] %vm682_vm9, %v671_v0 }
  0xf8   : > { %696 = vst.msk [vmem:[%s953_s7 + $0x68] sm:$0xff] %vm682_vm9, %v679_v1 }
  0xf9 PF: > { %s14_s15 = sadd.s32 1, %s842_s15  }
  0xfa   : > { %p11_p4 = scmp.ge.s32.totalorder %s14_s15, 4  }
  0xfc   :  { %13 = sbr.rel (!%p11_p4) target bundleno = 1 (0x1), region = 69 }

// kernel: _lambda_.23
= control target key start
LH: loop header
LB: loop body
LE: loop exit
PB: predicated region body
PF: predicated region fallthrough
CT: control target
= control target key end

     0   :  { %s755_s12 = smov 0   ;;  %s845_s0 = inlined_call_operand.vmem [shape: f32[256,16], index: 0, kind: input, shape index: {}]   ;;  %s846_s1 = inlined_call_operand.vmem [shape: bf16[16,32], index: 1, kind: input, shape index: {}]   ;;  %s847_s2 = inlined_call_operand.vmem [shape: f32[1,32], index: 2, kind: input, shape index: {}]   ;;  %s848_s3 = inlined_call_operand.vmem [shape: f32[256,32], index: 3, kind: output, shape index: {}]  }
   0x1 LB: > { %s666_s13 = sadd.s32 4294967295, %s732_s12   ;;  %p670_p0 = scmp.ge.s32.totalorder %s732_s12, 1  ;;  %s732_s12 = sphi %s755_s12, %s13_s12  }
   0x2   : > { %p138_p1 = scmp.lt.s32.totalorder %s732_s12, 3 }
   0x4   : > { %p139_p2 = pnand %p670_p0, %p138_p1 }
   0x5   : > { %v725_v0 = vld [vmem:[%s846_s1] sm:$0xff] (!%p139_p2)   ;;  %s671_s16 = sshll.u32 (!%p139_p2), %s666_s13, 4  ;;  %vm471_vm0 = vcmask (!%p139_p2), 130048   ;;  %v201_v25 = vlaneseq (!%p139_p2)  ;;  %v734_v38 = vmov (!%p139_p2), 0.0   ;;  %vm593_vm6 = vcmask (!%p139_p2), 261120  }
   0x6   : > { %142 = sbr.rel (%p139_p2) target bundleno = 247 (0xf7), region = 32  ;;  %p163_p3 = scmp.lt.s32.totalorder (!%p139_p2), %s671_s16, 31  ;;  %696 = vmatprep.subr.bf16.mxu0 (!%p139_p2), %v725_v0  ;;  %714 = vmatprep.subr.bf16.mxu1 (!%p139_p2), %v725_v0  ;;  %v675_v40 = vld [vmem:[%s847_s2] ss:$0 sm:$0xff] (!%p139_p2) }
   0x7   : > { %697 = vmatpush3.bf16.msra.mxu0 (!%p139_p2), %v725_v0  ;;  %715 = vmatpush3.bf16.msra.mxu1 (!%p139_p2), %v725_v0  ;;  %v202_v26 = vshrl.u32 (!%p139_p2), %v201_v25, 7  ;;  %v450_v52 = vmul.f32 (!%p139_p2), 0.0, %v675_v40 }
   0x9   : > { %v204_v27 = vadd.s32 (!%p139_p2), 16, %v202_v26  ;;  %v212_v28 = vadd.s32 (!%p139_p2), 80, %v202_v26  ;;  %v210_v29 = vadd.s32 (!%p139_p2), 64, %v202_v26  ;;  %v222_v32 = vand.u32 (!%p139_p2), 15, %v202_v26 }
   0xa   : > { %v208_v34 = vadd.s32 (!%p139_p2), 48, %v202_v26  ;;  %v216_v35 = vadd.s32 (!%p139_p2), 112, %v202_v26  ;;  %v206_v36 = vadd.s32 (!%p139_p2), 32, %v202_v26  ;;  %v214_v37 = vadd.s32 (!%p139_p2), 96, %v202_v26 }
   0xb   : > { %v236_v30 = vand.u32 (!%p139_p2), 15, %v204_v27  ;;  %v292_v31 = vand.u32 (!%p139_p2), 15, %v212_v28  ;;  %v278_v33 = vand.u32 (!%p139_p2), 15, %v210_v29  ;;  %vm410_vm3 = vcmp.eq.s32.totalorder (!%p139_p2), %v222_v32, 0 }
   0xc   : > { %v426_v42 = vsel (!%p139_p2), %vm410_vm3, 1.0, %v734_v38  ;;  %v264_v43 = vand.u32 (!%p139_p2), 15, %v208_v34  ;;  %v320_v45 = vand.u32 (!%p139_p2), 15, %v216_v35  ;;  %v250_v46 = vand.u32 (!%p139_p2), 15, %v206_v36 }
   0xd   : > { %s856_s16 = smov (!%p163_p3, %s671_s16), 31  ;;  %vm412_vm1 = vcmp.eq.s32.totalorder %v236_v30, 0  ;;  %vm420_vm2 = vcmp.eq.s32.totalorder %v292_v31, 0  ;;  %vm418_vm4 = vcmp.eq.s32.totalorder %v278_v33, 0  ;;  %v306_v48 = vand.u32 15, %v214_v37 }
   0xe   : > { %s672_s17 = sshll.u32 %s856_s16, 3  ;;  %v428_v39 = vsel %vm412_vm1, 1.0, %v734_v38  ;;  %v436_v41 = vsel %vm420_vm2, 1.0, %v734_v38  ;;  %v434_v44 = vsel %vm418_vm4, 1.0, %v734_v38  ;;  %v449_v50 = vmul.f32 %v675_v40, %v426_v42 }
   0xf   : > { %s166_s20 = scalar_lea.vmem %s845_s0, %s672_s17  ;;  %v451_v47 = vmul.f32 %v675_v40, %v428_v39  ;;  %v459_v49 = vmul.f32 %v675_v40, %v436_v41  ;;  %v457_v51 = vmul.f32 %v675_v40, %v434_v44  ;;  %vm416_vm5 = vcmp.eq.s32.totalorder %v264_v43, 0  ;;  %s790_s25 = scalar_lea.vmem %s848_s3, %s672_s17 }
  0x10   : > { %v175_v1 = vld [vmem:[%s166_s20] sm:$0xff]  ;;  %v176_v2 = vld [vmem:[%s166_s20 + $0x8] sm:$0xff]  ;;  %v177_v6 = vld [vmem:[%s166_s20 + $0x10] sm:$0xff]  ;;  %vm792_vm7 = vcmp.eq.s32.totalorder %v320_v45, 0  ;;  %vm796_vm8 = vcmp.eq.s32.totalorder %v250_v46, 0  ;;  %vm800_vm9 = vcmp.eq.s32.totalorder %v306_v48, 0 }
  0x11   : > { %v183_v3 = vld [vmem:[%s166_s20 + $0x40] sm:$0xff]  ;;  %v191_v4 = vpack.c.bf16 %v176_v2, %v175_v1  ;;  %v184_v5 = vld [vmem:[%s166_s20 + $0x48] sm:$0xff]  ;;  %v178_v7 = vld [vmem:[%s166_s20 + $0x18] sm:$0xff]  ;;  %v432_v0 = vsel %vm416_vm5, 1.0, %v734_v38 }
  0x12   : > { %v195_v8 = vpack.c.bf16 %v184_v5, %v183_v3  ;;  %v192_v9 = vpack.c.bf16 %v178_v7, %v177_v6  ;;  %v185_v10 = vld [vmem:[%s166_s20 + $0x50] sm:$0xff]  ;;  %v186_v11 = vld [vmem:[%s166_s20 + $0x58] sm:$0xff]  ;;  %v179_v12 = vld [vmem:[%s166_s20 + $0x20] sm:$0xff]  ;;  %v440_v5 = vsel %vm792_vm7, 1.0, %v734_v38  ;;  %v430_v6 = vsel %vm796_vm8, 1.0, %v734_v38 }
  0x13   : > { %698 = vmatprep.mubr.msk.bf16.mxu0 %vm471_vm0, %v191_v4  ;;  %v196_v13 = vpack.c.bf16 %v186_v11, %v185_v10  ;;  %v180_v14 = vld [vmem:[%s166_s20 + $0x28] sm:$0xff]  ;;  %v187_v15 = vld [vmem:[%s166_s20 + $0x60] sm:$0xff]  ;;  %v181_v19 = vld [vmem:[%s166_s20 + $0x30] sm:$0xff]  ;;  %v438_v10 = vsel %vm800_vm9, 1.0, %v734_v38 }
  0x14   : > { %v188_v16 = vld [vmem:[%s166_s20 + $0x68] sm:$0xff]  ;;  %706 = vmatprep.mubr.msk.bf16.mxu1 %vm471_vm0, %v195_v8  ;;  %699 = vmatmul.mubr.msk.bf16.vlgmr.msra.gmra.mrb[0].mxu0 %vm471_vm0, %v192_v9  ;;  %v193_v17 = vpack.c.bf16 %v180_v14, %v179_v12  ;;  %v182_v20 = vld [vmem:[%s166_s20 + $0x38] sm:$0xff]  ;;  %v189_v21 = vld [vmem:[%s166_s20 + $0x70] sm:$0xff]  ;;  %v455_v12 = vmul.f32 %v675_v40, %v432_v0  ;;  %v453_v14 = vmul.f32 %v675_v40, %v430_v6 }
  0x15   : > { %v197_v18 = vpack.c.bf16 %v188_v16, %v187_v15  ;;  %707 = vmatmul.mubr.msk.bf16.vlgmr.msra.gmra.mrb[0].mxu1 %vm471_vm0, %v196_v13  ;;  %v190_v22 = vld [vmem:[%s166_s20 + $0x78] sm:$0xff]  ;;  %v194_v23 = vpack.c.bf16 %v182_v20, %v181_v19  ;;  %v463_v13 = vmul.f32 %v675_v40, %v440_v5  ;;  %v461_v15 = vmul.f32 %v675_v40, %v438_v10 }
  0x16   : > { %702 = vmatprep.mubr.msk.bf16.mxu0 %vm471_vm0, %v193_v17  ;;  %v198_v24 = vpack.c.bf16 %v190_v22, %v189_v21 }
  0x17   : > { %710 = vmatprep.mubr.msk.bf16.mxu1 %vm471_vm0, %v197_v18 }
  0x1c   : > { %703 = vmatmul.mubr.msk.bf16.gmra.mrb[4].mxu0 %vm471_vm0, %v194_v23 }
  0x1d   : > { %711 = vmatmul.mubr.msk.bf16.gmra.mrb[4].mxu1 %vm471_vm0, %v198_v24 }
  0xe7   : > { %v700_v53 = vpop.f32.mrb[0].mxu0 }
  0xe8   : > { %v539_v56 = vadd.f32 %v700_v53, %v451_v47  ;;  %v708_v57 = vpop.f32.mrb[0].mxu1  ;;  %v530_v58 = vpop.f32.mrb[1].mxu0 }
  0xe9   : > { %v571_v60 = vadd.f32 %v708_v57, %v459_v49  ;;  %v531_v61 = vadd.f32 %v530_v58, %v449_v50  ;;  %v562_v62 = vpop.f32.mrb[1].mxu1  ;;  %v701_v63 = vpop.f32.mrb[2].mxu0 }
  0xea   : > { %596 = vst.msk [vmem:[%s790_s25 + $0x10] sm:$0xff] %vm593_vm6, %v539_v56  ;;  %v563_v1 = vadd.f32 %v562_v62, %v457_v51  ;;  %v542_v2 = vadd.f32 %v701_v63, %v450_v52  ;;  %v709_v3 = vpop.f32.mrb[2].mxu1  ;;  %v533_v4 = vpop.f32.mrb[3].mxu0 }
  0xeb   : > { %604 = vst.msk [vmem:[%s790_s25 + $0x50] sm:$0xff] %vm593_vm6, %v571_v60  ;;  %594 = vst.msk [vmem:[%s790_s25] sm:$0xff] %vm593_vm6, %v531_v61  ;;  %v574_v7 = vadd.f32 %v709_v3, %v450_v52  ;;  %v534_v8 = vadd.f32 %v533_v4, %v450_v52  ;;  %v565_v9 = vpop.f32.mrb[3].mxu1 }
  0xec   : > { %602 = vst.msk [vmem:[%s790_s25 + $0x40] sm:$0xff] %vm593_vm6, %v563_v1  ;;  %597 = vst.msk [vmem:[%s790_s25 + $0x18] sm:$0xff] %vm593_vm6, %v542_v2  ;;  %v566_v11 = vadd.f32 %v565_v9, %v450_v52 }
  0xed   : > { %605 = vst.msk [vmem:[%s790_s25 + $0x58] sm:$0xff] %vm593_vm6, %v574_v7  ;;  %595 = vst.msk [vmem:[%s790_s25 + $0x8] sm:$0xff] %vm593_vm6, %v534_v8 }
  0xee   : > { %603 = vst.msk [vmem:[%s790_s25 + $0x48] sm:$0xff] %vm593_vm6, %v566_v11 }
  0xef   : > { %v704_v16 = vpop.f32.mrb[4].mxu0 }
  0xf0   : > { %v555_v17 = vadd.f32 %v704_v16, %v455_v12  ;;  %v712_v18 = vpop.f32.mrb[4].mxu1  ;;  %v546_v19 = vpop.f32.mrb[5].mxu0 }
  0xf1   : > { %v587_v20 = vadd.f32 %v712_v18, %v463_v13  ;;  %v547_v21 = vadd.f32 %v546_v19, %v453_v14  ;;  %v578_v22 = vpop.f32.mrb[5].mxu1  ;;  %v705_v23 = vpop.f32.mrb[6].mxu0 }
  0xf2   : > { %600 = vst.msk [vmem:[%s790_s25 + $0x30] sm:$0xff] %vm593_vm6, %v555_v17  ;;  %v579_v24 = vadd.f32 %v578_v22, %v461_v15  ;;  %v558_v25 = vadd.f32 %v705_v23, %v450_v52  ;;  %v713_v26 = vpop.f32.mrb[6].mxu1  ;;  %v549_v27 = vpop.f32.mrb[7].mxu0 }
  0xf3   : > { %608 = vst.msk [vmem:[%s790_s25 + $0x70] sm:$0xff] %vm593_vm6, %v587_v20  ;;  %598 = vst.msk [vmem:[%s790_s25 + $0x20] sm:$0xff] %vm593_vm6, %v547_v21  ;;  %v590_v28 = vadd.f32 %v713_v26, %v450_v52  ;;  %v550_v29 = vadd.f32 %v549_v27, %v450_v52  ;;  %v581_v30 = vpop.f32.mrb[7].mxu1 }
  0xf4   : > { %606 = vst.msk [vmem:[%s790_s25 + $0x60] sm:$0xff] %vm593_vm6, %v579_v24  ;;  %601 = vst.msk [vmem:[%s790_s25 + $0x38] sm:$0xff] %vm593_vm6, %v558_v25  ;;  %v582_v31 = vadd.f32 %v581_v30, %v450_v52 }
  0xf5   : > { %609 = vst.msk [vmem:[%s790_s25 + $0x78] sm:$0xff] %vm593_vm6, %v590_v28  ;;  %599 = vst.msk [vmem:[%s790_s25 + $0x28] sm:$0xff] %vm593_vm6, %v550_v29 }
  0xf6   : > { %607 = vst.msk [vmem:[%s790_s25 + $0x68] sm:$0xff] %vm593_vm6, %v582_v31 }
  0xf7 PF: > { %s13_s12 = sadd.s32 1, %s732_s12  }
  0xf8   : > { %p10_p4 = scmp.ge.s32.totalorder %s13_s12, 4  }
  0xfa   :  { %12 = sbr.rel (!%p10_p4) target bundleno = 1 (0x1), region = 62 }

// kernel: _lambda_.24
= control target key start
LH: loop header
LB: loop body
LE: loop exit
PB: predicated region body
PF: predicated region fallthrough
CT: control target
= control target key end

     0   :  { %s755_s12 = smov 0   ;;  %s845_s0 = inlined_call_operand.vmem [shape: f32[256,16], index: 0, kind: input, shape index: {}]   ;;  %s846_s1 = inlined_call_operand.vmem [shape: bf16[16,64], index: 1, kind: input, shape index: {}]   ;;  %s847_s2 = inlined_call_operand.vmem [shape: f32[1,64], index: 2, kind: input, shape index: {}]   ;;  %s848_s3 = inlined_call_operand.vmem [shape: f32[256,64], index: 3, kind: output, shape index: {}]  }
   0x1 LB: > { %s666_s13 = sadd.s32 4294967295, %s732_s12   ;;  %p670_p0 = scmp.ge.s32.totalorder %s732_s12, 1  ;;  %s732_s12 = sphi %s755_s12, %s13_s12  }
   0x2   : > { %p138_p1 = scmp.lt.s32.totalorder %s732_s12, 3 }
   0x4   : > { %p139_p2 = pnand %p670_p0, %p138_p1 }
   0x5   : > { %v725_v0 = vld [vmem:[%s846_s1] sm:$0xff] (!%p139_p2)   ;;  %s671_s16 = sshll.u32 (!%p139_p2), %s666_s13, 4  ;;  %vm471_vm0 = vcmask (!%p139_p2), 130048   ;;  %v201_v25 = vlaneseq (!%p139_p2)  ;;  %v734_v38 = vmov (!%p139_p2), 0.0   ;;  %vm593_vm6 = vcmask (!%p139_p2), 523264  }
   0x6   : > { %142 = sbr.rel (%p139_p2) target bundleno = 247 (0xf7), region = 32  ;;  %p163_p3 = scmp.lt.s32.totalorder (!%p139_p2), %s671_s16, 31  ;;  %696 = vmatprep.subr.bf16.mxu0 (!%p139_p2), %v725_v0  ;;  %714 = vmatprep.subr.bf16.mxu1 (!%p139_p2), %v725_v0  ;;  %v675_v40 = vld [vmem:[%s847_s2] ss:$0 sm:$0xff] (!%p139_p2) }
   0x7   : > { %697 = vmatpush3.bf16.msra.mxu0 (!%p139_p2), %v725_v0  ;;  %715 = vmatpush3.bf16.msra.mxu1 (!%p139_p2), %v725_v0  ;;  %v202_v26 = vshrl.u32 (!%p139_p2), %v201_v25, 7  ;;  %v450_v52 = vmul.f32 (!%p139_p2), 0.0, %v675_v40 }
   0x9   : > { %v204_v27 = vadd.s32 (!%p139_p2), 16, %v202_v26  ;;  %v212_v28 = vadd.s32 (!%p139_p2), 80, %v202_v26  ;;  %v210_v29 = vadd.s32 (!%p139_p2), 64, %v202_v26  ;;  %v222_v32 = vand.u32 (!%p139_p2), 15, %v202_v26 }
   0xa   : > { %v208_v34 = vadd.s32 (!%p139_p2), 48, %v202_v26  ;;  %v216_v35 = vadd.s32 (!%p139_p2), 112, %v202_v26  ;;  %v206_v36 = vadd.s32 (!%p139_p2), 32, %v202_v26  ;;  %v214_v37 = vadd.s32 (!%p139_p2), 96, %v202_v26 }
   0xb   : > { %v236_v30 = vand.u32 (!%p139_p2), 15, %v204_v27  ;;  %v292_v31 = vand.u32 (!%p139_p2), 15, %v212_v28  ;;  %v278_v33 = vand.u32 (!%p139_p2), 15, %v210_v29  ;;  %vm410_vm3 = vcmp.eq.s32.totalorder (!%p139_p2), %v222_v32, 0 }
   0xc   : > { %v426_v42 = vsel (!%p139_p2), %vm410_vm3, 1.0, %v734_v38  ;;  %v264_v43 = vand.u32 (!%p139_p2), 15, %v208_v34  ;;  %v320_v45 = vand.u32 (!%p139_p2), 15, %v216_v35  ;;  %v250_v46 = vand.u32 (!%p139_p2), 15, %v206_v36 }
   0xd   : > { %s856_s16 = smov (!%p163_p3, %s671_s16), 31  ;;  %vm412_vm1 = vcmp.eq.s32.totalorder %v236_v30, 0  ;;  %vm420_vm2 = vcmp.eq.s32.totalorder %v292_v31, 0  ;;  %vm418_vm4 = vcmp.eq.s32.totalorder %v278_v33, 0  ;;  %v306_v48 = vand.u32 15, %v214_v37 }
   0xe   : > { %s672_s17 = sshll.u32 %s856_s16, 3  ;;  %v428_v39 = vsel %vm412_vm1, 1.0, %v734_v38  ;;  %v436_v41 = vsel %vm420_vm2, 1.0, %v734_v38  ;;  %v434_v44 = vsel %vm418_vm4, 1.0, %v734_v38  ;;  %v449_v50 = vmul.f32 %v675_v40, %v426_v42 }
   0xf   : > { %s166_s20 = scalar_lea.vmem %s845_s0, %s672_s17  ;;  %v451_v47 = vmul.f32 %v675_v40, %v428_v39  ;;  %v459_v49 = vmul.f32 %v675_v40, %v436_v41  ;;  %v457_v51 = vmul.f32 %v675_v40, %v434_v44  ;;  %vm416_vm5 = vcmp.eq.s32.totalorder %v264_v43, 0  ;;  %s790_s25 = scalar_lea.vmem %s848_s3, %s672_s17 }
  0x10   : > { %v175_v1 = vld [vmem:[%s166_s20] sm:$0xff]  ;;  %v176_v2 = vld [vmem:[%s166_s20 + $0x8] sm:$0xff]  ;;  %v177_v6 = vld [vmem:[%s166_s20 + $0x10] sm:$0xff]  ;;  %vm792_vm7 = vcmp.eq.s32.totalorder %v320_v45, 0  ;;  %vm796_vm8 = vcmp.eq.s32.totalorder %v250_v46, 0  ;;  %vm800_vm9 = vcmp.eq.s32.totalorder %v306_v48, 0 }
  0x11   : > { %v183_v3 = vld [vmem:[%s166_s20 + $0x40] sm:$0xff]  ;;  %v191_v4 = vpack.c.bf16 %v176_v2, %v175_v1  ;;  %v184_v5 = vld [vmem:[%s166_s20 + $0x48] sm:$0xff]  ;;  %v178_v7 = vld [vmem:[%s166_s20 + $0x18] sm:$0xff]  ;;  %v432_v0 = vsel %vm416_vm5, 1.0, %v734_v38 }
  0x12   : > { %v195_v8 = vpack.c.bf16 %v184_v5, %v183_v3  ;;  %v192_v9 = vpack.c.bf16 %v178_v7, %v177_v6  ;;  %v185_v10 = vld [vmem:[%s166_s20 + $0x50] sm:$0xff]  ;;  %v186_v11 = vld [vmem:[%s166_s20 + $0x58] sm:$0xff]  ;;  %v179_v12 = vld [vmem:[%s166_s20 + $0x20] sm:$0xff]  ;;  %v440_v5 = vsel %vm792_vm7, 1.0, %v734_v38  ;;  %v430_v6 = vsel %vm796_vm8, 1.0, %v734_v38 }
  0x13   : > { %698 = vmatprep.mubr.msk.bf16.mxu0 %vm471_vm0, %v191_v4  ;;  %v196_v13 = vpack.c.bf16 %v186_v11, %v185_v10  ;;  %v180_v14 = vld [vmem:[%s166_s20 + $0x28] sm:$0xff]  ;;  %v187_v15 = vld [vmem:[%s166_s20 + $0x60] sm:$0xff]  ;;  %v181_v19 = vld [vmem:[%s166_s20 + $0x30] sm:$0xff]  ;;  %v438_v10 = vsel %vm800_vm9, 1.0, %v734_v38 }
  0x14   : > { %v188_v16 = vld [vmem:[%s166_s20 + $0x68] sm:$0xff]  ;;  %706 = vmatprep.mubr.msk.bf16.mxu1 %vm471_vm0, %v195_v8  ;;  %699 = vmatmul.mubr.msk.bf16.vlgmr.msra.gmra.mrb[0].mxu0 %vm471_vm0, %v192_v9  ;;  %v193_v17 = vpack.c.bf16 %v180_v14, %v179_v12  ;;  %v182_v20 = vld [vmem:[%s166_s20 + $0x38] sm:$0xff]  ;;  %v189_v21 = vld [vmem:[%s166_s20 + $0x70] sm:$0xff]  ;;  %v455_v12 = vmul.f32 %v675_v40, %v432_v0  ;;  %v453_v14 = vmul.f32 %v675_v40, %v430_v6 }
  0x15   : > { %v197_v18 = vpack.c.bf16 %v188_v16, %v187_v15  ;;  %707 = vmatmul.mubr.msk.bf16.vlgmr.msra.gmra.mrb[0].mxu1 %vm471_vm0, %v196_v13  ;;  %v190_v22 = vld [vmem:[%s166_s20 + $0x78] sm:$0xff]  ;;  %v194_v23 = vpack.c.bf16 %v182_v20, %v181_v19  ;;  %v463_v13 = vmul.f32 %v675_v40, %v440_v5  ;;  %v461_v15 = vmul.f32 %v675_v40, %v438_v10 }
  0x16   : > { %702 = vmatprep.mubr.msk.bf16.mxu0 %vm471_vm0, %v193_v17  ;;  %v198_v24 = vpack.c.bf16 %v190_v22, %v189_v21 }
  0x17   : > { %710 = vmatprep.mubr.msk.bf16.mxu1 %vm471_vm0, %v197_v18 }
  0x1c   : > { %703 = vmatmul.mubr.msk.bf16.gmra.mrb[4].mxu0 %vm471_vm0, %v194_v23 }
  0x1d   : > { %711 = vmatmul.mubr.msk.bf16.gmra.mrb[4].mxu1 %vm471_vm0, %v198_v24 }
  0xe7   : > { %v700_v53 = vpop.f32.mrb[0].mxu0 }
  0xe8   : > { %v539_v56 = vadd.f32 %v700_v53, %v451_v47  ;;  %v708_v57 = vpop.f32.mrb[0].mxu1  ;;  %v530_v58 = vpop.f32.mrb[1].mxu0 }
  0xe9   : > { %v571_v60 = vadd.f32 %v708_v57, %v459_v49  ;;  %v531_v61 = vadd.f32 %v530_v58, %v449_v50  ;;  %v562_v62 = vpop.f32.mrb[1].mxu1  ;;  %v701_v63 = vpop.f32.mrb[2].mxu0 }
  0xea   : > { %596 = vst.msk [vmem:[%s790_s25 + $0x10] sm:$0xff] %vm593_vm6, %v539_v56  ;;  %v563_v1 = vadd.f32 %v562_v62, %v457_v51  ;;  %v542_v2 = vadd.f32 %v701_v63, %v450_v52  ;;  %v709_v3 = vpop.f32.mrb[2].mxu1  ;;  %v533_v4 = vpop.f32.mrb[3].mxu0 }
  0xeb   : > { %604 = vst.msk [vmem:[%s790_s25 + $0x50] sm:$0xff] %vm593_vm6, %v571_v60  ;;  %594 = vst.msk [vmem:[%s790_s25] sm:$0xff] %vm593_vm6, %v531_v61  ;;  %v574_v7 = vadd.f32 %v709_v3, %v450_v52  ;;  %v534_v8 = vadd.f32 %v533_v4, %v450_v52  ;;  %v565_v9 = vpop.f32.mrb[3].mxu1 }
  0xec   : > { %602 = vst.msk [vmem:[%s790_s25 + $0x40] sm:$0xff] %vm593_vm6, %v563_v1  ;;  %597 = vst.msk [vmem:[%s790_s25 + $0x18] sm:$0xff] %vm593_vm6, %v542_v2  ;;  %v566_v11 = vadd.f32 %v565_v9, %v450_v52 }
  0xed   : > { %605 = vst.msk [vmem:[%s790_s25 + $0x58] sm:$0xff] %vm593_vm6, %v574_v7  ;;  %595 = vst.msk [vmem:[%s790_s25 + $0x8] sm:$0xff] %vm593_vm6, %v534_v8 }
  0xee   : > { %603 = vst.msk [vmem:[%s790_s25 + $0x48] sm:$0xff] %vm593_vm6, %v566_v11 }
  0xef   : > { %v704_v16 = vpop.f32.mrb[4].mxu0 }
  0xf0   : > { %v555_v17 = vadd.f32 %v704_v16, %v455_v12  ;;  %v712_v18 = vpop.f32.mrb[4].mxu1  ;;  %v546_v19 = vpop.f32.mrb[5].mxu0 }
  0xf1   : > { %v587_v20 = vadd.f32 %v712_v18, %v463_v13  ;;  %v547_v21 = vadd.f32 %v546_v19, %v453_v14  ;;  %v578_v22 = vpop.f32.mrb[5].mxu1  ;;  %v705_v23 = vpop.f32.mrb[6].mxu0 }
  0xf2   : > { %600 = vst.msk [vmem:[%s790_s25 + $0x30] sm:$0xff] %vm593_vm6, %v555_v17  ;;  %v579_v24 = vadd.f32 %v578_v22, %v461_v15  ;;  %v558_v25 = vadd.f32 %v705_v23, %v450_v52  ;;  %v713_v26 = vpop.f32.mrb[6].mxu1  ;;  %v549_v27 = vpop.f32.mrb[7].mxu0 }
  0xf3   : > { %608 = vst.msk [vmem:[%s790_s25 + $0x70] sm:$0xff] %vm593_vm6, %v587_v20  ;;  %598 = vst.msk [vmem:[%s790_s25 + $0x20] sm:$0xff] %vm593_vm6, %v547_v21  ;;  %v590_v28 = vadd.f32 %v713_v26, %v450_v52  ;;  %v550_v29 = vadd.f32 %v549_v27, %v450_v52  ;;  %v581_v30 = vpop.f32.mrb[7].mxu1 }
  0xf4   : > { %606 = vst.msk [vmem:[%s790_s25 + $0x60] sm:$0xff] %vm593_vm6, %v579_v24  ;;  %601 = vst.msk [vmem:[%s790_s25 + $0x38] sm:$0xff] %vm593_vm6, %v558_v25  ;;  %v582_v31 = vadd.f32 %v581_v30, %v450_v52 }
  0xf5   : > { %609 = vst.msk [vmem:[%s790_s25 + $0x78] sm:$0xff] %vm593_vm6, %v590_v28  ;;  %599 = vst.msk [vmem:[%s790_s25 + $0x28] sm:$0xff] %vm593_vm6, %v550_v29 }
  0xf6   : > { %607 = vst.msk [vmem:[%s790_s25 + $0x68] sm:$0xff] %vm593_vm6, %v582_v31 }
  0xf7 PF: > { %s13_s12 = sadd.s32 1, %s732_s12  }
  0xf8   : > { %p10_p4 = scmp.ge.s32.totalorder %s13_s12, 4  }
  0xfa   :  { %12 = sbr.rel (!%p10_p4) target bundleno = 1 (0x1), region = 62 }

// kernel: _lambda_.31
= control target key start
LH: loop header
LB: loop body
LE: loop exit
PB: predicated region body
PF: predicated region fallthrough
CT: control target
= control target key end

     0   :  { %s754_s12 = smov 0   ;;  %s844_s0 = inlined_call_operand.vmem [shape: f32[256,16], index: 0, kind: input, shape index: {}]   ;;  %s845_s1 = inlined_call_operand.vmem [shape: bf16[16,16], index: 1, kind: input, shape index: {}]   ;;  %s846_s2 = inlined_call_operand.vmem [shape: f32[1,16], index: 2, kind: input, shape index: {}]   ;;  %s847_s3 = inlined_call_operand.vmem [shape: f32[256,16], index: 3, kind: output, shape index: {}]  }
   0x1 LB: > { %s665_s13 = sadd.s32 4294967295, %s731_s12   ;;  %p669_p0 = scmp.ge.s32.totalorder %s731_s12, 1  ;;  %s731_s12 = sphi %s754_s12, %s13_s12  }
   0x2   : > { %p138_p1 = scmp.lt.s32.totalorder %s731_s12, 3 }
   0x4   : > { %p139_p2 = pnand %p669_p0, %p138_p1 }
   0x5   : > { %v724_v0 = vld [vmem:[%s845_s1] sm:$0xff] (!%p139_p2)   ;;  %s670_s16 = sshll.u32 (!%p139_p2), %s665_s13, 4  ;;  %vm471_vm0 = vcmask (!%p139_p2), 130048   ;;  %v201_v25 = vlaneseq (!%p139_p2)  ;;  %v733_v38 = vmov (!%p139_p2), 0.0  }
   0x6   : > { %142 = sbr.rel (%p139_p2) target bundleno = 247 (0xf7), region = 32  ;;  %p163_p3 = scmp.lt.s32.totalorder (!%p139_p2), %s670_s16, 31  ;;  %695 = vmatprep.subr.bf16.mxu0 (!%p139_p2), %v724_v0  ;;  %713 = vmatprep.subr.bf16.mxu1 (!%p139_p2), %v724_v0  ;;  %v674_v40 = vld [vmem:[%s846_s2] ss:$0 sm:$0xff] (!%p139_p2) }
   0x7   : > { %696 = vmatpush3.bf16.msra.mxu0 (!%p139_p2), %v724_v0  ;;  %714 = vmatpush3.bf16.msra.mxu1 (!%p139_p2), %v724_v0  ;;  %v202_v26 = vshrl.u32 (!%p139_p2), %v201_v25, 7  ;;  %v450_v52 = vmul.f32 (!%p139_p2), 0.0, %v674_v40 }
   0x9   : > { %v204_v27 = vadd.s32 (!%p139_p2), 16, %v202_v26  ;;  %v212_v28 = vadd.s32 (!%p139_p2), 80, %v202_v26  ;;  %v210_v29 = vadd.s32 (!%p139_p2), 64, %v202_v26  ;;  %v222_v32 = vand.u32 (!%p139_p2), 15, %v202_v26 }
   0xa   : > { %v208_v34 = vadd.s32 (!%p139_p2), 48, %v202_v26  ;;  %v216_v35 = vadd.s32 (!%p139_p2), 112, %v202_v26  ;;  %v206_v36 = vadd.s32 (!%p139_p2), 32, %v202_v26  ;;  %v214_v37 = vadd.s32 (!%p139_p2), 96, %v202_v26 }
   0xb   : > { %v236_v30 = vand.u32 (!%p139_p2), 15, %v204_v27  ;;  %v292_v31 = vand.u32 (!%p139_p2), 15, %v212_v28  ;;  %v278_v33 = vand.u32 (!%p139_p2), 15, %v210_v29  ;;  %vm410_vm3 = vcmp.eq.s32.totalorder (!%p139_p2), %v222_v32, 0 }
   0xc   : > { %v426_v42 = vsel (!%p139_p2), %vm410_vm3, 1.0, %v733_v38  ;;  %v264_v43 = vand.u32 (!%p139_p2), 15, %v208_v34  ;;  %v320_v45 = vand.u32 (!%p139_p2), 15, %v216_v35  ;;  %v250_v46 = vand.u32 (!%p139_p2), 15, %v206_v36 }
   0xd   : > { %s855_s16 = smov (!%p163_p3, %s670_s16), 31  ;;  %vm412_vm1 = vcmp.eq.s32.totalorder %v236_v30, 0  ;;  %vm420_vm2 = vcmp.eq.s32.totalorder %v292_v31, 0  ;;  %vm418_vm4 = vcmp.eq.s32.totalorder %v278_v33, 0  ;;  %v306_v48 = vand.u32 15, %v214_v37 }
   0xe   : > { %s671_s17 = sshll.u32 %s855_s16, 3  ;;  %v428_v39 = vsel %vm412_vm1, 1.0, %v733_v38  ;;  %v436_v41 = vsel %vm420_vm2, 1.0, %v733_v38  ;;  %v434_v44 = vsel %vm418_vm4, 1.0, %v733_v38  ;;  %v449_v50 = vmul.f32 %v674_v40, %v426_v42 }
   0xf   : > { %s166_s20 = scalar_lea.vmem %s844_s0, %s671_s17  ;;  %v451_v47 = vmul.f32 %v674_v40, %v428_v39  ;;  %v459_v49 = vmul.f32 %v674_v40, %v436_v41  ;;  %v457_v51 = vmul.f32 %v674_v40, %v434_v44  ;;  %vm416_vm5 = vcmp.eq.s32.totalorder %v264_v43, 0  ;;  %s789_s25 = scalar_lea.vmem %s847_s3, %s671_s17 }
  0x10   : > { %v175_v1 = vld [vmem:[%s166_s20] sm:$0xff]  ;;  %v176_v2 = vld [vmem:[%s166_s20 + $0x8] sm:$0xff]  ;;  %v177_v6 = vld [vmem:[%s166_s20 + $0x10] sm:$0xff]  ;;  %vm791_vm6 = vcmp.eq.s32.totalorder %v320_v45, 0  ;;  %vm795_vm7 = vcmp.eq.s32.totalorder %v250_v46, 0  ;;  %vm799_vm8 = vcmp.eq.s32.totalorder %v306_v48, 0 }
  0x11   : > { %v183_v3 = vld [vmem:[%s166_s20 + $0x40] sm:$0xff]  ;;  %v191_v4 = vpack.c.bf16 %v176_v2, %v175_v1  ;;  %v184_v5 = vld [vmem:[%s166_s20 + $0x48] sm:$0xff]  ;;  %v178_v7 = vld [vmem:[%s166_s20 + $0x18] sm:$0xff]  ;;  %v432_v0 = vsel %vm416_vm5, 1.0, %v733_v38 }
  0x12   : > { %v195_v8 = vpack.c.bf16 %v184_v5, %v183_v3  ;;  %v192_v9 = vpack.c.bf16 %v178_v7, %v177_v6  ;;  %v185_v10 = vld [vmem:[%s166_s20 + $0x50] sm:$0xff]  ;;  %v186_v11 = vld [vmem:[%s166_s20 + $0x58] sm:$0xff]  ;;  %v179_v12 = vld [vmem:[%s166_s20 + $0x20] sm:$0xff]  ;;  %v440_v5 = vsel %vm791_vm6, 1.0, %v733_v38  ;;  %v430_v6 = vsel %vm795_vm7, 1.0, %v733_v38 }
  0x13   : > { %697 = vmatprep.mubr.msk.bf16.mxu0 %vm471_vm0, %v191_v4  ;;  %v196_v13 = vpack.c.bf16 %v186_v11, %v185_v10  ;;  %v180_v14 = vld [vmem:[%s166_s20 + $0x28] sm:$0xff]  ;;  %v187_v15 = vld [vmem:[%s166_s20 + $0x60] sm:$0xff]  ;;  %v181_v19 = vld [vmem:[%s166_s20 + $0x30] sm:$0xff]  ;;  %v438_v10 = vsel %vm799_vm8, 1.0, %v733_v38 }
  0x14   : > { %v188_v16 = vld [vmem:[%s166_s20 + $0x68] sm:$0xff]  ;;  %705 = vmatprep.mubr.msk.bf16.mxu1 %vm471_vm0, %v195_v8  ;;  %698 = vmatmul.mubr.msk.bf16.vlgmr.msra.gmra.mrb[0].mxu0 %vm471_vm0, %v192_v9  ;;  %v193_v17 = vpack.c.bf16 %v180_v14, %v179_v12  ;;  %v182_v20 = vld [vmem:[%s166_s20 + $0x38] sm:$0xff]  ;;  %v189_v21 = vld [vmem:[%s166_s20 + $0x70] sm:$0xff]  ;;  %v455_v12 = vmul.f32 %v674_v40, %v432_v0  ;;  %v453_v14 = vmul.f32 %v674_v40, %v430_v6 }
  0x15   : > { %v197_v18 = vpack.c.bf16 %v188_v16, %v187_v15  ;;  %706 = vmatmul.mubr.msk.bf16.vlgmr.msra.gmra.mrb[0].mxu1 %vm471_vm0, %v196_v13  ;;  %v190_v22 = vld [vmem:[%s166_s20 + $0x78] sm:$0xff]  ;;  %v194_v23 = vpack.c.bf16 %v182_v20, %v181_v19  ;;  %v463_v13 = vmul.f32 %v674_v40, %v440_v5  ;;  %v461_v15 = vmul.f32 %v674_v40, %v438_v10 }
  0x16   : > { %701 = vmatprep.mubr.msk.bf16.mxu0 %vm471_vm0, %v193_v17  ;;  %v198_v24 = vpack.c.bf16 %v190_v22, %v189_v21 }
  0x17   : > { %709 = vmatprep.mubr.msk.bf16.mxu1 %vm471_vm0, %v197_v18 }
  0x1c   : > { %702 = vmatmul.mubr.msk.bf16.gmra.mrb[4].mxu0 %vm471_vm0, %v194_v23 }
  0x1d   : > { %710 = vmatmul.mubr.msk.bf16.gmra.mrb[4].mxu1 %vm471_vm0, %v198_v24 }
  0xe7   : > { %v699_v53 = vpop.f32.mrb[0].mxu0 }
  0xe8   : > { %v539_v56 = vadd.f32 %v699_v53, %v451_v47  ;;  %v707_v57 = vpop.f32.mrb[0].mxu1  ;;  %v530_v58 = vpop.f32.mrb[1].mxu0 }
  0xe9   : > { %v571_v60 = vadd.f32 %v707_v57, %v459_v49  ;;  %v531_v61 = vadd.f32 %v530_v58, %v449_v50  ;;  %v562_v62 = vpop.f32.mrb[1].mxu1  ;;  %v700_v63 = vpop.f32.mrb[2].mxu0 }
  0xea   : > { %595 = vst.msk [vmem:[%s789_s25 + $0x10] sm:$0xff] %vm471_vm0, %v539_v56  ;;  %v563_v1 = vadd.f32 %v562_v62, %v457_v51  ;;  %v542_v2 = vadd.f32 %v700_v63, %v450_v52  ;;  %v708_v3 = vpop.f32.mrb[2].mxu1  ;;  %v533_v4 = vpop.f32.mrb[3].mxu0 }
  0xeb   : > { %603 = vst.msk [vmem:[%s789_s25 + $0x50] sm:$0xff] %vm471_vm0, %v571_v60  ;;  %593 = vst.msk [vmem:[%s789_s25] sm:$0xff] %vm471_vm0, %v531_v61  ;;  %v574_v7 = vadd.f32 %v708_v3, %v450_v52  ;;  %v534_v8 = vadd.f32 %v533_v4, %v450_v52  ;;  %v565_v9 = vpop.f32.mrb[3].mxu1 }
  0xec   : > { %601 = vst.msk [vmem:[%s789_s25 + $0x40] sm:$0xff] %vm471_vm0, %v563_v1  ;;  %596 = vst.msk [vmem:[%s789_s25 + $0x18] sm:$0xff] %vm471_vm0, %v542_v2  ;;  %v566_v11 = vadd.f32 %v565_v9, %v450_v52 }
  0xed   : > { %604 = vst.msk [vmem:[%s789_s25 + $0x58] sm:$0xff] %vm471_vm0, %v574_v7  ;;  %594 = vst.msk [vmem:[%s789_s25 + $0x8] sm:$0xff] %vm471_vm0, %v534_v8 }
  0xee   : > { %602 = vst.msk [vmem:[%s789_s25 + $0x48] sm:$0xff] %vm471_vm0, %v566_v11 }
  0xef   : > { %v703_v16 = vpop.f32.mrb[4].mxu0 }
  0xf0   : > { %v555_v17 = vadd.f32 %v703_v16, %v455_v12  ;;  %v711_v18 = vpop.f32.mrb[4].mxu1  ;;  %v546_v19 = vpop.f32.mrb[5].mxu0 }
  0xf1   : > { %v587_v20 = vadd.f32 %v711_v18, %v463_v13  ;;  %v547_v21 = vadd.f32 %v546_v19, %v453_v14  ;;  %v578_v22 = vpop.f32.mrb[5].mxu1  ;;  %v704_v23 = vpop.f32.mrb[6].mxu0 }
  0xf2   : > { %599 = vst.msk [vmem:[%s789_s25 + $0x30] sm:$0xff] %vm471_vm0, %v555_v17  ;;  %v579_v24 = vadd.f32 %v578_v22, %v461_v15  ;;  %v558_v25 = vadd.f32 %v704_v23, %v450_v52  ;;  %v712_v26 = vpop.f32.mrb[6].mxu1  ;;  %v549_v27 = vpop.f32.mrb[7].mxu0 }
  0xf3   : > { %607 = vst.msk [vmem:[%s789_s25 + $0x70] sm:$0xff] %vm471_vm0, %v587_v20  ;;  %597 = vst.msk [vmem:[%s789_s25 + $0x20] sm:$0xff] %vm471_vm0, %v547_v21  ;;  %v590_v28 = vadd.f32 %v712_v26, %v450_v52  ;;  %v550_v29 = vadd.f32 %v549_v27, %v450_v52  ;;  %v581_v30 = vpop.f32.mrb[7].mxu1 }
  0xf4   : > { %605 = vst.msk [vmem:[%s789_s25 + $0x60] sm:$0xff] %vm471_vm0, %v579_v24  ;;  %600 = vst.msk [vmem:[%s789_s25 + $0x38] sm:$0xff] %vm471_vm0, %v558_v25  ;;  %v582_v31 = vadd.f32 %v581_v30, %v450_v52 }
  0xf5   : > { %608 = vst.msk [vmem:[%s789_s25 + $0x78] sm:$0xff] %vm471_vm0, %v590_v28  ;;  %598 = vst.msk [vmem:[%s789_s25 + $0x28] sm:$0xff] %vm471_vm0, %v550_v29 }
  0xf6   : > { %606 = vst.msk [vmem:[%s789_s25 + $0x68] sm:$0xff] %vm471_vm0, %v582_v31 }
  0xf7 PF: > { %s13_s12 = sadd.s32 1, %s731_s12  }
  0xf8   : > { %p10_p4 = scmp.ge.s32.totalorder %s13_s12, 4  }
  0xfa   :  { %12 = sbr.rel (!%p10_p4) target bundleno = 1 (0x1), region = 62 }

// kernel: _lambda_.32
= control target key start
LH: loop header
LB: loop body
LE: loop exit
PB: predicated region body
PF: predicated region fallthrough
CT: control target
= control target key end

     0   :  { %s278_s6 = smov 0   ;;  %s306_s0 = inlined_call_operand.vmem [shape: f32[16,256], index: 0, kind: input, shape index: {}]   ;;  %s307_s1 = inlined_call_operand.vmem [shape: f32[16,256], index: 1, kind: output, shape index: {}]  }
   0x1 LB: > { %s223_s7 = sadd.s32 4294967295, %s259_s6   ;;  %p227_p0 = scmp.ge.s32.totalorder %s259_s6, 1  ;;  %s259_s6 = sphi %s278_s6, %s11_s6  }
   0x2   : > { %p87_p1 = scmp.lt.s32.totalorder %s259_s6, 3 }
   0x4   : > { %p88_p2 = pnand %p227_p0, %p87_p1 }
   0x5   : > { %p107_p3 = scmp.lt.s32.totalorder (!%p88_p2), %s223_s7, 1  ;;  %s261_s12 = smov (!%p88_p2), 16   ;;  %vm150_vm0 = vcmask (!%p88_p2), 130048   ;;  %vm152_vm1 = vcmask (!%p88_p2), 261120   ;;  %vm154_vm2 = vcmask (!%p88_p2), 392192   ;;  %vm156_vm3 = vcmask (!%p88_p2), 523264  }
   0x6   : > { %91 = sbr.rel (%p88_p2) target bundleno = 175 (0xaf), region = 24  ;;  %s262_s13 = smov (!%p88_p2), 48   ;;  %vm158_vm4 = vcmask (!%p88_p2), 654336   ;;  %vm160_vm5 = vcmask (!%p88_p2), 785408   ;;  %vm162_vm6 = vcmask (!%p88_p2), 916480  }
   0x7   : > { %s263_s14 = smov (!%p88_p2), 32   ;;  %s264_s15 = smov (!%p88_p2), 64  }
   0x8   : > { %s265_s16 = smov (!%p88_p2), 80   ;;  %s266_s17 = smov (!%p88_p2), 96  }
   0x9   : > { %s267_s18 = smov (!%p88_p2), 112  }
   0xd   : > { %s309_s7 = smov (!%p107_p3, %s223_s7), 1 }
   0xe   : > { %s234_s8 = sshll.u32 %s309_s7, 4 }
   0xf   : > { %s294_s11 = scalar_lea.vmem %s306_s0, %s234_s8  ;;  %s116_s21 = scalar_lea.vmem %s307_s1, %s234_s8 }
  0x10   : > { %v117_v0 = vld [vmem:[%s294_s11] sm:$0xff]  ;;  %v118_v21 = vld [vmem:[%s294_s11 + $0x8] sm:$0xff] }
  0x11   : > { %v119_v1 = vmul.f32 %v117_v0, %v117_v0 }
  0x13   : > { %v120_v2 = vmul.f32 %v119_v1, %v117_v0 }
  0x15   : > { %v121_v3 = vmul.f32 0.044715, %v120_v2 }
  0x17   : > { %v122_v4 = vadd.f32 %v121_v3, %v117_v0 }
  0x19   : > { %v123_v5 = vmul.f32 0.7978846, %v122_v4 }
  0x1b   : > { %251 = vtanh.f32 %v123_v5 }
  0x25   : > { %v252_v6 = vpop.eup %251 }
  0x26   : > { %v125_v7 = vadd.f32 1.0, %v252_v6 }
  0x28   : > { %v126_v8 = vmul.f32 0.5, %v125_v7 }
  0x2a   : > { %v127_v9 = vmul.f32 %v126_v8, %v117_v0 }
  0x2c   : > { %129 = vrot.lane.b32.xlu0 %v127_v9, %s261_s12  ;;  %135 = vrot.lane.b32.xlu1 %v127_v9, %s262_s13 }
  0x30   : > { %132 = vrot.lane.b32.xlu0 %v127_v9, %s263_s14  ;;  %138 = vrot.lane.b32.xlu1 %v127_v9, %s264_s15 }
  0x34   : > { %141 = vrot.lane.b32.xlu0 %v127_v9, %s265_s16  ;;  %144 = vrot.lane.b32.xlu1 %v127_v9, %s266_s17 }
  0x38   : > { %147 = vrot.lane.b32.xlu0 %v127_v9, %s267_s18 }
  0x9e   : > { %v130_v10 = vpop.permute.xlu0 %129  ;;  %v136_v11 = vpop.permute.xlu1 %135 }
  0x9f   : > { %v151_v12 = vsel %vm150_vm0, %v127_v9, %v130_v10 }
  0xa2   : > { %v133_v13 = vpop.permute.xlu0 %132  ;;  %v139_v14 = vpop.permute.xlu1 %138 }
  0xa3   : > { %v153_v15 = vsel %vm152_vm1, %v151_v12, %v133_v13 }
  0xa4   : > { %v155_v16 = vsel %vm154_vm2, %v153_v15, %v136_v11 }
  0xa5   : > { %v157_v17 = vsel %vm156_vm3, %v155_v16, %v139_v14 }
  0xa6   : > { %v142_v18 = vpop.permute.xlu0 %141  ;;  %v145_v20 = vpop.permute.xlu1 %144 }
  0xa7   : > { %v159_v19 = vsel %vm158_vm4, %v157_v17, %v142_v18 }
  0xa8   : > { %v161_v22 = vsel %vm160_vm5, %v159_v19, %v145_v20 }
  0xaa   : > { %v148_v23 = vpop.permute.xlu0 %147 }
  0xab   : > { %v163_v24 = vsel %vm162_vm6, %v161_v22, %v148_v23 }
  0xac   : > { %v164_v25 = vmul.f32 %v163_v24, %v117_v0  ;;  %v165_v26 = vmul.f32 %v163_v24, %v118_v21 }
  0xae   : > { %166 = vst [vmem:[%s116_s21] sm:$0xff] %v164_v25  ;;  %167 = vst [vmem:[%s116_s21 + $0x8] sm:$0xff] %v165_v26 }
  0xaf PF: > { %s11_s6 = sadd.s32 1, %s259_s6  }
  0xb0   : > { %p8_p4 = scmp.ge.s32.totalorder %s11_s6, 4  }
  0xb2   :  { %10 = sbr.rel (!%p8_p4) target bundleno = 1 (0x1), region = 54 }

// kernel: _lambda_.33
= control target key start
LH: loop header
LB: loop body
LE: loop exit
PB: predicated region body
PF: predicated region fallthrough
CT: control target
= control target key end

     0   :  { %s854_s15 = smov 0   ;;  %s984_s0 = inlined_call_operand.vmem [shape: f32[256,16], index: 0, kind: input, shape index: {}]   ;;  %s985_s1 = inlined_call_operand.vmem [shape: bf16[16,16], index: 1, kind: input, shape index: {}]   ;;  %s986_s2 = inlined_call_operand.vmem [shape: f32[1,16], index: 2, kind: input, shape index: {}]   ;;  %s987_s3 = inlined_call_operand.vmem [shape: f32[256,16], index: 3, kind: input, shape index: {}]   ;;  %s988_s4 = inlined_call_operand.vmem [shape: f32[256,16], index: 4, kind: output, shape index: {}]  }
   0x1 LB: > { %s758_s16 = sadd.s32 4294967295, %s826_s15   ;;  %p762_p0 = scmp.ge.s32.totalorder %s826_s15, 1  ;;  %s826_s15 = sphi %s854_s15, %s14_s15  }
   0x2   : > { %p174_p1 = scmp.lt.s32.totalorder %s826_s15, 3 }
   0x4   : > { %p175_p2 = pnand %p762_p0, %p174_p1 }
   0x5   : > { %v819_v0 = vld [vmem:[%s985_s1] sm:$0xff] (!%p175_p2)   ;;  %s763_s19 = sshll.u32 (!%p175_p2), %s758_s16, 4  ;;  %vm520_vm0 = vcmask (!%p175_p2), 130048   ;;  %v250_v25 = vlaneseq (!%p175_p2)  ;;  %v828_v38 = vmov (!%p175_p2), 0.0  }
   0x6   : > { %178 = sbr.rel (%p175_p2) target bundleno = 249 (0xf9), region = 36  ;;  %p206_p3 = scmp.lt.s32.totalorder (!%p175_p2), %s763_s19, 31  ;;  %790 = vmatprep.subr.bf16.mxu0 (!%p175_p2), %v819_v0  ;;  %808 = vmatprep.subr.bf16.mxu1 (!%p175_p2), %v819_v0  ;;  %v882_v40 = vld [vmem:[%s986_s2] ss:$0 sm:$0xff] (!%p175_p2) }
   0x7   : > { %791 = vmatpush3.bf16.msra.mxu0 (!%p175_p2), %v819_v0  ;;  %809 = vmatpush3.bf16.msra.mxu1 (!%p175_p2), %v819_v0  ;;  %v251_v26 = vshrl.u32 (!%p175_p2), %v250_v25, 7  ;;  %v895_v52 = vmul.f32 (!%p175_p2), 0.0, %v882_v40 }
   0x9   : > { %v253_v27 = vadd.s32 (!%p175_p2), 16, %v251_v26  ;;  %v261_v28 = vadd.s32 (!%p175_p2), 80, %v251_v26  ;;  %v259_v29 = vadd.s32 (!%p175_p2), 64, %v251_v26  ;;  %v271_v32 = vand.u32 (!%p175_p2), 15, %v251_v26 }
   0xa   : > { %v257_v34 = vadd.s32 (!%p175_p2), 48, %v251_v26  ;;  %v265_v35 = vadd.s32 (!%p175_p2), 112, %v251_v26  ;;  %v255_v36 = vadd.s32 (!%p175_p2), 32, %v251_v26  ;;  %v263_v37 = vadd.s32 (!%p175_p2), 96, %v251_v26 }
   0xb   : > { %v285_v30 = vand.u32 (!%p175_p2), 15, %v253_v27  ;;  %v341_v31 = vand.u32 (!%p175_p2), 15, %v261_v28  ;;  %v327_v33 = vand.u32 (!%p175_p2), 15, %v259_v29  ;;  %vm459_vm3 = vcmp.eq.s32.totalorder (!%p175_p2), %v271_v32, 0 }
   0xc   : > { %v313_v41 = vand.u32 (!%p175_p2), 15, %v257_v34  ;;  %v475_v43 = vsel (!%p175_p2), %vm459_vm3, 1.0, %v828_v38  ;;  %v369_v44 = vand.u32 (!%p175_p2), 15, %v265_v35  ;;  %v299_v45 = vand.u32 (!%p175_p2), 15, %v255_v36 }
   0xd   : > { %s996_s19 = smov (!%p206_p3, %s763_s19), 31  ;;  %vm461_vm1 = vcmp.eq.s32.totalorder %v285_v30, 0  ;;  %vm469_vm2 = vcmp.eq.s32.totalorder %v341_v31, 0  ;;  %vm467_vm4 = vcmp.eq.s32.totalorder %v327_v33, 0  ;;  %v355_v47 = vand.u32 15, %v263_v37 }
   0xe   : > { %s865_s20 = sshll.u32 %s996_s19, 3  ;;  %v477_v39 = vsel %vm461_vm1, 1.0, %v828_v38  ;;  %v485_v42 = vsel %vm469_vm2, 1.0, %v828_v38  ;;  %v483_v46 = vsel %vm467_vm4, 1.0, %v828_v38  ;;  %v498_v50 = vmul.f32 %v882_v40, %v475_v43 }
   0xf   : > { %s209_s23 = scalar_lea.vmem %s984_s0, %s865_s20  ;;  %s888_s28 = scalar_lea.vmem %s987_s3, %s865_s20  ;;  %v500_v48 = vmul.f32 %v882_v40, %v477_v39  ;;  %v508_v49 = vmul.f32 %v882_v40, %v485_v42  ;;  %vm465_vm5 = vcmp.eq.s32.totalorder %v313_v41, 0  ;;  %v506_v51 = vmul.f32 %v882_v40, %v483_v46 }
  0x10   : > { %v224_v1 = vld [vmem:[%s209_s23] sm:$0xff]  ;;  %v225_v2 = vld [vmem:[%s209_s23 + $0x8] sm:$0xff]  ;;  %v226_v6 = vld [vmem:[%s209_s23 + $0x10] sm:$0xff]  ;;  %vm897_vm6 = vcmp.eq.s32.totalorder %v369_v44, 0  ;;  %vm901_vm7 = vcmp.eq.s32.totalorder %v299_v45, 0  ;;  %vm906_vm8 = vcmp.eq.s32.totalorder %v355_v47, 0  ;;  %s916_s5 = scalar_lea.vmem %s988_s4, %s865_s20 }
  0x11   : > { %v232_v3 = vld [vmem:[%s209_s23 + $0x40] sm:$0xff]  ;;  %v240_v4 = vpack.c.bf16 %v225_v2, %v224_v1  ;;  %v233_v5 = vld [vmem:[%s209_s23 + $0x48] sm:$0xff]  ;;  %v227_v7 = vld [vmem:[%s209_s23 + $0x18] sm:$0xff]  ;;  %v481_v63 = vsel %vm465_vm5, 1.0, %v828_v38 }
  0x12   : > { %v244_v8 = vpack.c.bf16 %v233_v5, %v232_v3  ;;  %v241_v9 = vpack.c.bf16 %v227_v7, %v226_v6  ;;  %v234_v10 = vld [vmem:[%s209_s23 + $0x50] sm:$0xff]  ;;  %v235_v11 = vld [vmem:[%s209_s23 + $0x58] sm:$0xff]  ;;  %v228_v12 = vld [vmem:[%s209_s23 + $0x20] sm:$0xff]  ;;  %v489_v6 = vsel %vm897_vm6, 1.0, %v828_v38  ;;  %v479_v7 = vsel %vm901_vm7, 1.0, %v828_v38 }
  0x13   : > { %792 = vmatprep.mubr.msk.bf16.mxu0 %vm520_vm0, %v240_v4  ;;  %v245_v13 = vpack.c.bf16 %v235_v11, %v234_v10  ;;  %v229_v14 = vld [vmem:[%s209_s23 + $0x28] sm:$0xff]  ;;  %v236_v15 = vld [vmem:[%s209_s23 + $0x60] sm:$0xff]  ;;  %v230_v19 = vld [vmem:[%s209_s23 + $0x30] sm:$0xff]  ;;  %v504_v25 = vmul.f32 %v882_v40, %v481_v63  ;;  %v512_v28 = vmul.f32 %v882_v40, %v489_v6  ;;  %v502_v29 = vmul.f32 %v882_v40, %v479_v7 }
  0x14   : > { %v237_v16 = vld [vmem:[%s209_s23 + $0x68] sm:$0xff]  ;;  %800 = vmatprep.mubr.msk.bf16.mxu1 %vm520_vm0, %v244_v8  ;;  %793 = vmatmul.mubr.msk.bf16.vlgmr.msra.gmra.mrb[0].mxu0 %vm520_vm0, %v241_v9  ;;  %v242_v17 = vpack.c.bf16 %v229_v14, %v228_v12  ;;  %v231_v20 = vld [vmem:[%s209_s23 + $0x38] sm:$0xff]  ;;  %v238_v21 = vld [vmem:[%s209_s23 + $0x70] sm:$0xff] }
  0x15   : > { %v246_v18 = vpack.c.bf16 %v237_v16, %v236_v15  ;;  %801 = vmatmul.mubr.msk.bf16.vlgmr.msra.gmra.mrb[0].mxu1 %vm520_vm0, %v245_v13  ;;  %v239_v22 = vld [vmem:[%s209_s23 + $0x78] sm:$0xff]  ;;  %v243_v23 = vpack.c.bf16 %v231_v20, %v230_v19  ;;  %v644_v56 = vld [vmem:[%s888_s28 + $0x10] sm:$0xff]  ;;  %v642_v62 = vld [vmem:[%s888_s28] sm:$0xff]  ;;  %v487_v15 = vsel %vm906_vm8, 1.0, %v828_v38 }
  0x16   : > { %796 = vmatprep.mubr.msk.bf16.mxu0 %vm520_vm0, %v242_v17  ;;  %v247_v24 = vpack.c.bf16 %v239_v22, %v238_v21  ;;  %v652_v60 = vld [vmem:[%s888_s28 + $0x50] sm:$0xff]  ;;  %v650_v3 = vld [vmem:[%s888_s28 + $0x40] sm:$0xff]  ;;  %v645_v5 = vld [vmem:[%s888_s28 + $0x18] sm:$0xff]  ;;  %v510_v31 = vmul.f32 %v882_v40, %v487_v15 }
  0x17   : > { %804 = vmatprep.mubr.msk.bf16.mxu1 %vm520_vm0, %v246_v18  ;;  %v653_v12 = vld [vmem:[%s888_s28 + $0x58] sm:$0xff]  ;;  %v643_v14 = vld [vmem:[%s888_s28 + $0x8] sm:$0xff]  ;;  %v648_v33 = vld [vmem:[%s888_s28 + $0x30] sm:$0xff] }
  0x18   : > { %v651_v21 = vld [vmem:[%s888_s28 + $0x48] sm:$0xff]  ;;  %v656_v36 = vld [vmem:[%s888_s28 + $0x70] sm:$0xff]  ;;  %v646_v38 = vld [vmem:[%s888_s28 + $0x20] sm:$0xff] }
  0x19   : > { %v654_v40 = vld [vmem:[%s888_s28 + $0x60] sm:$0xff]  ;;  %v649_v44 = vld [vmem:[%s888_s28 + $0x38] sm:$0xff] }
  0x1c   : > { %797 = vmatmul.mubr.msk.bf16.gmra.mrb[4].mxu0 %vm520_vm0, %v243_v23 }
  0x1d   : > { %805 = vmatmul.mubr.msk.bf16.gmra.mrb[4].mxu1 %vm520_vm0, %v247_v24 }
  0xe7   : > { %v794_v55 = vpop.f32.mrb[0].mxu0 }
  0xe8   : > { %v588_v58 = vadd.f32 %v794_v55, %v500_v48  ;;  %v802_v59 = vpop.f32.mrb[0].mxu1  ;;  %v579_v61 = vpop.f32.mrb[1].mxu0 }
  0xe9   : > { %v620_v0 = vadd.f32 %v802_v59, %v508_v49  ;;  %v580_v1 = vadd.f32 %v579_v61, %v498_v50  ;;  %v611_v2 = vpop.f32.mrb[1].mxu1  ;;  %v795_v4 = vpop.f32.mrb[2].mxu0  ;;  %v657_v49 = vld [vmem:[%s888_s28 + $0x78] sm:$0xff] }
  0xea   : > { %v660_v8 = vadd.f32 %v644_v56, %v588_v58  ;;  %v612_v9 = vadd.f32 %v611_v2, %v506_v51  ;;  %v591_v10 = vadd.f32 %v795_v4, %v895_v52  ;;  %v803_v11 = vpop.f32.mrb[2].mxu1  ;;  %v582_v13 = vpop.f32.mrb[3].mxu0  ;;  %v647_v51 = vld [vmem:[%s888_s28 + $0x28] sm:$0xff] }
  0xeb   : > { %v668_v16 = vadd.f32 %v652_v60, %v620_v0  ;;  %v658_v17 = vadd.f32 %v642_v62, %v580_v1  ;;  %v623_v18 = vadd.f32 %v803_v11, %v895_v52  ;;  %v583_v19 = vadd.f32 %v582_v13, %v895_v52  ;;  %v614_v20 = vpop.f32.mrb[3].mxu1  ;;  %v655_v58 = vld [vmem:[%s888_s28 + $0x68] sm:$0xff] }
  0xec   : > { %676 = vst.msk [vmem:[%s916_s5 + $0x10] sm:$0xff] %vm520_vm0, %v660_v8  ;;  %v666_v22 = vadd.f32 %v650_v3, %v612_v9  ;;  %v661_v23 = vadd.f32 %v645_v5, %v591_v10  ;;  %v615_v24 = vadd.f32 %v614_v20, %v895_v52 }
  0xed   : > { %684 = vst.msk [vmem:[%s916_s5 + $0x50] sm:$0xff] %vm520_vm0, %v668_v16  ;;  %674 = vst.msk [vmem:[%s916_s5] sm:$0xff] %vm520_vm0, %v658_v17  ;;  %v669_v26 = vadd.f32 %v653_v12, %v623_v18  ;;  %v659_v27 = vadd.f32 %v643_v14, %v583_v19 }
  0xee   : > { %682 = vst.msk [vmem:[%s916_s5 + $0x40] sm:$0xff] %vm520_vm0, %v666_v22  ;;  %677 = vst.msk [vmem:[%s916_s5 + $0x18] sm:$0xff] %vm520_vm0, %v661_v23  ;;  %v667_v30 = vadd.f32 %v651_v21, %v615_v24 }
  0xef   : > { %685 = vst.msk [vmem:[%s916_s5 + $0x58] sm:$0xff] %vm520_vm0, %v669_v26  ;;  %675 = vst.msk [vmem:[%s916_s5 + $0x8] sm:$0xff] %vm520_vm0, %v659_v27  ;;  %v798_v32 = vpop.f32.mrb[4].mxu0 }
  0xf0   : > { %683 = vst.msk [vmem:[%s916_s5 + $0x48] sm:$0xff] %vm520_vm0, %v667_v30  ;;  %v604_v34 = vadd.f32 %v798_v32, %v504_v25  ;;  %v806_v35 = vpop.f32.mrb[4].mxu1  ;;  %v595_v37 = vpop.f32.mrb[5].mxu0 }
  0xf1   : > { %v636_v39 = vadd.f32 %v806_v35, %v512_v28  ;;  %v596_v41 = vadd.f32 %v595_v37, %v502_v29  ;;  %v627_v42 = vpop.f32.mrb[5].mxu1  ;;  %v799_v43 = vpop.f32.mrb[6].mxu0 }
  0xf2   : > { %v664_v45 = vadd.f32 %v648_v33, %v604_v34  ;;  %v628_v46 = vadd.f32 %v627_v42, %v510_v31  ;;  %v607_v47 = vadd.f32 %v799_v43, %v895_v52  ;;  %v807_v48 = vpop.f32.mrb[6].mxu1  ;;  %v598_v50 = vpop.f32.mrb[7].mxu0 }
  0xf3   : > { %v672_v53 = vadd.f32 %v656_v36, %v636_v39  ;;  %v662_v54 = vadd.f32 %v646_v38, %v596_v41  ;;  %v639_v55 = vadd.f32 %v807_v48, %v895_v52  ;;  %v599_v56 = vadd.f32 %v598_v50, %v895_v52  ;;  %v630_v57 = vpop.f32.mrb[7].mxu1 }
  0xf4   : > { %680 = vst.msk [vmem:[%s916_s5 + $0x30] sm:$0xff] %vm520_vm0, %v664_v45  ;;  %v670_v59 = vadd.f32 %v654_v40, %v628_v46  ;;  %v665_v60 = vadd.f32 %v649_v44, %v607_v47  ;;  %v631_v61 = vadd.f32 %v630_v57, %v895_v52 }
  0xf5   : > { %688 = vst.msk [vmem:[%s916_s5 + $0x70] sm:$0xff] %vm520_vm0, %v672_v53  ;;  %678 = vst.msk [vmem:[%s916_s5 + $0x20] sm:$0xff] %vm520_vm0, %v662_v54  ;;  %v673_v62 = vadd.f32 %v657_v49, %v639_v55  ;;  %v663_v63 = vadd.f32 %v647_v51, %v599_v56 }
  0xf6   : > { %686 = vst.msk [vmem:[%s916_s5 + $0x60] sm:$0xff] %vm520_vm0, %v670_v59  ;;  %681 = vst.msk [vmem:[%s916_s5 + $0x38] sm:$0xff] %vm520_vm0, %v665_v60  ;;  %v671_v0 = vadd.f32 %v655_v58, %v631_v61 }
  0xf7   : > { %689 = vst.msk [vmem:[%s916_s5 + $0x78] sm:$0xff] %vm520_vm0, %v673_v62  ;;  %679 = vst.msk [vmem:[%s916_s5 + $0x28] sm:$0xff] %vm520_vm0, %v663_v63 }
  0xf8   : > { %687 = vst.msk [vmem:[%s916_s5 + $0x68] sm:$0xff] %vm520_vm0, %v671_v0 }
  0xf9 PF: > { %s14_s15 = sadd.s32 1, %s826_s15  }
  0xfa   : > { %p11_p4 = scmp.ge.s32.totalorder %s14_s15, 4  }
  0xfc   :  { %13 = sbr.rel (!%p11_p4) target bundleno = 1 (0x1), region = 69 }

// kernel: _lambda_.30
= control target key start
LH: loop header
LB: loop body
LE: loop exit
PB: predicated region body
PF: predicated region fallthrough
CT: control target
= control target key end

     0   :  { %s3306_s12 = smov 0   ;;  %s4442_s0 = inlined_call_operand.vmem [shape: f32[16,128], index: 0, kind: input, shape index: {}]   ;;  %s4443_s1 = inlined_call_operand.vmem [shape: f32[16,128], index: 1, kind: input, shape index: {}]   ;;  %s4444_s2 = inlined_call_operand.vmem [shape: bf16[16,128,128], index: 2, kind: input, shape index: {}]   ;;  %s4445_s3 = inlined_call_operand.vmem [shape: f32[16,128], index: 3, kind: output, shape index: {}]  }
   0x1 LB: > { %s2265_s13 = sadd.s32 4294967295, %s3267_s12   ;;  %p2269_p0 = scmp.ge.s32.totalorder %s3267_s12, 1  ;;  %s3267_s12 = sphi %s3306_s12, %s13_s12  }
   0x2   : > { %p145_p1 = scmp.lt.s32.totalorder %s3267_s12, 3 }
   0x4   : > { %p146_p2 = pnand %p2269_p0, %p145_p1 }
   0x5   : > { %v3132_v0 = vld [vmem:[%s4444_s2] sm:$0xff] (!%p146_p2)   ;;  %v3269_v1 = vmov (!%p146_p2), 0.0   ;;  %v3134_v3 = vld [vmem:[%s4444_s2 + $0x8] sm:$0xff] (!%p146_p2)   ;;  %vm3270_vm0 = vmmov (!%p146_p2), 0   ;;  %p171_p3 = scmp.lt.s32.totalorder (!%p146_p2), %s2265_s13, 1  ;;  %v3136_v5 = vld [vmem:[%s4444_s2 + $0x10] sm:$0xff] (!%p146_p2)  }
   0x6   : > { %149 = sbr.rel (%p146_p2) target bundleno = 481 (0x1e1), region = 32  ;;  %2787 = vmatprep.subr.bf16.mxu0 (!%p146_p2), %v3269_v1  ;;  %2807 = vmatprep.subr.bf16.mxu1 (!%p146_p2), %v3269_v1  ;;  %v3133_v2 = vld [vmem:[%s4444_s2 + $0x40] sm:$0xff] (!%p146_p2)   ;;  %v3135_v4 = vld [vmem:[%s4444_s2 + $0x48] sm:$0xff] (!%p146_p2)   ;;  %v3137_v6 = vld [vmem:[%s4444_s2 + $0x50] sm:$0xff] (!%p146_p2)   ;;  %s3271_s11 = smov (!%p146_p2), 8   ;;  %vm337_vm1 = vcmask (!%p146_p2), 64512  }
   0x7   : > { %2788 = vmatpush3.bf16.msra.mxu0 (!%p146_p2), %v3132_v0  ;;  %2803 = vmatprep.mubr.msk.bf16.mxu0 (!%p146_p2), %vm3270_vm0, %v3269_v1  ;;  %v3138_v7 = vld [vmem:[%s4444_s2 + $0x18] sm:$0xff] (!%p146_p2)   ;;  %v3140_v9 = vld [vmem:[%s4444_s2 + $0x20] sm:$0xff] (!%p146_p2)   ;;  %v3142_v12 = vld [vmem:[%s4444_s2 + $0x28] sm:$0xff] (!%p146_p2)   ;;  %s3272_s15 = smov (!%p146_p2), 16   ;;  %s3273_s18 = smov (!%p146_p2), 120   ;;  %vm339_vm2 = vcmask (!%p146_p2), 130048  }
   0x8   : > { %2808 = vmatpush3.bf16.msra.mxu1 (!%p146_p2), %v3133_v2  ;;  %2789 = vmatprep.subr.bf16.mxu0 (!%p146_p2), %v3269_v1  ;;  %v3139_v8 = vld [vmem:[%s4444_s2 + $0x58] sm:$0xff] (!%p146_p2)   ;;  %v3141_v10 = vld [vmem:[%s4444_s2 + $0x60] sm:$0xff] (!%p146_p2)   ;;  %v3143_v13 = vld [vmem:[%s4444_s2 + $0x68] sm:$0xff] (!%p146_p2)   ;;  %s3274_s21 = smov (!%p146_p2), 24   ;;  %s3275_s29 = smov (!%p146_p2), 112   ;;  %vm341_vm3 = vcmask (!%p146_p2), 195584  }
   0x9   : > { %2809 = vmatprep.subr.bf16.mxu1 (!%p146_p2), %v3269_v1  ;;  %2823 = vmatprep.mubr.msk.bf16.mxu1 (!%p146_p2), %vm3270_vm0, %v3269_v1  ;;  %v3144_v14 = vld [vmem:[%s4444_s2 + $0x30] sm:$0xff] (!%p146_p2)   ;;  %v3146_v16 = vld [vmem:[%s4444_s2 + $0x38] sm:$0xff] (!%p146_p2)   ;;  %s3276_s4 = smov (!%p146_p2), 32   ;;  %s3277_s8 = smov (!%p146_p2), 40   ;;  %v3148_v20 = vld [vmem:[%s4444_s2 + $0x80] sm:$0xff] (!%p146_p2)   ;;  %vm343_vm4 = vcmask (!%p146_p2), 261120  }
   0xa   : > { %v3145_v15 = vld [vmem:[%s4444_s2 + $0x70] sm:$0xff] (!%p146_p2)   ;;  %v3147_v18 = vld [vmem:[%s4444_s2 + $0x78] sm:$0xff] (!%p146_p2)   ;;  %v3149_v21 = vld [vmem:[%s4444_s2 + $0xc0] sm:$0xff] (!%p146_p2)   ;;  %s3280_s20 = smov (!%p146_p2), 96   ;;  %s3281_s23 = smov (!%p146_p2), 56   ;;  %vm345_vm5 = vcmask (!%p146_p2), 326656  }
   0xb   : > { %2790 = vmatpush3.bf16.msra.mxu0 (!%p146_p2), %v3134_v3  ;;  %v3150_v22 = vld [vmem:[%s4444_s2 + $0x88] sm:$0xff] (!%p146_p2)   ;;  %v3152_v24 = vld [vmem:[%s4444_s2 + $0x90] sm:$0xff] (!%p146_p2)   ;;  %v3154_v26 = vld [vmem:[%s4444_s2 + $0x98] sm:$0xff] (!%p146_p2)   ;;  %s3284_s7 = smov (!%p146_p2), 80   ;;  %s3285_s10 = smov (!%p146_p2), 88   ;;  %vm347_vm6 = vcmask (!%p146_p2), 392192  }
   0xc   : > { %2810 = vmatpush3.bf16.msra.mxu1 (!%p146_p2), %v3135_v4  ;;  %2791 = vmatprep.subr.bf16.mxu0 (!%p146_p2), %v3269_v1  ;;  %v3151_v23 = vld [vmem:[%s4444_s2 + $0xc8] sm:$0xff] (!%p146_p2)   ;;  %v3153_v25 = vld [vmem:[%s4444_s2 + $0xd0] sm:$0xff] (!%p146_p2)   ;;  %v3155_v27 = vld [vmem:[%s4444_s2 + $0xd8] sm:$0xff] (!%p146_p2)   ;;  %vm349_vm7 = vcmask (!%p146_p2), 457728   ;;  %vm351_vm8 = vcmask (!%p146_p2), 523264   ;;  %vm353_vm9 = vcmask (!%p146_p2), 588800  }
   0xd   : > { %2811 = vmatprep.subr.bf16.mxu1 %v3269_v1  ;;  %s4447_s13 = smov (!%p171_p3, %s2265_s13), 1  ;;  %v3156_v28 = vld [vmem:[%s4444_s2 + $0xa0] sm:$0xff]   ;;  %v3158_v30 = vld [vmem:[%s4444_s2 + $0xa8] sm:$0xff]   ;;  %v3160_v32 = vld [vmem:[%s4444_s2 + $0xb0] sm:$0xff]   ;;  %vm355_vm10 = vcmask 654336   ;;  %vm357_vm11 = vcmask 719872  }
   0xe   : > { %s3350_s30 = sshll.u32 %s4447_s13, 3  ;;  %v3157_v29 = vld [vmem:[%s4444_s2 + $0xe0] sm:$0xff]   ;;  %v3159_v31 = vld [vmem:[%s4444_s2 + $0xe8] sm:$0xff]   ;;  %v3161_v33 = vld [vmem:[%s4444_s2 + $0xf0] sm:$0xff]   ;;  %vm359_vm12 = vcmask 785408   ;;  %vm361_vm13 = vcmask 850944  }
   0xf   : > { %2792 = vmatpush3.bf16.msra.mxu0 %v3136_v5  ;;  %s3356_s6 = scalar_lea.vmem %s4442_s0, %s3350_s30  ;;  %s178_s26 = scalar_lea.vmem %s4443_s1, %s3350_s30  ;;  %v3162_v34 = vld [vmem:[%s4444_s2 + $0xb8] sm:$0xff]   ;;  %v3164_v36 = vld [vmem:[%s4444_s2 + $0x100] sm:$0xff]   ;;  %v3166_v38 = vld [vmem:[%s4444_s2 + $0x108] sm:$0xff]   ;;  %vm363_vm14 = vcmask 916480   ;;  %vm365_vm15 = vcmask 982016  }
  0x10   : > { %2812 = vmatpush3.bf16.msra.mxu1 %v3137_v6  ;;  %2793 = vmatprep.subr.bf16.mxu0 %v3269_v1  ;;  %v3367_v11 = vld [vmem:[%s3356_s6] sm:$0xff]  ;;  %v3163_v35 = vld [vmem:[%s4444_s2 + $0xf8] sm:$0xff]   ;;  %v3167_v39 = vld [vmem:[%s4444_s2 + $0x148] sm:$0xff]   ;;  %s182_s25 = scalar_lea.vmem %s4445_s3, %s3350_s30 }
  0x11   : > { %2813 = vmatprep.subr.bf16.mxu1 %v3269_v1  ;;  %292 = vrot.lane.b32.xlu0 %v3367_v11, %s3271_s11  ;;  %v185_v17 = vld [vmem:[%s178_s26] sm:$0xff]  ;;  %s3278_s11 = smov 104   ;;  %s3282_s26 = smov 72   ;;  %v3168_v40 = vld [vmem:[%s4444_s2 + $0x110] sm:$0xff]   ;;  %v3170_v42 = vld [vmem:[%s4444_s2 + $0x118] sm:$0xff]  }
  0x12   : > { %295 = vrot.lane.b32.xlu1 %v3367_v11, %s3272_s15  ;;  %v3403_v19 = vpack.c.bf16 %v185_v17, %v185_v17  ;;  %s3279_s15 = smov 48   ;;  %v3165_v37 = vld [vmem:[%s4444_s2 + $0x140] sm:$0xff]   ;;  %v3169_v41 = vld [vmem:[%s4444_s2 + $0x150] sm:$0xff]   ;;  %v3171_v43 = vld [vmem:[%s4444_s2 + $0x158] sm:$0xff]  }
  0x13   : > { %2794 = vmatpush3.bf16.msra.mxu0 %v3138_v7  ;;  %v3172_v44 = vld [vmem:[%s4444_s2 + $0x120] sm:$0xff]   ;;  %v3174_v46 = vld [vmem:[%s4444_s2 + $0x128] sm:$0xff]   ;;  %v3176_v48 = vld [vmem:[%s4444_s2 + $0x130] sm:$0xff]  }
  0x14   : > { %2814 = vmatpush3.bf16.msra.mxu1 %v3139_v8  ;;  %2795 = vmatprep.subr.bf16.mxu0 %v3269_v1  ;;  %v3173_v45 = vld [vmem:[%s4444_s2 + $0x160] sm:$0xff]   ;;  %v3175_v47 = vld [vmem:[%s4444_s2 + $0x168] sm:$0xff]   ;;  %v3177_v49 = vld [vmem:[%s4444_s2 + $0x170] sm:$0xff]  }
  0x15   : > { %2815 = vmatprep.subr.bf16.mxu1 %v3269_v1  ;;  %334 = vrot.lane.b32.xlu0 %v3367_v11, %s3273_s18  ;;  %v3178_v50 = vld [vmem:[%s4444_s2 + $0x138] sm:$0xff]   ;;  %v3180_v52 = vld [vmem:[%s4444_s2 + $0x180] sm:$0xff]   ;;  %v3182_v54 = vld [vmem:[%s4444_s2 + $0x188] sm:$0xff]  }
  0x16   : > { %298 = vrot.lane.b32.xlu1 %v3367_v11, %s3274_s21  ;;  %v3179_v51 = vld [vmem:[%s4444_s2 + $0x178] sm:$0xff]   ;;  %v3181_v53 = vld [vmem:[%s4444_s2 + $0x1c0] sm:$0xff]   ;;  %v3183_v55 = vld [vmem:[%s4444_s2 + $0x1c8] sm:$0xff]  }
  0x17   : > { %2796 = vmatpush3.bf16.msra.mxu0 %v3140_v9  ;;  %v3184_v56 = vld [vmem:[%s4444_s2 + $0x190] sm:$0xff]   ;;  %v3186_v58 = vld [vmem:[%s4444_s2 + $0x198] sm:$0xff]   ;;  %v3188_v60 = vld [vmem:[%s4444_s2 + $0x1a0] sm:$0xff]  }
  0x18   : > { %2816 = vmatpush3.bf16.msra.mxu1 %v3141_v10  ;;  %2797 = vmatprep.subr.bf16.mxu0 %v3269_v1  ;;  %v3185_v57 = vld [vmem:[%s4444_s2 + $0x1d0] sm:$0xff]   ;;  %v3187_v59 = vld [vmem:[%s4444_s2 + $0x1d8] sm:$0xff]   ;;  %v3189_v61 = vld [vmem:[%s4444_s2 + $0x1e0] sm:$0xff]  }
  0x19   : > { %2817 = vmatprep.subr.bf16.mxu1 %v3269_v1  ;;  %331 = vrot.lane.b32.xlu0 %v3367_v11, %s3275_s29  ;;  %s3283_s29 = smov 64   ;;  %v3190_v62 = vld [vmem:[%s4444_s2 + $0x1a8] sm:$0xff]   ;;  %v3192_v0 = vld [vmem:[%s4444_s2 + $0x1b0] sm:$0xff]   ;;  %v3194_v3 = vld [vmem:[%s4444_s2 + $0x1b8] sm:$0xff]  }
  0x1a   : > { %301 = vrot.lane.b32.xlu1 %v3367_v11, %s3276_s4  ;;  %v3191_v63 = vld [vmem:[%s4444_s2 + $0x1e8] sm:$0xff]   ;;  %v3193_v2 = vld [vmem:[%s4444_s2 + $0x1f0] sm:$0xff]   ;;  %v3195_v4 = vld [vmem:[%s4444_s2 + $0x1f8] sm:$0xff]  }
  0x1b   : > { %2798 = vmatpush3.bf16.msra.mxu0 %v3142_v12  ;;  %v3196_v5 = vld [vmem:[%s4444_s2 + $0x200] sm:$0xff]   ;;  %v3198_v7 = vld [vmem:[%s4444_s2 + $0x208] sm:$0xff]   ;;  %v3200_v9 = vld [vmem:[%s4444_s2 + $0x210] sm:$0xff]  }
  0x1c   : > { %2818 = vmatpush3.bf16.msra.mxu1 %v3143_v13  ;;  %2799 = vmatprep.subr.bf16.mxu0 %v3269_v1  ;;  %v3197_v6 = vld [vmem:[%s4444_s2 + $0x240] sm:$0xff]   ;;  %v3199_v8 = vld [vmem:[%s4444_s2 + $0x248] sm:$0xff]   ;;  %v3201_v10 = vld [vmem:[%s4444_s2 + $0x250] sm:$0xff]  }
  0x1d   : > { %2819 = vmatprep.subr.bf16.mxu1 %v3269_v1  ;;  %304 = vrot.lane.b32.xlu0 %v3367_v11, %s3277_s8  ;;  %v3203_v12 = vld [vmem:[%s4444_s2 + $0x258] sm:$0xff]   ;;  %v3204_v13 = vld [vmem:[%s4444_s2 + $0x220] sm:$0xff]   ;;  %v3208_v17 = vld [vmem:[%s4444_s2 + $0x230] sm:$0xff]  }
  0x1e   : > { %328 = vrot.lane.b32.xlu1 %v3367_v11, %s3278_s11 }
  0x1f   : > { %2800 = vmatpush3.bf16.msra.mxu0 %v3144_v14  ;;  %v3205_v14 = vld [vmem:[%s4444_s2 + $0x260] sm:$0xff]  }
  0x20   : > { %2820 = vmatpush3.bf16.msra.mxu1 %v3145_v15  ;;  %2801 = vmatprep.subr.bf16.mxu0 %v3269_v1  ;;  %v3206_v15 = vld [vmem:[%s4444_s2 + $0x228] sm:$0xff]  }
  0x21   : > { %2821 = vmatprep.subr.bf16.mxu1 %v3269_v1  ;;  %307 = vrot.lane.b32.xlu0 %v3367_v11, %s3279_s15 }
  0x22   : > { %310 = vrot.lane.b32.xlu1 %v3367_v11, %s3281_s23 }
  0x23   : > { %2802 = vmatpush3.bf16.msra.mxu0 %v3146_v16  ;;  %v3207_v16 = vld [vmem:[%s4444_s2 + $0x268] sm:$0xff]  }
  0x24   : > { %2822 = vmatpush3.bf16.msra.mxu1 %v3147_v18  ;;  %2827 = vmatprep.subr.bf16.mxu0 %v3269_v1  ;;  %v3209_v18 = vld [vmem:[%s4444_s2 + $0x270] sm:$0xff]  }
  0x25   : > { %2847 = vmatprep.subr.bf16.mxu1 %v3269_v1  ;;  %325 = vrot.lane.b32.xlu0 %v3367_v11, %s3280_s20 }
  0x26   : > { %2804 = vmatmul.mubr.bf16.vlgmr.msra.gmra.mrb[0].mxu0 %v3403_v19  ;;  %313 = vrot.lane.b32.xlu1 %v3367_v11, %s3283_s29 }
  0x27   : > { %2824 = vmatmul.mubr.bf16.vlgmr.msra.gmra.mrb[0].mxu1 %v3403_v19  ;;  %2828 = vmatpush3.bf16.msra.mxu0 %v3148_v20  ;;  %v3210_v20 = vld [vmem:[%s4444_s2 + $0x238] sm:$0xff]  }
  0x28   : > { %2848 = vmatpush3.bf16.msra.mxu1 %v3149_v21  ;;  %2829 = vmatprep.subr.bf16.mxu0 %v3269_v1  ;;  %v3211_v21 = vld [vmem:[%s4444_s2 + $0x278] sm:$0xff]  }
  0x29   : > { %2849 = vmatprep.subr.bf16.mxu1 %v3269_v1  ;;  %2843 = vmatprep.mubr.msk.bf16.mxu0 %vm3270_vm0, %v3269_v1 }
  0x2a   : > { %2863 = vmatprep.mubr.msk.bf16.mxu1 %vm3270_vm0, %v3269_v1  ;;  %316 = vrot.lane.b32.xlu0 %v3367_v11, %s3282_s26 }
  0x2b   : > { %2830 = vmatpush3.bf16.msra.mxu0 %v3150_v22  ;;  %322 = vrot.lane.b32.xlu1 %v3367_v11, %s3285_s10  ;;  %v3212_v22 = vld [vmem:[%s4444_s2 + $0x280] sm:$0xff]  }
  0x2c   : > { %2850 = vmatpush3.bf16.msra.mxu1 %v3151_v23  ;;  %2831 = vmatprep.subr.bf16.mxu0 %v3269_v1  ;;  %v3213_v23 = vld [vmem:[%s4444_s2 + $0x2c0] sm:$0xff]  }
  0x2d   : > { %2851 = vmatprep.subr.bf16.mxu1 %v3269_v1 }
  0x2e   : > { %319 = vrot.lane.b32.xlu0 %v3367_v11, %s3284_s7  ;;  %v3202_v11 = vld [vmem:[%s4444_s2 + $0x218] sm:$0xff]  }
  0x2f   : > { %2832 = vmatpush3.bf16.msra.mxu0 %v3152_v24  ;;  %v3214_v24 = vld [vmem:[%s4444_s2 + $0x288] sm:$0xff]  }
  0x30   : > { %2852 = vmatpush3.bf16.msra.mxu1 %v3153_v25  ;;  %2833 = vmatprep.subr.bf16.mxu0 %v3269_v1  ;;  %v3215_v25 = vld [vmem:[%s4444_s2 + $0x2c8] sm:$0xff]  }
  0x31   : > { %2853 = vmatprep.subr.bf16.mxu1 %v3269_v1 }
  0x33   : > { %2834 = vmatpush3.bf16.msra.mxu0 %v3154_v26  ;;  %v3216_v26 = vld [vmem:[%s4444_s2 + $0x290] sm:$0xff]  }
  0x34   : > { %2854 = vmatpush3.bf16.msra.mxu1 %v3155_v27  ;;  %2835 = vmatprep.subr.bf16.mxu0 %v3269_v1  ;;  %v3217_v27 = vld [vmem:[%s4444_s2 + $0x2d0] sm:$0xff]  }
  0x35   : > { %2855 = vmatprep.subr.bf16.mxu1 %v3269_v1 }
  0x37   : > { %2836 = vmatpush3.bf16.msra.mxu0 %v3156_v28  ;;  %v3218_v28 = vld [vmem:[%s4444_s2 + $0x298] sm:$0xff]  }
  0x38   : > { %2856 = vmatpush3.bf16.msra.mxu1 %v3157_v29  ;;  %2837 = vmatprep.subr.bf16.mxu0 %v3269_v1  ;;  %v3219_v29 = vld [vmem:[%s4444_s2 + $0x2d8] sm:$0xff]  }
  0x39   : > { %2857 = vmatprep.subr.bf16.mxu1 %v3269_v1 }
  0x3b   : > { %2838 = vmatpush3.bf16.msra.mxu0 %v3158_v30  ;;  %v3220_v30 = vld [vmem:[%s4444_s2 + $0x2a0] sm:$0xff]  }
  0x3c   : > { %2858 = vmatpush3.bf16.msra.mxu1 %v3159_v31  ;;  %2839 = vmatprep.subr.bf16.mxu0 %v3269_v1  ;;  %v3221_v31 = vld [vmem:[%s4444_s2 + $0x2e0] sm:$0xff]  }
  0x3d   : > { %2859 = vmatprep.subr.bf16.mxu1 %v3269_v1 }
  0x3f   : > { %2840 = vmatpush3.bf16.msra.mxu0 %v3160_v32  ;;  %v3222_v32 = vld [vmem:[%s4444_s2 + $0x2a8] sm:$0xff]  }
  0x40   : > { %2860 = vmatpush3.bf16.msra.mxu1 %v3161_v33  ;;  %2841 = vmatprep.subr.bf16.mxu0 %v3269_v1  ;;  %v3223_v33 = vld [vmem:[%s4444_s2 + $0x2e8] sm:$0xff]  }
  0x41   : > { %2861 = vmatprep.subr.bf16.mxu1 %v3269_v1 }
  0x43   : > { %2842 = vmatpush3.bf16.msra.mxu0 %v3162_v34  ;;  %v3224_v34 = vld [vmem:[%s4444_s2 + $0x2b0] sm:$0xff]  }
  0x44   : > { %2862 = vmatpush3.bf16.msra.mxu1 %v3163_v35  ;;  %2867 = vmatprep.subr.bf16.mxu0 %v3269_v1 }
  0x45   : > { %2887 = vmatprep.subr.bf16.mxu1 %v3269_v1 }
  0x46   : > { %2844 = vmatmul.mubr.bf16.vlgmr.msra.gmra.mrb[4].mxu0 %v3403_v19 }
  0x47   : > { %2864 = vmatmul.mubr.bf16.vlgmr.msra.gmra.mrb[4].mxu1 %v3403_v19  ;;  %2868 = vmatpush3.bf16.msra.mxu0 %v3164_v36  ;;  %v3225_v36 = vld [vmem:[%s4444_s2 + $0x2f0] sm:$0xff]  }
  0x48   : > { %2888 = vmatpush3.bf16.msra.mxu1 %v3165_v37  ;;  %2869 = vmatprep.subr.bf16.mxu0 %v3269_v1  ;;  %v3226_v37 = vld [vmem:[%s4444_s2 + $0x2b8] sm:$0xff]  }
  0x49   : > { %2889 = vmatprep.subr.bf16.mxu1 %v3269_v1  ;;  %2883 = vmatprep.mubr.msk.bf16.mxu0 %vm3270_vm0, %v3269_v1 }
  0x4a   : > { %2903 = vmatprep.mubr.msk.bf16.mxu1 %vm3270_vm0, %v3269_v1 }
  0x4b   : > { %2870 = vmatpush3.bf16.msra.mxu0 %v3166_v38  ;;  %v3227_v38 = vld [vmem:[%s4444_s2 + $0x2f8] sm:$0xff]  }
  0x4c   : > { %2890 = vmatpush3.bf16.msra.mxu1 %v3167_v39  ;;  %2871 = vmatprep.subr.bf16.mxu0 %v3269_v1 }
  0x4d   : > { %2891 = vmatprep.subr.bf16.mxu1 %v3269_v1 }
  0x4f   : > { %2872 = vmatpush3.bf16.msra.mxu0 %v3168_v40 }
  0x50   : > { %2892 = vmatpush3.bf16.msra.mxu1 %v3169_v41  ;;  %2873 = vmatprep.subr.bf16.mxu0 %v3269_v1  ;;  %v3228_v41 = vld [vmem:[%s4444_s2 + $0x300] sm:$0xff]  }
  0x51   : > { %2893 = vmatprep.subr.bf16.mxu1 %v3269_v1 }
  0x53   : > { %2874 = vmatpush3.bf16.msra.mxu0 %v3170_v42  ;;  %v3229_v42 = vld [vmem:[%s4444_s2 + $0x340] sm:$0xff]  }
  0x54   : > { %2894 = vmatpush3.bf16.msra.mxu1 %v3171_v43  ;;  %2875 = vmatprep.subr.bf16.mxu0 %v3269_v1  ;;  %v3230_v43 = vld [vmem:[%s4444_s2 + $0x308] sm:$0xff]  }
  0x55   : > { %2895 = vmatprep.subr.bf16.mxu1 %v3269_v1 }
  0x57   : > { %2876 = vmatpush3.bf16.msra.mxu0 %v3172_v44 }
  0x58   : > { %2896 = vmatpush3.bf16.msra.mxu1 %v3173_v45  ;;  %2877 = vmatprep.subr.bf16.mxu0 %v3269_v1 }
  0x59   : > { %2897 = vmatprep.subr.bf16.mxu1 %v3269_v1 }
  0x5b   : > { %2878 = vmatpush3.bf16.msra.mxu0 %v3174_v46  ;;  %v3231_v46 = vld [vmem:[%s4444_s2 + $0x348] sm:$0xff]  }
  0x5c   : > { %2898 = vmatpush3.bf16.msra.mxu1 %v3175_v47  ;;  %2879 = vmatprep.subr.bf16.mxu0 %v3269_v1  ;;  %v3232_v47 = vld [vmem:[%s4444_s2 + $0x310] sm:$0xff]  }
  0x5d   : > { %2899 = vmatprep.subr.bf16.mxu1 %v3269_v1 }
  0x5f   : > { %2880 = vmatpush3.bf16.msra.mxu0 %v3176_v48  ;;  %v3233_v48 = vld [vmem:[%s4444_s2 + $0x350] sm:$0xff]  }
  0x60   : > { %2900 = vmatpush3.bf16.msra.mxu1 %v3177_v49  ;;  %2881 = vmatprep.subr.bf16.mxu0 %v3269_v1 }
  0x61   : > { %2901 = vmatprep.subr.bf16.mxu1 %v3269_v1 }
  0x63   : > { %2882 = vmatpush3.bf16.msra.mxu0 %v3178_v50 }
  0x64   : > { %2902 = vmatpush3.bf16.msra.mxu1 %v3179_v51  ;;  %2907 = vmatprep.subr.bf16.mxu0 %v3269_v1  ;;  %v3809_v51 = vld [vmem:[%s3356_s6] sm:$0xff] }
  0x65   : > { %2927 = vmatprep.subr.bf16.mxu1 %v3269_v1 }
  0x66   : > { %2884 = vmatmul.mubr.bf16.vlgmr.msra.gmra.mrb[8].mxu0 %v3403_v19 }
  0x67   : > { %2904 = vmatmul.mubr.bf16.vlgmr.msra.gmra.mrb[8].mxu1 %v3403_v19  ;;  %2908 = vmatpush3.bf16.msra.mxu0 %v3180_v52 }
  0x68   : > { %2928 = vmatpush3.bf16.msra.mxu1 %v3181_v53  ;;  %2909 = vmatprep.subr.bf16.mxu0 %v3269_v1 }
  0x69   : > { %2929 = vmatprep.subr.bf16.mxu1 %v3269_v1  ;;  %2923 = vmatprep.mubr.msk.bf16.mxu0 %vm3270_vm0, %v3269_v1 }
  0x6a   : > { %2943 = vmatprep.mubr.msk.bf16.mxu1 %vm3270_vm0, %v3269_v1 }
  0x6b   : > { %2910 = vmatpush3.bf16.msra.mxu0 %v3182_v54  ;;  %v3234_v54 = vld [vmem:[%s4444_s2 + $0x318] sm:$0xff]  }
  0x6c   : > { %2930 = vmatpush3.bf16.msra.mxu1 %v3183_v55  ;;  %2911 = vmatprep.subr.bf16.mxu0 %v3269_v1  ;;  %v3235_v55 = vld [vmem:[%s4444_s2 + $0x358] sm:$0xff]  }
  0x6d   : > { %2931 = vmatprep.subr.bf16.mxu1 %v3269_v1 }
  0x6f   : > { %2912 = vmatpush3.bf16.msra.mxu0 %v3184_v56 }
  0x70   : > { %2932 = vmatpush3.bf16.msra.mxu1 %v3185_v57  ;;  %2913 = vmatprep.subr.bf16.mxu0 %v3269_v1 }
  0x71   : > { %2933 = vmatprep.subr.bf16.mxu1 %v3269_v1 }
  0x73   : > { %2914 = vmatpush3.bf16.msra.mxu0 %v3186_v58  ;;  %v3236_v58 = vld [vmem:[%s4444_s2 + $0x320] sm:$0xff]  }
  0x74   : > { %2934 = vmatpush3.bf16.msra.mxu1 %v3187_v59  ;;  %2915 = vmatprep.subr.bf16.mxu0 %v3269_v1 }
  0x75   : > { %2935 = vmatprep.subr.bf16.mxu1 %v3269_v1 }
  0x77   : > { %2916 = vmatpush3.bf16.msra.mxu0 %v3188_v60 }
  0x78   : > { %2936 = vmatpush3.bf16.msra.mxu1 %v3189_v61  ;;  %2917 = vmatprep.subr.bf16.mxu0 %v3269_v1 }
  0x79   : > { %2937 = vmatprep.subr.bf16.mxu1 %v3269_v1 }
  0x7b   : > { %2918 = vmatpush3.bf16.msra.mxu0 %v3190_v62  ;;  %v3237_v62 = vld [vmem:[%s4444_s2 + $0x360] sm:$0xff]  }
  0x7c   : > { %2938 = vmatpush3.bf16.msra.mxu1 %v3191_v63  ;;  %2919 = vmatprep.subr.bf16.mxu0 %v3269_v1 }
  0x7d   : > { %2939 = vmatprep.subr.bf16.mxu1 %v3269_v1 }
  0x7f   : > { %2920 = vmatpush3.bf16.msra.mxu0 %v3192_v0 }
  0x80   : > { %2940 = vmatpush3.bf16.msra.mxu1 %v3193_v2  ;;  %2921 = vmatprep.subr.bf16.mxu0 %v3269_v1  ;;  %v3238_v2 = vld [vmem:[%s4444_s2 + $0x328] sm:$0xff]  }
  0x81   : > { %2941 = vmatprep.subr.bf16.mxu1 %v3269_v1 }
  0x83   : > { %2922 = vmatpush3.bf16.msra.mxu0 %v3194_v3  ;;  %v3751_v35 = vpop.permute.xlu0 %292 }
  0x84   : > { %2942 = vmatpush3.bf16.msra.mxu1 %v3195_v4  ;;  %2947 = vmatprep.subr.bf16.mxu0 %v3269_v1  ;;  %v3768_v40 = vpop.permute.xlu1 %295  ;;  %v338_v52 = vsel %vm337_vm1, %v3809_v51, %v3751_v35  ;;  %v3239_v4 = vld [vmem:[%s4444_s2 + $0x368] sm:$0xff]  }
  0x85   : > { %2967 = vmatprep.subr.bf16.mxu1 %v3269_v1  ;;  %v340_v56 = vsel %vm339_vm2, %v338_v52, %v3768_v40 }
  0x86   : > { %2924 = vmatmul.mubr.bf16.vlgmr.msra.gmra.mrb[12].mxu0 %v3403_v19 }
  0x87   : > { %2944 = vmatmul.mubr.bf16.vlgmr.msra.gmra.mrb[12].mxu1 %v3403_v19  ;;  %2948 = vmatpush3.bf16.msra.mxu0 %v3196_v5  ;;  %v3766_v39 = vpop.permute.xlu0 %334 }
  0x88   : > { %2968 = vmatpush3.bf16.msra.mxu1 %v3197_v6  ;;  %2949 = vmatprep.subr.bf16.mxu0 %v3269_v1  ;;  %v3785_v45 = vpop.permute.xlu1 %298  ;;  %v474_v53 = vsel %vm337_vm1, %v3766_v39, %v3809_v51 }
  0x89   : > { %2969 = vmatprep.subr.bf16.mxu1 %v3269_v1  ;;  %2963 = vmatprep.mubr.msk.bf16.mxu0 %vm3270_vm0, %v3269_v1  ;;  %v475_v57 = vsel %vm339_vm2, %v474_v53, %v3751_v35  ;;  %v342_v61 = vsel %vm341_vm3, %v340_v56, %v3785_v45  ;;  %v3253_v56 = vld [vmem:[%s4444_s2 + $0x3e0] sm:$0xff]  }
  0x8a   : > { %2983 = vmatprep.mubr.msk.bf16.mxu1 %vm3270_vm0, %v3269_v1  ;;  %v476_v63 = vsel %vm341_vm3, %v475_v57, %v3768_v40 }
  0x8b   : > { %2950 = vmatpush3.bf16.msra.mxu0 %v3198_v7  ;;  %v3783_v44 = vpop.permute.xlu0 %331  ;;  %v477_v3 = vsel %vm343_vm4, %v476_v63, %v3785_v45 }
  0x8c   : > { %2970 = vmatpush3.bf16.msra.mxu1 %v3199_v8  ;;  %2951 = vmatprep.subr.bf16.mxu0 %v3269_v1  ;;  %v3806_v50 = vpop.permute.xlu1 %301 }
  0x8d   : > { %2971 = vmatprep.subr.bf16.mxu1 %v3269_v1  ;;  %v344_v0 = vsel %vm343_vm4, %v342_v61, %v3806_v50  ;;  %v478_v8 = vsel %vm345_vm5, %v477_v3, %v3806_v50 }
  0x8f   : > { %2952 = vmatpush3.bf16.msra.mxu0 %v3200_v9  ;;  %v3804_v49 = vpop.permute.xlu0 %304  ;;  %v3240_v9 = vld [vmem:[%s4444_s2 + $0x330] sm:$0xff]  }
  0x90   : > { %2972 = vmatpush3.bf16.msra.mxu1 %v3201_v10  ;;  %2953 = vmatprep.subr.bf16.mxu0 %v3269_v1  ;;  %v3834_v60 = vpop.permute.xlu1 %328  ;;  %v346_v7 = vsel %vm345_vm5, %v344_v0, %v3804_v49  ;;  %v3241_v10 = vld [vmem:[%s4444_s2 + $0x370] sm:$0xff]   ;;  %v3254_v0 = vld [vmem:[%s4444_s2 + $0x3a8] sm:$0xff]  }
  0x91   : > { %2973 = vmatprep.subr.bf16.mxu1 %v3269_v1 }
  0x93   : > { %2954 = vmatpush3.bf16.msra.mxu0 %v3202_v11  ;;  %v3832_v59 = vpop.permute.xlu0 %307 }
  0x94   : > { %2974 = vmatpush3.bf16.msra.mxu1 %v3203_v12  ;;  %2955 = vmatprep.subr.bf16.mxu0 %v3269_v1  ;;  %v3859_v6 = vpop.permute.xlu1 %310  ;;  %v348_v11 = vsel %vm347_vm6, %v346_v7, %v3832_v59  ;;  %v479_v12 = vsel %vm347_vm6, %v478_v8, %v3804_v49 }
  0x95   : > { %2975 = vmatprep.subr.bf16.mxu1 %v3269_v1 }
  0x97   : > { %2956 = vmatpush3.bf16.msra.mxu0 %v3204_v13  ;;  %v3857_v5 = vpop.permute.xlu0 %325  ;;  %v3242_v13 = vld [vmem:[%s4444_s2 + $0x338] sm:$0xff]  }
  0x98   : > { %2976 = vmatpush3.bf16.msra.mxu1 %v3205_v14  ;;  %2957 = vmatprep.subr.bf16.mxu0 %v3269_v1 }
  0x99   : > { %2977 = vmatprep.subr.bf16.mxu1 %v3269_v1 }
  0x9b   : > { %2958 = vmatpush3.bf16.msra.mxu0 %v3206_v15  ;;  %v3882_v15 = vpop.permute.xlu1 %313 }
  0x9c   : > { %2978 = vmatpush3.bf16.msra.mxu1 %v3207_v16  ;;  %2959 = vmatprep.subr.bf16.mxu0 %v3269_v1  ;;  %v3880_v14 = vpop.permute.xlu0 %316  ;;  %v350_v16 = vsel %vm349_vm7, %v348_v11, %v3859_v6 }
  0x9d   : > { %2979 = vmatprep.subr.bf16.mxu1 %v3269_v1 }
  0x9f   : > { %2960 = vmatpush3.bf16.msra.mxu0 %v3208_v17  ;;  %v3243_v17 = vld [vmem:[%s4444_s2 + $0x378] sm:$0xff]  }
  0xa0   : > { %2980 = vmatpush3.bf16.msra.mxu1 %v3209_v18  ;;  %2961 = vmatprep.subr.bf16.mxu0 %v3269_v1  ;;  %v480_v18 = vsel %vm349_vm7, %v479_v12, %v3832_v59 }
  0xa1   : > { %2981 = vmatprep.subr.bf16.mxu1 %v3269_v1 }
  0xa3   : > { %2962 = vmatpush3.bf16.msra.mxu0 %v3210_v20  ;;  %v352_v20 = vsel %vm351_vm8, %v350_v16, %v3882_v15 }
  0xa4   : > { %2982 = vmatpush3.bf16.msra.mxu1 %v3211_v21  ;;  %2987 = vmatprep.subr.bf16.mxu0 %v3269_v1  ;;  %v3244_v21 = vld [vmem:[%s4444_s2 + $0x380] sm:$0xff]  }
  0xa5   : > { %3007 = vmatprep.subr.bf16.mxu1 %v3269_v1 }
  0xa6   : > { %2964 = vmatmul.mubr.bf16.vlgmr.msra.gmra.mrb[16].mxu0 %v3403_v19 }
  0xa7   : > { %2984 = vmatmul.mubr.bf16.vlgmr.msra.gmra.mrb[16].mxu1 %v3403_v19  ;;  %2988 = vmatpush3.bf16.msra.mxu0 %v3212_v22  ;;  %v481_v22 = vsel %vm351_vm8, %v480_v18, %v3859_v6  ;;  %v3256_v18 = vld [vmem:[%s4444_s2 + $0x3b0] sm:$0xff]  }
  0xa8   : > { %3008 = vmatpush3.bf16.msra.mxu1 %v3213_v23  ;;  %2989 = vmatprep.subr.bf16.mxu0 %v3269_v1  ;;  %v3245_v23 = vld [vmem:[%s4444_s2 + $0x3c0] sm:$0xff]  }
  0xa9   : > { %3009 = vmatprep.subr.bf16.mxu1 %v3269_v1  ;;  %3003 = vmatprep.mubr.msk.bf16.mxu0 %vm3270_vm0, %v3269_v1 }
  0xaa   : > { %3023 = vmatprep.mubr.msk.bf16.mxu1 %vm3270_vm0, %v3269_v1 }
  0xab   : > { %2990 = vmatpush3.bf16.msra.mxu0 %v3214_v24  ;;  %v3905_v24 = vpop.permute.xlu0 %319 }
  0xac   : > { %3010 = vmatpush3.bf16.msra.mxu1 %v3215_v25  ;;  %2991 = vmatprep.subr.bf16.mxu0 %v3269_v1  ;;  %v354_v25 = vsel %vm353_vm9, %v352_v20, %v3880_v14 }
  0xad   : > { %3011 = vmatprep.subr.bf16.mxu1 %v3269_v1 }
  0xaf   : > { %2992 = vmatpush3.bf16.msra.mxu0 %v3216_v26  ;;  %v482_v26 = vsel %vm353_vm9, %v481_v22, %v3882_v15  ;;  %v3257_v22 = vld [vmem:[%s4444_s2 + $0x3f0] sm:$0xff]  }
  0xb0   : > { %3012 = vmatpush3.bf16.msra.mxu1 %v3217_v27  ;;  %2993 = vmatprep.subr.bf16.mxu0 %v3269_v1  ;;  %v3246_v27 = vld [vmem:[%s4444_s2 + $0x388] sm:$0xff]  }
  0xb1   : > { %3013 = vmatprep.subr.bf16.mxu1 %v3269_v1 }
  0xb3   : > { %2994 = vmatpush3.bf16.msra.mxu0 %v3218_v28  ;;  %v3247_v28 = vld [vmem:[%s4444_s2 + $0x3c8] sm:$0xff]  }
  0xb4   : > { %3014 = vmatpush3.bf16.msra.mxu1 %v3219_v29  ;;  %2995 = vmatprep.subr.bf16.mxu0 %v3269_v1  ;;  %v3920_v29 = vpop.permute.xlu1 %322 }
  0xb5   : > { %3015 = vmatprep.subr.bf16.mxu1 %v3269_v1 }
  0xb7   : > { %2996 = vmatpush3.bf16.msra.mxu0 %v3220_v30  ;;  %v356_v30 = vsel %vm355_vm10, %v354_v25, %v3905_v24 }
  0xb8   : > { %3016 = vmatpush3.bf16.msra.mxu1 %v3221_v31  ;;  %2997 = vmatprep.subr.bf16.mxu0 %v3269_v1  ;;  %v483_v31 = vsel %vm355_vm10, %v482_v26, %v3880_v14 }
  0xb9   : > { %3017 = vmatprep.subr.bf16.mxu1 %v3269_v1 }
  0xbb   : > { %2998 = vmatpush3.bf16.msra.mxu0 %v3222_v32  ;;  %v3248_v32 = vld [vmem:[%s4444_s2 + $0x390] sm:$0xff]  }
  0xbc   : > { %3018 = vmatpush3.bf16.msra.mxu1 %v3223_v33  ;;  %2999 = vmatprep.subr.bf16.mxu0 %v3269_v1  ;;  %v358_v33 = vsel %vm357_vm11, %v356_v30, %v3920_v29 }
  0xbd   : > { %3019 = vmatprep.subr.bf16.mxu1 %v3269_v1 }
  0xbf   : > { %3000 = vmatpush3.bf16.msra.mxu0 %v3224_v34  ;;  %v3249_v34 = vld [vmem:[%s4444_s2 + $0x3d0] sm:$0xff]  }
  0xc0   : > { %3020 = vmatpush3.bf16.msra.mxu1 %v3225_v36  ;;  %3001 = vmatprep.subr.bf16.mxu0 %v3269_v1  ;;  %v484_v36 = vsel %vm357_vm11, %v483_v31, %v3905_v24  ;;  %v3259_v31 = vld [vmem:[%s4444_s2 + $0x3f8] sm:$0xff]  }
  0xc1   : > { %3021 = vmatprep.subr.bf16.mxu1 %v3269_v1 }
  0xc3   : > { %3002 = vmatpush3.bf16.msra.mxu0 %v3226_v37  ;;  %v596_v37 = vsel %vm337_vm1, %v3783_v44, %v3766_v39 }
  0xc4   : > { %3022 = vmatpush3.bf16.msra.mxu1 %v3227_v38  ;;  %3027 = vmatprep.subr.bf16.mxu0 %v3269_v1  ;;  %v360_v38 = vsel %vm359_vm12, %v358_v33, %v3857_v5 }
  0xc5   : > { %3047 = vmatprep.subr.bf16.mxu1 %v3269_v1 }
  0xc6   : > { %3004 = vmatmul.mubr.bf16.vlgmr.msra.gmra.mrb[20].mxu0 %v3403_v19 }
  0xc7   : > { %3024 = vmatmul.mubr.bf16.vlgmr.msra.gmra.mrb[20].mxu1 %v3403_v19  ;;  %3028 = vmatpush3.bf16.msra.mxu0 %v3228_v41  ;;  %v718_v41 = vsel %vm337_vm1, %v3834_v60, %v3783_v44 }
  0xc8   : > { %3048 = vmatpush3.bf16.msra.mxu1 %v3229_v42  ;;  %3029 = vmatprep.subr.bf16.mxu0 %v3269_v1  ;;  %v3250_v42 = vld [vmem:[%s4444_s2 + $0x398] sm:$0xff]   ;;  %v719_v52 = vsel %vm339_vm2, %v718_v41, %v3766_v39 }
  0xc9   : > { %3049 = vmatprep.subr.bf16.mxu1 %v3269_v1  ;;  %3043 = vmatprep.mubr.msk.bf16.mxu0 %vm3270_vm0, %v3269_v1 }
  0xca   : > { %3063 = vmatprep.mubr.msk.bf16.mxu1 %vm3270_vm0, %v3269_v1 }
  0xcb   : > { %3030 = vmatpush3.bf16.msra.mxu0 %v3230_v43  ;;  %v485_v43 = vsel %vm359_vm12, %v484_v36, %v3920_v29 }
  0xcc   : > { %3050 = vmatpush3.bf16.msra.mxu1 %v3231_v46  ;;  %3031 = vmatprep.subr.bf16.mxu0 %v3269_v1  ;;  %v3251_v46 = vld [vmem:[%s4444_s2 + $0x3d8] sm:$0xff]   ;;  %v486_v53 = vsel %vm361_vm13, %v485_v43, %v3857_v5  ;;  %v840_v43 = vsel %vm337_vm1, %v3857_v5, %v3834_v60 }
  0xcd   : > { %3051 = vmatprep.subr.bf16.mxu1 %v3269_v1  ;;  %v487_v61 = vsel %vm363_vm14, %v486_v53, %v3834_v60 }
  0xce   : > { %v488_v3 = vsel %vm365_vm15, %v487_v61, %v3783_v44 }
  0xcf   : > { %3032 = vmatpush3.bf16.msra.mxu0 %v3232_v47  ;;  %v597_v47 = vsel %vm339_vm2, %v596_v37, %v3809_v51 }
  0xd0   : > { %3052 = vmatpush3.bf16.msra.mxu1 %v3233_v48  ;;  %3033 = vmatprep.subr.bf16.mxu0 %v3269_v1  ;;  %v362_v48 = vsel %vm361_vm13, %v360_v38, %v3834_v60 }
  0xd1   : > { %3053 = vmatprep.subr.bf16.mxu1 %v3269_v1  ;;  %v364_v57 = vsel %vm363_vm14, %v362_v48, %v3783_v44  ;;  %v841_v48 = vsel %vm339_vm2, %v840_v43, %v3783_v44 }
  0xd2   : > { %v366_v63 = vsel %vm365_vm15, %v364_v57, %v3766_v39 }
  0xd3   : > { %3034 = vmatpush3.bf16.msra.mxu0 %v3234_v54  ;;  %v3252_v54 = vld [vmem:[%s4444_s2 + $0x3a0] sm:$0xff]  }
  0xd4   : > { %3054 = vmatpush3.bf16.msra.mxu1 %v3235_v55  ;;  %3035 = vmatprep.subr.bf16.mxu0 %v3269_v1  ;;  %v598_v55 = vsel %vm341_vm3, %v597_v47, %v3751_v35 }
  0xd5   : > { %3055 = vmatprep.subr.bf16.mxu1 %v3269_v1 }
  0xd7   : > { %3036 = vmatpush3.bf16.msra.mxu0 %v3236_v58  ;;  %v720_v58 = vsel %vm341_vm3, %v719_v52, %v3809_v51 }
  0xd8   : > { %3056 = vmatpush3.bf16.msra.mxu1 %v3237_v62  ;;  %3037 = vmatprep.subr.bf16.mxu0 %v3269_v1  ;;  %v599_v62 = vsel %vm343_vm4, %v598_v55, %v3768_v40  ;;  %v842_v55 = vsel %vm341_vm3, %v841_v48, %v3766_v39 }
  0xd9   : > { %3057 = vmatprep.subr.bf16.mxu1 %v3269_v1  ;;  %v600_v8 = vsel %vm345_vm5, %v599_v62, %v3785_v45  ;;  %v843_v61 = vsel %vm343_vm4, %v842_v55, %v3809_v51 }
  0xdb   : > { %3038 = vmatpush3.bf16.msra.mxu0 %v3238_v2  ;;  %v721_v2 = vsel %vm343_vm4, %v720_v58, %v3751_v35 }
  0xdc   : > { %3058 = vmatpush3.bf16.msra.mxu1 %v3239_v4  ;;  %3039 = vmatprep.subr.bf16.mxu0 %v3269_v1  ;;  %v3255_v4 = vld [vmem:[%s4444_s2 + $0x3e8] sm:$0xff]   ;;  %v722_v12 = vsel %vm345_vm5, %v721_v2, %v3768_v40 }
  0xdd   : > { %3059 = vmatprep.subr.bf16.mxu1 %v3269_v1 }
  0xdf   : > { %3040 = vmatpush3.bf16.msra.mxu0 %v3240_v9 }
  0xe0   : > { %3060 = vmatpush3.bf16.msra.mxu1 %v3241_v10  ;;  %3041 = vmatprep.subr.bf16.mxu0 %v3269_v1 }
  0xe1   : > { %3061 = vmatprep.subr.bf16.mxu1 %v3269_v1 }
  0xe3   : > { %3042 = vmatpush3.bf16.msra.mxu0 %v3242_v13 }
  0xe4   : > { %3062 = vmatpush3.bf16.msra.mxu1 %v3243_v17  ;;  %3067 = vmatprep.subr.bf16.mxu0 %v3269_v1 }
  0xe5   : > { %3087 = vmatprep.subr.bf16.mxu1 %v3269_v1 }
  0xe6   : > { %3044 = vmatmul.mubr.bf16.vlgmr.msra.gmra.mrb[24].mxu0 %v3403_v19 }
  0xe7   : > { %3064 = vmatmul.mubr.bf16.vlgmr.msra.gmra.mrb[24].mxu1 %v3403_v19  ;;  %3068 = vmatpush3.bf16.msra.mxu0 %v3244_v21 }
  0xe8   : > { %3088 = vmatpush3.bf16.msra.mxu1 %v3245_v23  ;;  %3069 = vmatprep.subr.bf16.mxu0 %v3269_v1  ;;  %v601_v23 = vsel %vm347_vm6, %v600_v8, %v3806_v50 }
  0xe9   : > { %3089 = vmatprep.subr.bf16.mxu1 %v3269_v1  ;;  %3083 = vmatprep.mubr.msk.bf16.mxu0 %vm3270_vm0, %v3269_v1  ;;  %v602_v30 = vsel %vm349_vm7, %v601_v23, %v3804_v49 }
  0xea   : > { %3103 = vmatprep.mubr.msk.bf16.mxu1 %vm3270_vm0, %v3269_v1  ;;  %v603_v33 = vsel %vm351_vm8, %v602_v30, %v3832_v59 }
  0xeb   : > { %3070 = vmatpush3.bf16.msra.mxu0 %v3246_v27  ;;  %v723_v27 = vsel %vm347_vm6, %v722_v12, %v3785_v45  ;;  %v604_v36 = vsel %vm353_vm9, %v603_v33, %v3859_v6 }
  0xec   : > { %3090 = vmatpush3.bf16.msra.mxu1 %v3247_v28  ;;  %3071 = vmatprep.subr.bf16.mxu0 %v3269_v1  ;;  %v3258_v28 = vld [vmem:[%s4444_s2 + $0x3b8] sm:$0xff]  }
  0xed   : > { %3091 = vmatprep.subr.bf16.mxu1 %v3269_v1 }
  0xef   : > { %3072 = vmatpush3.bf16.msra.mxu0 %v3248_v32  ;;  %v724_v32 = vsel %vm349_vm7, %v723_v27, %v3806_v50 }
  0xf0   : > { %3092 = vmatpush3.bf16.msra.mxu1 %v3249_v34  ;;  %3073 = vmatprep.subr.bf16.mxu0 %v3269_v1  ;;  %v725_v34 = vsel %vm351_vm8, %v724_v32, %v3804_v49 }
  0xf1   : > { %3093 = vmatprep.subr.bf16.mxu1 %v3269_v1  ;;  %v726_v37 = vsel %vm353_vm9, %v725_v34, %v3832_v59 }
  0xf2   : > { %v727_v38 = vsel %vm355_vm10, %v726_v37, %v3859_v6 }
  0xf3   : > { %3074 = vmatpush3.bf16.msra.mxu0 %v3250_v42  ;;  %v728_v42 = vsel %vm357_vm11, %v727_v38, %v3882_v15 }
  0xf4   : > { %3094 = vmatpush3.bf16.msra.mxu1 %v3251_v46  ;;  %3075 = vmatprep.subr.bf16.mxu0 %v3269_v1  ;;  %v729_v47 = vsel %vm359_vm12, %v728_v42, %v3880_v14 }
  0xf5   : > { %3095 = vmatprep.subr.bf16.mxu1 %v3269_v1 }
  0xf7   : > { %3076 = vmatpush3.bf16.msra.mxu0 %v3252_v54  ;;  %v730_v54 = vsel %vm361_vm13, %v729_v47, %v3905_v24 }
  0xf8   : > { %3096 = vmatpush3.bf16.msra.mxu1 %v3253_v56  ;;  %3077 = vmatprep.subr.bf16.mxu0 %v3269_v1  ;;  %v731_v58 = vsel %vm363_vm14, %v730_v54, %v3920_v29 }
  0xf9   : > { %v285_v7 = vpop.f32.mrb[0].mxu0  ;;  %3097 = vmatprep.subr.bf16.mxu1 %v3269_v1 }
  0xfa   : > { %v367_v9 = vmul.f32 %v366_v63, %v285_v7  ;;  %v468_v10 = vpop.f32.mrb[0].mxu1  ;;  %v2805_v11 = vpop.f32.mrb[1].mxu0 }
  0xfb   : > { %v489_v13 = vmul.f32 %v488_v3, %v468_v10  ;;  %v2825_v16 = vpop.f32.mrb[1].mxu1  ;;  %v288_v17 = vpop.f32.mrb[2].mxu0  ;;  %3078 = vmatpush3.bf16.msra.mxu0 %v3254_v0  ;;  %v732_v0 = vsel %vm365_vm15, %v731_v58, %v3857_v5  ;;  %v844_v3 = vsel %vm345_vm5, %v843_v61, %v3751_v35 }
  0xfc   : > { %v471_v20 = vpop.f32.mrb[2].mxu1  ;;  %3098 = vmatpush3.bf16.msra.mxu1 %v3255_v4  ;;  %v2806_v21 = vpop.f32.mrb[3].mxu0  ;;  %3079 = vmatprep.subr.bf16.mxu0 %v3269_v1 }
  0xfd   : > { %v490_v25 = vadd.f32 %v489_v13, %v367_v9  ;;  %v2826_v26 = vpop.f32.mrb[3].mxu1  ;;  %3099 = vmatprep.subr.bf16.mxu1 %v3269_v1 }
  0xff   : > { %3080 = vmatpush3.bf16.msra.mxu0 %v3256_v18  ;;  %v845_v18 = vsel %vm347_vm6, %v844_v3, %v3768_v40 }
 0x100   : > { %3100 = vmatpush3.bf16.msra.mxu1 %v3257_v22  ;;  %3081 = vmatprep.subr.bf16.mxu0 %v3269_v1  ;;  %v846_v23 = vsel %vm349_vm7, %v845_v18, %v3785_v45 }
 0x101   : > { %3101 = vmatprep.subr.bf16.mxu1 %v3269_v1  ;;  %v605_v1 = vsel %vm355_vm10, %v604_v36, %v3882_v15  ;;  %v847_v27 = vsel %vm351_vm8, %v846_v23, %v3806_v50  ;;  %v1084_v36 = vsel %vm337_vm1, %v3905_v24, %v3920_v29 }
 0x102   : > { %v606_v41 = vsel %vm357_vm11, %v605_v1, %v3880_v14  ;;  %v1206_v1 = vsel %vm337_vm1, %v3880_v14, %v3905_v24 }
 0x103   : > { %3082 = vmatpush3.bf16.msra.mxu0 %v3258_v28  ;;  %v607_v46 = vsel %vm359_vm12, %v606_v41, %v3905_v24  ;;  %v848_v28 = vsel %vm353_vm9, %v847_v27, %v3804_v49  ;;  %v1085_v41 = vsel %vm339_vm2, %v1084_v36, %v3857_v5  ;;  %v1207_v43 = vsel %vm339_vm2, %v1206_v1, %v3920_v29 }
 0x104   : > { %3102 = vmatpush3.bf16.msra.mxu1 %v3259_v31  ;;  %v608_v52 = vsel %vm361_vm13, %v607_v46, %v3920_v29  ;;  %v849_v31 = vsel %vm355_vm10, %v848_v28, %v3832_v59  ;;  %v1208_v48 = vsel %vm341_vm3, %v1207_v43, %v3857_v5  ;;  %v1328_v28 = vsel %vm337_vm1, %v3882_v15, %v3880_v14 }
 0x105   : > { %v609_v56 = vsel %vm363_vm14, %v608_v52, %v3857_v5  ;;  %v850_v33 = vsel %vm357_vm11, %v849_v31, %v3859_v6  ;;  %v1209_v55 = vsel %vm343_vm4, %v1208_v48, %v3834_v60  ;;  %v1450_v31 = vsel %vm337_vm1, %v3859_v6, %v3882_v15 }
 0x106   : > { %3084 = vmatmul.mubr.bf16.vlgmr.msra.gmra.mrb[28].mxu0 %v3403_v19  ;;  %v610_v62 = vsel %vm365_vm15, %v609_v56, %v3834_v60  ;;  %v851_v37 = vsel %vm359_vm12, %v850_v33, %v3882_v15  ;;  %v1329_v33 = vsel %vm339_vm2, %v1328_v28, %v3905_v24  ;;  %v1451_v36 = vsel %vm339_vm2, %v1450_v31, %v3880_v14 }
 0x107   : > { %3104 = vmatmul.mubr.bf16.vlgmr.msra.gmra.mrb[28].mxu1 %v3403_v19  ;;  %v962_v19 = vsel %vm337_vm1, %v3920_v29, %v3857_v5  ;;  %v852_v42 = vsel %vm361_vm13, %v851_v37, %v3880_v14  ;;  %v1330_v1 = vsel %vm341_vm3, %v1329_v33, %v3920_v29 }
 0x108   : > { %v963_v53 = vsel %vm339_vm2, %v962_v19, %v3834_v60  ;;  %v1086_v19 = vsel %vm341_vm3, %v1085_v41, %v3834_v60  ;;  %v853_v47 = vsel %vm363_vm14, %v852_v42, %v3905_v24  ;;  %v1452_v41 = vsel %vm341_vm3, %v1451_v36, %v3905_v24 }
 0x109   : > { %v964_v57 = vsel %vm341_vm3, %v963_v53, %v3783_v44  ;;  %v1087_v53 = vsel %vm343_vm4, %v1086_v19, %v3783_v44  ;;  %v854_v54 = vsel %vm365_vm15, %v853_v47, %v3920_v29  ;;  %v1331_v43 = vsel %vm343_vm4, %v1330_v1, %v3857_v5 }
 0x10a   : > { %v965_v63 = vsel %vm343_vm4, %v964_v57, %v3766_v39  ;;  %v1088_v58 = vsel %vm345_vm5, %v1087_v53, %v3766_v39  ;;  %v1453_v19 = vsel %vm343_vm4, %v1452_v41, %v3920_v29 }
 0x10b   : > { %v966_v9 = vsel %vm345_vm5, %v965_v63, %v3809_v51 }
 0x10c   : > { %v967_v21 = vsel %vm347_vm6, %v966_v9, %v3751_v35 }
 0x10d   : > { %v968_v26 = vsel %vm349_vm7, %v967_v21, %v3768_v40 }
 0x119   : > { %v590_v2 = vpop.f32.mrb[4].mxu0 }
 0x11a   : > { %v611_v4 = vmul.f32 %v610_v62, %v590_v2  ;;  %v712_v7 = vpop.f32.mrb[4].mxu1  ;;  %v2845_v8 = vpop.f32.mrb[5].mxu0 }
 0x11b   : > { %v733_v10 = vmul.f32 %v732_v0, %v712_v7  ;;  %v2865_v11 = vpop.f32.mrb[5].mxu1  ;;  %v593_v12 = vpop.f32.mrb[6].mxu0  ;;  %v1210_v0 = vsel %vm345_vm5, %v1209_v55, %v3783_v44 }
 0x11c   : > { %v612_v13 = vadd.f32 %v611_v4, %v490_v25  ;;  %v715_v16 = vpop.f32.mrb[6].mxu1  ;;  %v2846_v17 = vpop.f32.mrb[7].mxu0  ;;  %v969_v25 = vsel %vm351_vm8, %v968_v26, %v3785_v45  ;;  %v1211_v12 = vsel %vm347_vm6, %v1210_v0, %v3766_v39 }
 0x11d   : > { %v2866_v20 = vpop.f32.mrb[7].mxu1  ;;  %v970_v30 = vsel %vm353_vm9, %v969_v25, %v3806_v50  ;;  %v1212_v17 = vsel %vm349_vm7, %v1211_v12, %v3809_v51 }
 0x11e   : > { %v734_v22 = vadd.f32 %v733_v10, %v612_v13  ;;  %v971_v32 = vsel %vm355_vm10, %v970_v30, %v3804_v49  ;;  %v1089_v10 = vsel %vm347_vm6, %v1088_v58, %v3809_v51  ;;  %v1213_v20 = vsel %vm351_vm8, %v1212_v17, %v3751_v35 }
 0x11f   : > { %v972_v34 = vsel %vm357_vm11, %v971_v32, %v3832_v59  ;;  %v1090_v16 = vsel %vm349_vm7, %v1089_v10, %v3751_v35 }
 0x120   : > { %v973_v38 = vsel %vm359_vm12, %v972_v34, %v3859_v6  ;;  %v1091_v18 = vsel %vm351_vm8, %v1090_v16, %v3768_v40 }
 0x121   : > { %v974_v46 = vsel %vm361_vm13, %v973_v38, %v3882_v15  ;;  %v1092_v21 = vsel %vm353_vm9, %v1091_v18, %v3785_v45 }
 0x122   : > { %v975_v52 = vsel %vm363_vm14, %v974_v46, %v3880_v14  ;;  %v1093_v23 = vsel %vm355_vm10, %v1092_v21, %v3806_v50  ;;  %v1572_v21 = vsel %vm337_vm1, %v3832_v59, %v3859_v6 }
 0x123   : > { %v976_v56 = vsel %vm365_vm15, %v975_v52, %v3905_v24  ;;  %v1094_v27 = vsel %vm357_vm11, %v1093_v23, %v3804_v49  ;;  %v1332_v52 = vsel %vm345_vm5, %v1331_v43, %v3834_v60  ;;  %v1694_v23 = vsel %vm337_vm1, %v3804_v49, %v3832_v59 }
 0x124   : > { %v1095_v30 = vsel %vm359_vm12, %v1094_v27, %v3832_v59  ;;  %v1573_v27 = vsel %vm339_vm2, %v1572_v21, %v3882_v15  ;;  %v1695_v28 = vsel %vm339_vm2, %v1694_v23, %v3859_v6 }
 0x125   : > { %v1096_v34 = vsel %vm361_vm13, %v1095_v30, %v3859_v6  ;;  %v1574_v31 = vsel %vm341_vm3, %v1573_v27, %v3880_v14  ;;  %v1696_v33 = vsel %vm341_vm3, %v1695_v28, %v3882_v15 }
 0x126   : > { %v1097_v38 = vsel %vm363_vm14, %v1096_v34, %v3882_v15  ;;  %v1575_v36 = vsel %vm343_vm4, %v1574_v31, %v3905_v24  ;;  %v1697_v1 = vsel %vm343_vm4, %v1696_v33, %v3880_v14 }
 0x127   : > { %v1098_v46 = vsel %vm365_vm15, %v1097_v38, %v3880_v14 }
 0x139   : > { %v834_v57 = vpop.f32.mrb[8].mxu0 }
 0x13a   : > { %v855_v61 = vmul.f32 %v854_v54, %v834_v57  ;;  %v956_v62 = vpop.f32.mrb[8].mxu1  ;;  %v2885_v63 = vpop.f32.mrb[9].mxu0 }
 0x13b   : > { %v977_v2 = vmul.f32 %v976_v56, %v956_v62  ;;  %v2905_v3 = vpop.f32.mrb[9].mxu1  ;;  %v837_v4 = vpop.f32.mrb[10].mxu0  ;;  %v1454_v56 = vsel %vm345_vm5, %v1453_v19, %v3857_v5 }
 0x13c   : > { %v856_v7 = vadd.f32 %v855_v61, %v734_v22  ;;  %v959_v8 = vpop.f32.mrb[10].mxu1  ;;  %v2886_v9 = vpop.f32.mrb[11].mxu0  ;;  %v1214_v22 = vsel %vm353_vm9, %v1213_v20, %v3768_v40  ;;  %v1455_v4 = vsel %vm347_vm6, %v1454_v56, %v3834_v60 }
 0x13d   : > { %v2906_v11 = vpop.f32.mrb[11].mxu1  ;;  %v1215_v26 = vsel %vm355_vm10, %v1214_v22, %v3785_v45  ;;  %v1456_v9 = vsel %vm349_vm7, %v1455_v4, %v3783_v44 }
 0x13e   : > { %v978_v13 = vadd.f32 %v977_v2, %v856_v7  ;;  %v1216_v25 = vsel %vm357_vm11, %v1215_v26, %v3806_v50  ;;  %v1333_v2 = vsel %vm347_vm6, %v1332_v52, %v3783_v44  ;;  %v1457_v11 = vsel %vm351_vm8, %v1456_v9, %v3766_v39 }
 0x13f   : > { %v1217_v32 = vsel %vm359_vm12, %v1216_v25, %v3804_v49  ;;  %v1334_v8 = vsel %vm349_vm7, %v1333_v2, %v3766_v39 }
 0x140   : > { %v1218_v37 = vsel %vm361_vm13, %v1217_v32, %v3832_v59  ;;  %v1335_v10 = vsel %vm351_vm8, %v1334_v8, %v3809_v51 }
 0x141   : > { %v1219_v42 = vsel %vm363_vm14, %v1218_v37, %v3859_v6  ;;  %v1336_v12 = vsel %vm353_vm9, %v1335_v10, %v3751_v35 }
 0x142   : > { %v1220_v47 = vsel %vm365_vm15, %v1219_v42, %v3882_v15  ;;  %v1337_v16 = vsel %vm355_vm10, %v1336_v12, %v3768_v40  ;;  %v1576_v42 = vsel %vm345_vm5, %v1575_v36, %v3920_v29 }
 0x143   : > { %v1338_v18 = vsel %vm357_vm11, %v1337_v16, %v3785_v45  ;;  %v1816_v16 = vsel %vm337_vm1, %v3806_v50, %v3804_v49 }
 0x144   : > { %v1339_v22 = vsel %vm359_vm12, %v1338_v18, %v3806_v50  ;;  %v1938_v18 = vsel %vm337_vm1, %v3785_v45, %v3806_v50  ;;  %v1817_v21 = vsel %vm339_vm2, %v1816_v16, %v3832_v59 }
 0x145   : > { %v1340_v25 = vsel %vm361_vm13, %v1339_v22, %v3804_v49  ;;  %v1939_v23 = vsel %vm339_vm2, %v1938_v18, %v3804_v49  ;;  %v1818_v27 = vsel %vm341_vm3, %v1817_v21, %v3859_v6 }
 0x146   : > { %v1341_v32 = vsel %vm363_vm14, %v1340_v25, %v3832_v59  ;;  %v1940_v28 = vsel %vm341_vm3, %v1939_v23, %v3832_v59  ;;  %v1819_v31 = vsel %vm343_vm4, %v1818_v27, %v3882_v15 }
 0x147   : > { %v1342_v37 = vsel %vm365_vm15, %v1341_v32, %v3859_v6 }
 0x159   : > { %v1078_v48 = vpop.f32.mrb[12].mxu0 }
 0x15a   : > { %v1099_v53 = vmul.f32 %v1098_v46, %v1078_v48  ;;  %v1200_v54 = vpop.f32.mrb[12].mxu1  ;;  %v2925_v55 = vpop.f32.mrb[13].mxu0 }
 0x15b   : > { %v1221_v57 = vmul.f32 %v1220_v47, %v1200_v54  ;;  %v2945_v58 = vpop.f32.mrb[13].mxu1  ;;  %v1081_v61 = vpop.f32.mrb[14].mxu0  ;;  %v1698_v47 = vsel %vm345_vm5, %v1697_v1, %v3905_v24 }
 0x15c   : > { %v1100_v62 = vadd.f32 %v1099_v53, %v978_v13  ;;  %v1203_v63 = vpop.f32.mrb[14].mxu1  ;;  %v2926_v0 = vpop.f32.mrb[15].mxu0  ;;  %v1458_v13 = vsel %vm353_vm9, %v1457_v11, %v3809_v51  ;;  %v1699_v61 = vsel %vm347_vm6, %v1698_v47, %v3920_v29 }
 0x15d   : > { %v2946_v3 = vpop.f32.mrb[15].mxu1  ;;  %v1459_v17 = vsel %vm355_vm10, %v1458_v13, %v3751_v35  ;;  %v1700_v0 = vsel %vm349_vm7, %v1699_v61, %v3857_v5 }
 0x15e   : > { %v1222_v7 = vadd.f32 %v1221_v57, %v1100_v62  ;;  %v1460_v20 = vsel %vm357_vm11, %v1459_v17, %v3768_v40  ;;  %v1577_v57 = vsel %vm347_vm6, %v1576_v42, %v3857_v5  ;;  %v1701_v3 = vsel %vm351_vm8, %v1700_v0, %v3834_v60 }
 0x15f   : > { %v1461_v26 = vsel %vm359_vm12, %v1460_v20, %v3785_v45  ;;  %v1578_v63 = vsel %vm349_vm7, %v1577_v57, %v3834_v60  ;;  %v1820_v42 = vsel %vm345_vm5, %v1819_v31, %v3880_v14 }
 0x160   : > { %v1462_v30 = vsel %vm361_vm13, %v1461_v26, %v3806_v50  ;;  %v1579_v2 = vsel %vm351_vm8, %v1578_v63, %v3783_v44 }
 0x161   : > { %v1463_v34 = vsel %vm363_vm14, %v1462_v30, %v3804_v49  ;;  %v1580_v4 = vsel %vm353_vm9, %v1579_v2, %v3766_v39 }
 0x162   : > { %v1464_v38 = vsel %vm365_vm15, %v1463_v34, %v3832_v59  ;;  %v1581_v8 = vsel %vm355_vm10, %v1580_v4, %v3809_v51  ;;  %v2060_v4 = vsel %vm337_vm1, %v3768_v40, %v3785_v45 }
 0x163   : > { %v1582_v10 = vsel %vm357_vm11, %v1581_v8, %v3751_v35  ;;  %v2182_v8 = vsel %vm337_vm1, %v3751_v35, %v3768_v40 }
 0x164   : > { %v1583_v12 = vsel %vm359_vm12, %v1582_v10, %v3768_v40  ;;  %v2061_v10 = vsel %vm339_vm2, %v2060_v4, %v3806_v50 }
 0x165   : > { %v1584_v17 = vsel %vm361_vm13, %v1583_v12, %v3785_v45  ;;  %v2183_v12 = vsel %vm339_vm2, %v2182_v8, %v3785_v45  ;;  %v2062_v16 = vsel %vm341_vm3, %v2061_v10, %v3804_v49 }
 0x166   : > { %v1585_v22 = vsel %vm363_vm14, %v1584_v17, %v3806_v50  ;;  %v2184_v18 = vsel %vm341_vm3, %v2183_v12, %v3806_v50  ;;  %v2063_v21 = vsel %vm343_vm4, %v2062_v16, %v3832_v59 }
 0x167   : > { %v1586_v25 = vsel %vm365_vm15, %v1585_v22, %v3804_v49 }
 0x179   : > { %v1322_v41 = vpop.f32.mrb[16].mxu0 }
 0x17a   : > { %v1343_v43 = vmul.f32 %v1342_v37, %v1322_v41  ;;  %v1444_v46 = vpop.f32.mrb[16].mxu1  ;;  %v2965_v19 = vpop.f32.mrb[17].mxu0  ;;  %v1941_v37 = vsel %vm343_vm4, %v1940_v28, %v3859_v6  ;;  %v2185_v28 = vsel %vm343_vm4, %v2184_v18, %v3804_v49 }
 0x17b   : > { %v1465_v48 = vmul.f32 %v1464_v38, %v1444_v46  ;;  %v2985_v52 = vpop.f32.mrb[17].mxu1  ;;  %v1325_v53 = vpop.f32.mrb[18].mxu0 }
 0x17c   : > { %v1344_v54 = vadd.f32 %v1343_v43, %v1222_v7  ;;  %v1447_v55 = vpop.f32.mrb[18].mxu1  ;;  %v2966_v56 = vpop.f32.mrb[19].mxu0  ;;  %v1702_v7 = vsel %vm353_vm9, %v1701_v3, %v3783_v44  ;;  %v1821_v53 = vsel %vm347_vm6, %v1820_v42, %v3905_v24 }
 0x17d   : > { %v2986_v58 = vpop.f32.mrb[19].mxu1  ;;  %v1703_v9 = vsel %vm355_vm10, %v1702_v7, %v3766_v39  ;;  %v1822_v55 = vsel %vm349_vm7, %v1821_v53, %v3920_v29 }
 0x17e   : > { %v1466_v62 = vadd.f32 %v1465_v48, %v1344_v54  ;;  %v1704_v11 = vsel %vm357_vm11, %v1703_v9, %v3809_v51  ;;  %v1942_v48 = vsel %vm345_vm5, %v1941_v37, %v3882_v15  ;;  %v1823_v57 = vsel %vm351_vm8, %v1822_v55, %v3857_v5 }
 0x17f   : > { %v1705_v13 = vsel %vm359_vm12, %v1704_v11, %v3751_v35  ;;  %v1943_v54 = vsel %vm347_vm6, %v1942_v48, %v3880_v14  ;;  %v1824_v61 = vsel %vm353_vm9, %v1823_v57, %v3834_v60 }
 0x180   : > { %v1706_v20 = vsel %vm361_vm13, %v1705_v13, %v3768_v40  ;;  %v1944_v56 = vsel %vm349_vm7, %v1943_v54, %v3905_v24  ;;  %v1825_v63 = vsel %vm355_vm10, %v1824_v61, %v3783_v44 }
 0x181   : > { %v1707_v26 = vsel %vm363_vm14, %v1706_v20, %v3785_v45  ;;  %v1945_v58 = vsel %vm351_vm8, %v1944_v56, %v3920_v29  ;;  %v1826_v2 = vsel %vm357_vm11, %v1825_v63, %v3766_v39 }
 0x182   : > { %v1708_v30 = vsel %vm365_vm15, %v1707_v26, %v3806_v50  ;;  %v1827_v7 = vsel %vm359_vm12, %v1826_v2, %v3809_v51 }
 0x183   : > { %v1828_v11 = vsel %vm361_vm13, %v1827_v7, %v3751_v35 }
 0x184   : > { %v1829_v17 = vsel %vm363_vm14, %v1828_v11, %v3768_v40 }
 0x185   : > { %v1830_v23 = vsel %vm365_vm15, %v1829_v17, %v3785_v45  ;;  %v2186_v45 = vsel %vm345_vm5, %v2185_v28, %v3832_v59 }
 0x199   : > { %v1566_v32 = vpop.f32.mrb[20].mxu0 }
 0x19a   : > { %v1587_v33 = vmul.f32 %v1586_v25, %v1566_v32  ;;  %v1688_v34 = vpop.f32.mrb[20].mxu1  ;;  %v3005_v36 = vpop.f32.mrb[21].mxu0  ;;  %v2064_v32 = vsel %vm345_vm5, %v2063_v21, %v3859_v6 }
 0x19b   : > { %v1709_v1 = vmul.f32 %v1708_v30, %v1688_v34  ;;  %v3025_v38 = vpop.f32.mrb[21].mxu1  ;;  %v1569_v41 = vpop.f32.mrb[22].mxu0  ;;  %v2065_v49 = vsel %vm347_vm6, %v2064_v32, %v3882_v15 }
 0x19c   : > { %v1588_v43 = vadd.f32 %v1587_v33, %v1466_v62  ;;  %v1691_v46 = vpop.f32.mrb[22].mxu1  ;;  %v3006_v19 = vpop.f32.mrb[23].mxu0  ;;  %v1946_v62 = vsel %vm353_vm9, %v1945_v58, %v3857_v5  ;;  %v2066_v41 = vsel %vm349_vm7, %v2065_v49, %v3880_v14 }
 0x19d   : > { %v3026_v47 = vpop.f32.mrb[23].mxu1  ;;  %v1947_v0 = vsel %vm355_vm10, %v1946_v62, %v3834_v60 }
 0x19e   : > { %v1710_v52 = vadd.f32 %v1709_v1, %v1588_v43  ;;  %v1948_v3 = vsel %vm357_vm11, %v1947_v0, %v3783_v44  ;;  %v2067_v43 = vsel %vm351_vm8, %v2066_v41, %v3905_v24 }
 0x19f   : > { %v1949_v9 = vsel %vm359_vm12, %v1948_v3, %v3766_v39  ;;  %v2068_v59 = vsel %vm353_vm9, %v2067_v43, %v3920_v29 }
 0x1a0   : > { %v1950_v13 = vsel %vm361_vm13, %v1949_v9, %v3809_v51 }
 0x1a1   : > { %v1951_v20 = vsel %vm363_vm14, %v1950_v13, %v3751_v35 }
 0x1a2   : > { %v1952_v30 = vsel %vm365_vm15, %v1951_v20, %v3768_v40  ;;  %v2187_v40 = vsel %vm347_vm6, %v2186_v45, %v3859_v6  ;;  %v2069_v6 = vsel %vm355_vm10, %v2068_v59, %v3857_v5 }
 0x1a3   : > { %v2188_v42 = vsel %vm349_vm7, %v2187_v40, %v3882_v15  ;;  %v2070_v15 = vsel %vm357_vm11, %v2069_v6, %v3834_v60 }
 0x1a4   : > { %v2189_v46 = vsel %vm351_vm8, %v2188_v42, %v3880_v14  ;;  %v2071_v14 = vsel %vm359_vm12, %v2070_v15, %v3783_v44 }
 0x1a5   : > { %v2190_v19 = vsel %vm353_vm9, %v2189_v46, %v3905_v24  ;;  %v2072_v24 = vsel %vm361_vm13, %v2071_v14, %v3766_v39 }
 0x1a6   : > { %v2191_v47 = vsel %vm355_vm10, %v2190_v19, %v3920_v29  ;;  %v2073_v29 = vsel %vm363_vm14, %v2072_v24, %v3809_v51 }
 0x1a7   : > { %v2192_v48 = vsel %vm357_vm11, %v2191_v47, %v3857_v5  ;;  %v2074_v55 = vsel %vm365_vm15, %v2073_v29, %v3751_v35 }
 0x1b9   : > { %v1810_v22 = vpop.f32.mrb[24].mxu0 }
 0x1ba   : > { %v1831_v26 = vmul.f32 %v1830_v23, %v1810_v22  ;;  %v1932_v27 = vpop.f32.mrb[24].mxu1  ;;  %v3045_v25 = vpop.f32.mrb[25].mxu0 }
 0x1bb   : > { %v3065_v50 = vpop.f32.mrb[25].mxu1  ;;  %v1813_v31 = vpop.f32.mrb[26].mxu0  ;;  %v1953_v34 = vmul.f32 %v1952_v30, %v1932_v27 }
 0x1bc   : > { %v1832_v33 = vadd.f32 %v1831_v26, %v1710_v52  ;;  %v1935_v36 = vpop.f32.mrb[26].mxu1  ;;  %v3046_v37 = vpop.f32.mrb[27].mxu0  ;;  %v2193_v52 = vsel %vm359_vm12, %v2192_v48, %v3834_v60 }
 0x1bd   : > { %v3066_v1 = vpop.f32.mrb[27].mxu1  ;;  %v2194_v53 = vsel %vm361_vm13, %v2193_v52, %v3783_v44 }
 0x1be   : > { %v1954_v38 = vadd.f32 %v1953_v34, %v1832_v33  ;;  %v2195_v54 = vsel %vm363_vm14, %v2194_v53, %v3766_v39 }
 0x1bf   : > { %v2196_v58 = vsel %vm365_vm15, %v2195_v54, %v3809_v51 }
 0x1d9   : > { %v2054_v5 = vpop.f32.mrb[28].mxu0 }
 0x1da   : > { %v2075_v56 = vmul.f32 %v2074_v55, %v2054_v5  ;;  %v2176_v57 = vpop.f32.mrb[28].mxu1  ;;  %v3085_v60 = vpop.f32.mrb[29].mxu0 }
 0x1db   : > { %v3105_v61 = vpop.f32.mrb[29].mxu1  ;;  %v2057_v62 = vpop.f32.mrb[30].mxu0  ;;  %v2197_v44 = vmul.f32 %v2196_v58, %v2176_v57 }
 0x1dc   : > { %v2076_v63 = vadd.f32 %v2075_v56, %v1954_v38  ;;  %v2179_v0 = vpop.f32.mrb[30].mxu1  ;;  %v3086_v2 = vpop.f32.mrb[31].mxu0 }
 0x1dd   : > { %v3106_v39 = vpop.f32.mrb[31].mxu1 }
 0x1de   : > { %v2198_v3 = vadd.f32 %v2197_v44, %v2076_v63 }
 0x1e0   : > { %2199 = vst [vmem:[%s182_s25] sm:$0xff] %v2198_v3 }
 0x1e1 PF: > { %s13_s12 = sadd.s32 1, %s3267_s12  }
 0x1e2   : > { %p10_p4 = scmp.ge.s32.totalorder %s13_s12, 4  }
 0x1e4   :  { %12 = sbr.rel (!%p10_p4) target bundleno = 1 (0x1), region = 80 }

</bundles_post_ra>
